<compile_context>
chip_gen: v5e
topology: v5e:2x2
jax: 0.10.0
libtpu: 0.0.40
codegen_flags: <defaults>
</compile_context>

<pallas_src>
import math
import numpy as np
import jax
import jax.numpy as jnp
from jax.experimental import pallas as pl
from jax.experimental.pallas import tpu as pltpu

# ----------------------------- config ---------------------------------------
MODEL_DIM = 32
FF_DIM = 64
NHEAD = 4
HEAD_DIM = MODEL_DIM // NHEAD
NZ = 8
NLAYER = 1
FORECAST_DIM = 2
IN_DIM = FORECAST_DIM * 2          # input_type = ['pos', 'vel']
NUM_DIST_PARAMS = 2 * NZ           # gaussian

FUT_LEN = 8
PRE_LEN = 8
AGENT_NUM = 4
BS = 2

SLAB_LANES = 128                   # lane width of packed weight slabs / output
MAX_ROWS_PER_STEP = 256            # target M per grid step (MXU row fill)
NEG_INF = -1e30

# per-layer parameter list (name, shape) — fused QKV / KV projections
LAYER_PARAM_SHAPES = [
    ('w_qkv_s', (MODEL_DIM, 3 * MODEL_DIM)), ('b_qkv_s', (1, 3 * MODEL_DIM)),
    ('w_o_s',   (MODEL_DIM, MODEL_DIM)),     ('b_o_s',   (1, MODEL_DIM)),
    ('w_q_c',   (MODEL_DIM, MODEL_DIM)),     ('b_q_c',   (1, MODEL_DIM)),
    ('w_kv_c',  (MODEL_DIM, 2 * MODEL_DIM)), ('b_kv_c',  (1, 2 * MODEL_DIM)),
    ('w_o_c',   (MODEL_DIM, MODEL_DIM)),     ('b_o_c',   (1, MODEL_DIM)),
    ('ln1_w', (1, MODEL_DIM)), ('ln1_b', (1, MODEL_DIM)),
    ('ln2_w', (1, MODEL_DIM)), ('ln2_b', (1, MODEL_DIM)),
    ('ln3_w', (1, MODEL_DIM)), ('ln3_b', (1, MODEL_DIM)),
    ('ff_w1', (MODEL_DIM, FF_DIM)), ('ff_b1', (1, FF_DIM)),
    ('ff_w2', (FF_DIM, MODEL_DIM)), ('ff_b2', (1, MODEL_DIM)),
]
MAT_ORDER = ['w_in', 'w_z'] + [
    f'l{l}_{n}' for l in range(NLAYER)
    for n in ['w_qkv_s', 'w_o_s', 'w_q_c', 'w_kv_c', 'w_o_c', 'ff_w1', 'ff_w2']]
VEC_ORDER = ['b_in', 'b_z'] + [
    f'l{l}_{n}' for l in range(NLAYER)
    for n in ['b_qkv_s', 'b_o_s', 'b_q_c', 'b_kv_c', 'b_o_c',
              'ln1_w', 'ln1_b', 'ln2_w', 'ln2_b', 'ln3_w', 'ln3_b',
              'ff_b1', 'ff_b2']]


# --------------------------- kernel helpers ----------------------------------
def _layer_norm(x, w, b, eps=1e-5):
    mu = jnp.mean(x, axis=-1, keepdims=True)
    var = jnp.mean((x - mu) ** 2, axis=-1, keepdims=True)
    return (x - mu) * jax.lax.rsqrt(var + eps) * w + b


def _mha(q, k, v, wo, bo, bias):
    """Multi-head attention with precomputed additive mask bias.

    q/k/v: (Lq,D)/(Lk,D) already projected; bias: (Lq,Lk) f32 (0 or -1e30).
    Per-head PV results are lane-concatenated and sent through a single output
    projection; softmax denominator uses the EUP approx reciprocal.
    """
    q = q * (1.0 / math.sqrt(HEAD_DIM))        # hoisted, head-invariant
    phs = []
    for h in range(NHEAD):
        sl = slice(h * HEAD_DIM, (h + 1) * HEAD_DIM)
        s = jax.lax.dot_general(q[:, sl], k[:, sl], (((1,), (1,)), ((), ())),
                                preferred_element_type=jnp.float32) + bias
        m = jnp.max(s, axis=-1, keepdims=True)
        e = jnp.exp(s - m)
        p = e * pl.reciprocal(jnp.sum(e, axis=-1, keepdims=True), approx=True)
        phs.append(jnp.dot(p, v[:, sl], preferred_element_type=jnp.float32))
    attn = jnp.concatenate(phs, axis=-1)                         # (Lq, D)
    return jnp.dot(attn, wo, preferred_element_type=jnp.float32) + bo


# ------------------------------- kernel --------------------------------------
def make_kernel(mat_off, vec_off, nlayer, rf):
    D = MODEL_DIM

    def kernel(fut_ref, pre_ref, pool_ref, sb_ref, mb_ref,
               wmat_ref, wvec_ref, o_ref):
        # static views into the packed weight slabs (bf16 matrices, f32 vectors)
        def wm(name, full_lanes=False):
            off, r, c = mat_off[name]
            sl = wmat_ref[off:off + r, :] if full_lanes else wmat_ref[off:off + r, :c]
            return sl.astype(jnp.float32)

        def wv(name, full_lanes=False):
            row, c = vec_off[name]
            return wvec_ref[row:row + 1, :] if full_lanes else wvec_ref[row:row + 1, :c]

        # fut-side slab stacked along sublanes: rows [0:rf)=pos, [rf:2rf)=x
        pos = fut_ref[0:rf, :]                  # (RF, D)
        xf = fut_ref[rf:2 * rf, :]              # (RF, D); lanes >= IN_DIM hit zero weight rows
        ctx = pre_ref[...]                      # (RP, D)
        sb = sb_ref[...]                        # (RF, RF) additive self-attn bias
        mb = mb_ref[...]                        # (RF, RP) additive cross-attn bias

        # input_fc + positional encoding.  x is pre-masked host-side; masked
        # rows stay nonzero here but are never keys (bias) and are zeroed by
        # the mask-folded pooling matrix, so valid outputs match the reference.
        tf = (jnp.dot(xf, wm('w_in'), preferred_element_type=jnp.float32)
              + wv('b_in') + pos)

        for l in range(nlayer):
            pfx = f'l{l}_'
            # ---- self-attention (fused QKV projection) ----
            qkv = (jnp.dot(tf, wm(pfx + 'w_qkv_s'),
                           preferred_element_type=jnp.float32) + wv(pfx + 'b_qkv_s'))
            sa = _mha(qkv[:, :D], qkv[:, D:2 * D], qkv[:, 2 * D:],
                      wm(pfx + 'w_o_s'), wv(pfx + 'b_o_s'), sb)
            tf = _layer_norm(tf + sa, wv(pfx + 'ln1_w'), wv(pfx + 'ln1_b'))

            # ---- cross-attention (fused KV projection) ----
            qc = (jnp.dot(tf, wm(pfx + 'w_q_c'),
                          preferred_element_type=jnp.float32) + wv(pfx + 'b_q_c'))
            kvc = (jnp.dot(ctx, wm(pfx + 'w_kv_c'),
                           preferred_element_type=jnp.float32) + wv(pfx + 'b_kv_c'))
            ca = _mha(qc, kvc[:, :D], kvc[:, D:],
                      wm(pfx + 'w_o_c'), wv(pfx + 'b_o_c'), mb)
            tf = _layer_norm(tf + ca, wv(pfx + 'ln2_w'), wv(pfx + 'ln2_b'))

            # ---- feed-forward ----
            ff = jnp.maximum(
                jnp.dot(tf, wm(pfx + 'ff_w1'),
                        preferred_element_type=jnp.float32) + wv(pfx + 'ff_b1'), 0.0)
            ff = (jnp.dot(ff, wm(pfx + 'ff_w2'),
                          preferred_element_type=jnp.float32) + wv(pfx + 'ff_b2'))
            tf = _layer_norm(tf + ff, wv(pfx + 'ln3_w'), wv(pfx + 'ln3_b'))

        # fut-mask and (1/T) mean over time are folded into pool_ref host-side
        h = jnp.dot(pool_ref[...], tf, preferred_element_type=jnp.float32)   # (A*G, D)
        # q_z_net with weight/bias lane-padded to 128 -> lane-dense output store
        o_ref[...] = (jnp.dot(h, wm('w_z', full_lanes=True),
                              preferred_element_type=jnp.float32)
                      + wv('b_z', full_lanes=True))
    return kernel


# ------------------------------ wrapper ---------------------------------------
def build_pos_enc(max_len, d):
    pos = jnp.arange(max_len, dtype=jnp.float32)[:, None]
    div = jnp.exp(jnp.arange(0, d, 2, dtype=jnp.float32) * (-np.log(10000.0) / d))
    pe = jnp.zeros((max_len, d), dtype=jnp.float32)
    pe = pe.at[:, 0::2].set(jnp.sin(pos * div))
    pe = pe.at[:, 1::2].set(jnp.cos(pos * div))
    return pe


def init_params(key):
    keys = jax.random.split(key, 128)
    idx = iter(range(128))

    def nrm(shape, scale=0.1):
        return scale * jax.random.normal(keys[next(idx)], shape, dtype=jnp.float32)

    p = {
        'w_in': nrm((IN_DIM, MODEL_DIM)),
        'b_in': jnp.zeros((1, MODEL_DIM), jnp.float32),
        'w_z':  nrm((MODEL_DIM, NUM_DIST_PARAMS)),
        'b_z':  jnp.zeros((1, NUM_DIST_PARAMS), jnp.float32),
    }
    for l in range(NLAYER):
        for name, shape in LAYER_PARAM_SHAPES:
            if name.startswith('w_') or name.startswith('ff_w'):
                val = nrm(shape)
            elif name.startswith('ln') and name.endswith('_w'):
                val = jnp.ones(shape, jnp.float32)
            else:
                val = jnp.zeros(shape, jnp.float32)
            p[f'l{l}_{name}'] = val
    return p


def pack_mats(params):
    """All weight matrices -> one bf16 (rows,128) slab; row-blocks padded to x16.
    input_fc weight is padded to MODEL_DIM rows so the kernel can feed the full
    32-lane x block (extra lanes hit zero weight rows)."""
    offsets, blocks, off = {}, [], 0
    for name in MAT_ORDER:
        w = params[name]
        r, c = w.shape
        read_r = MODEL_DIM if name == 'w_in' else r
        rp = -(-read_r // 16) * 16
        blk = jnp.zeros((rp, SLAB_LANES), jnp.float32).at[:r, :c].set(w)
        blocks.append(blk)
        offsets[name] = (off, read_r, c)
        off += rp
    return jnp.concatenate(blocks, axis=0).astype(jnp.bfloat16), offsets


def pack_vecs(params):
    """All bias / LayerNorm vectors densely packed as rows of one f32 slab."""
    offsets, rows = {}, []
    for i, name in enumerate(VEC_ORDER):
        v = params[name]
        c = v.shape[1]
        rows.append(jnp.zeros((1, SLAB_LANES), jnp.float32).at[:, :c].set(v))
        offsets[name] = (i, c)
    pad = (-len(rows)) % 8
    if pad:
        rows.append(jnp.zeros((pad, SLAB_LANES), jnp.float32))
    return jnp.concatenate(rows, axis=0), offsets


def future_encoder_forward(data, params, *, sample_key=None):
    fut_motion = data['fut_motion']            # (T, A, bs, 2)
    fut_vel = data['fut_vel']                  # (T, A, bs, 2)
    fut_mask = data['fut_mask']                # (bs, A, T)
    pre_mask = data['pre_mask']                # (bs, A, Tp)
    context_enc = data['context_enc']          # (PN, bs, D)

    T, A, bs, _ = fut_motion.shape
    Tp = pre_mask.shape[2]
    FN_, PN_ = T * A, Tp * A

    # ---- scene grouping: fold up to ~MAX_ROWS_PER_STEP rows per grid step ----
    G = max(1, min(bs, MAX_ROWS_PER_STEP // max(FN_, 1)))
    n_groups = -(-bs // G)
    bs_pad = n_groups * G
    pad_n = bs_pad - bs
    if pad_n:   # dummy fully-masked scenes; their outputs are sliced away
        fut_motion = jnp.pad(fut_motion, ((0, 0), (0, 0), (0, pad_n), (0, 0)))
        fut_vel = jnp.pad(fut_vel, ((0, 0), (0, 0), (0, pad_n), (0, 0)))
        fut_mask = jnp.pad(fut_mask, ((0, pad_n), (0, 0), (0, 0)))
        pre_mask = jnp.pad(pre_mask, ((0, pad_n), (0, 0), (0, 0)))
        context_enc = jnp.pad(context_enc, ((0, 0), (0, pad_n), (0, 0)))

    RF_g, RP_g = G * FN_, G * PN_
    RF_tot, RP_tot = bs_pad * FN_, bs_pad * PN_

    # ---- per-row data (row order: scene, t, a) ----
    traj = jnp.concatenate([fut_motion, fut_vel], axis=-1)          # (T,A,bsp,4)
    traj = jnp.transpose(traj, (2, 0, 1, 3)).reshape(RF_tot, IN_DIM)
    fmask = jnp.transpose(fut_mask, (0, 2, 1)).reshape(RF_tot, 1).astype(jnp.float32)
    pmask = jnp.transpose(pre_mask, (0, 2, 1)).reshape(RP_tot, 1).astype(jnp.float32)
    x_m = traj * fmask                                              # pre-masked input
    x_pad = jnp.zeros((RF_tot, MODEL_DIM), jnp.float32).at[:, :IN_DIM].set(x_m)

    pe = build_pos_enc(200, MODEL_DIM)
    pos_all = jnp.tile(jnp.repeat(pe[:T], A, axis=0), (bs_pad, 1))  # (RF_tot, D)

    ctx_rows = jnp.transpose(context_enc, (1, 0, 2)).reshape(RP_tot, MODEL_DIM)

    # fut slab per group: sublane-stacked [pos ; x] (free sublane views in-kernel)
    pos_g = pos_all.reshape(n_groups, RF_g, MODEL_DIM)
    x_g = x_pad.reshape(n_groups, RF_g, MODEL_DIM)
    fut_all = jnp.concatenate([pos_g, x_g], axis=1).reshape(n_groups * 2 * RF_g, MODEL_DIM)
    pre_all = ctx_rows.reshape(n_groups * RP_g, MODEL_DIM)

    # ---- precomputed additive attention biases (0 / -1e30), block-diag per scene ----
    fmask_g = fmask.reshape(n_groups, RF_g)
    pmask_g = pmask.reshape(n_groups, RP_g)
    sid_f = np.repeat(np.arange(G), FN_)
    sid_p = np.repeat(np.arange(G), PN_)
    same_ff = jnp.asarray((sid_f[:, None] == sid_f[None, :]).astype(np.float32))
    same_fp = jnp.asarray((sid_f[:, None] == sid_p[None, :]).astype(np.float32))
    allow_s = same_ff[None] * fmask_g[:, :, None] * fmask_g[:, None, :]
    allow_m = same_fp[None] * fmask_g[:, :, None] * pmask_g[:, None, :]
    sb_all = jnp.where(allow_s > 0, 0.0, NEG_INF).astype(jnp.float32)
    mb_all = jnp.where(allow_m > 0, 0.0, NEG_INF).astype(jnp.float32)
    sb_all = sb_all.reshape(n_groups * RF_g, RF_g)
    mb_all = mb_all.reshape(n_groups * RF_g, RP_g)

    # ---- pooling matrix with fut-mask and 1/T folded in (per group, rows = a*G + s) ----
    rows_g = A * G
    r = np.arange(rows_g)
    a_idx, s_idx = r // G, r % G
    c = np.arange(RF_g)
    cs, ca = c // FN_, (c % FN_) % A
    sel = ((cs[None, :] == s_idx[:, None]) &
           (ca[None, :] == a_idx[:, None])).astype(np.float32) / T
    pool_all = (jnp.asarray(sel)[None] * fmask_g[:, None, :]).reshape(
        n_groups * rows_g, RF_g)

    # ---- packed weight slabs (DMA'd once, resident across the grid) ----
    w_mat, mat_off = pack_mats(params)
    w_vec, vec_off = pack_vecs(params)

    kernel = make_kernel(mat_off, vec_off, NLAYER, RF_g)

    out = pl.pallas_call(
        kernel,
        out_shape=jax.ShapeDtypeStruct((n_groups * rows_g, SLAB_LANES), jnp.float32),
        grid=(n_groups,),
        in_specs=[
            pl.BlockSpec((2 * RF_g, MODEL_DIM), lambda g: (g, 0)),   # fut (pos;x)
            pl.BlockSpec((RP_g, MODEL_DIM), lambda g: (g, 0)),       # ctx
            pl.BlockSpec((rows_g, RF_g), lambda g: (g, 0)),          # pool (mask folded)
            pl.BlockSpec((RF_g, RF_g), lambda g: (g, 0)),            # self-attn bias
            pl.BlockSpec((RF_g, RP_g), lambda g: (g, 0)),            # cross-attn bias
            pl.BlockSpec(w_mat.shape, lambda g: (0, 0)),             # resident bf16 matrices
            pl.BlockSpec(w_vec.shape, lambda g: (0, 0)),             # resident f32 vectors
        ],
        out_specs=pl.BlockSpec((rows_g, SLAB_LANES), lambda g: (g, 0)),
        compiler_params=pltpu.CompilerParams(dimension_semantics=("parallel",)),
    )(fut_all, pre_all, pool_all, sb_all, mb_all, w_mat, w_vec)

    # group-local rows are (a*G + s); reassemble to reference order a*bs + b
    out = out.reshape(n_groups, A, G, SLAB_LANES)
    out = jnp.transpose(out, (1, 0, 2, 3)).reshape(A, bs_pad, SLAB_LANES)
    q_z_params = out[:, :bs, :NUM_DIST_PARAMS].reshape(A * bs, NUM_DIST_PARAMS)

    # Normal(params).rsample() (glue; randomness outside the kernel)
    mu, logvar = q_z_params[:, :NZ], q_z_params[:, NZ:]
    sigma = jnp.exp(0.5 * logvar)
    if sample_key is None:
        sample_key = jax.random.PRNGKey(1)
    eps = jax.random.normal(sample_key, mu.shape, dtype=jnp.float32)
    q_z_samp = (mu + sigma * eps).reshape(A, bs, NZ)
    return q_z_params, q_z_samp


# --------------------------------- main ---------------------------------------
if __name__ == "__main__":
    key = jax.random.PRNGKey(0)
    k1, k2, k3, kw = jax.random.split(key, 4)

    PN = PRE_LEN * AGENT_NUM
    fut_mask = jnp.ones((BS, AGENT_NUM, FUT_LEN), jnp.float32).at[1, 3, 6:].set(0.0)
    pre_mask = jnp.ones((BS, AGENT_NUM, PRE_LEN), jnp.float32).at[0, 2, :3].set(0.0)

    data = {
        'fut_motion': jax.random.normal(k1, (FUT_LEN, AGENT_NUM, BS, FORECAST_DIM), jnp.float32),
        'fut_vel':    jax.random.normal(k2, (FUT_LEN, AGENT_NUM, BS, FORECAST_DIM), jnp.float32),
        'fut_mask':   fut_mask,
        'pre_mask':   pre_mask,
        'context_enc': jax.random.normal(k3, (PN, BS, MODEL_DIM), jnp.float32),
    }
    params = init_params(kw)

    q_z_params, q_z_samp = future_encoder_forward(data, params)
    q_z_params = jax.block_until_ready(q_z_params)
    q_z_samp = jax.block_until_ready(q_z_samp)

    assert q_z_params.shape == (AGENT_NUM * BS, NUM_DIST_PARAMS)
    assert q_z_samp.shape == (AGENT_NUM, BS, NZ)
    assert not bool(jnp.any(jnp.isnan(q_z_params)))
    assert not bool(jnp.any(jnp.isnan(q_z_samp)))
    print("KERNEL_OK")
</pallas_src>

<mosaic_0001>
module attributes {stable_mosaic.version = 11 : i64} {
  func.func @kernel(%arg0: i32, %arg1: memref<128x32xf32, #tpu.memory_space<vmem>>, %arg2: memref<64x32xf32, #tpu.memory_space<vmem>>, %arg3: memref<8x64xf32, #tpu.memory_space<vmem>>, %arg4: memref<64x64xf32, #tpu.memory_space<vmem>>, %arg5: memref<64x64xf32, #tpu.memory_space<vmem>>, %arg6: memref<320x128xbf16, #tpu.memory_space<vmem>>, %arg7: memref<16x128xf32, #tpu.memory_space<vmem>>, %arg8: memref<8x128xf32, #tpu.memory_space<vmem>>) attributes {dimension_semantics = [#tpu.dimension_semantics<parallel>], iteration_bounds = array<i64: 1>, scalar_prefetch = 0 : i64, scratch_operands = 0 : i64, tpu.core_type = #tpu.core_type<tc>, window_params = [{transform_indices = @transform_0, window_bounds = array<i64: 128, 32>}, {transform_indices = @transform_1, window_bounds = array<i64: 64, 32>}, {transform_indices = @transform_2, window_bounds = array<i64: 8, 64>}, {transform_indices = @transform_3, window_bounds = array<i64: 64, 64>}, {transform_indices = @transform_4, window_bounds = array<i64: 64, 64>}, {pipeline_mode = #tpu.pipeline_mode<synchronous>, transform_indices = @transform_5, window_bounds = array<i64: 320, 128>}, {pipeline_mode = #tpu.pipeline_mode<synchronous>, transform_indices = @transform_6, window_bounds = array<i64: 16, 128>}, {transform_indices = @transform_7, window_bounds = array<i64: 8, 128>}]} {
    %c0 = arith.constant 0 : index
    %c0_0 = arith.constant 0 : index
    %0 = vector.load %arg1[%c0, %c0_0] : memref<128x32xf32, #tpu.memory_space<vmem>>, vector<64x32xf32>
    %c64 = arith.constant 64 : index
    %c0_1 = arith.constant 0 : index
    %1 = vector.load %arg1[%c64, %c0_1] : memref<128x32xf32, #tpu.memory_space<vmem>>, vector<64x32xf32>
    %c0_2 = arith.constant 0 : index
    %c0_3 = arith.constant 0 : index
    %2 = vector.load %arg2[%c0_2, %c0_3] : memref<64x32xf32, #tpu.memory_space<vmem>>, vector<64x32xf32>
    %c0_4 = arith.constant 0 : index
    %c0_5 = arith.constant 0 : index
    %3 = vector.load %arg4[%c0_4, %c0_5] : memref<64x64xf32, #tpu.memory_space<vmem>>, vector<64x64xf32>
    %c0_6 = arith.constant 0 : index
    %c0_7 = arith.constant 0 : index
    %4 = vector.load %arg5[%c0_6, %c0_7] : memref<64x64xf32, #tpu.memory_space<vmem>>, vector<64x64xf32>
    %c0_8 = arith.constant 0 : index
    %c0_9 = arith.constant 0 : index
    %5 = vector.load %arg6[%c0_8, %c0_9] : memref<320x128xbf16, #tpu.memory_space<vmem>>, vector<32x32xbf16>
    %6 = arith.extf %5 : vector<32x32xbf16> to vector<32x32xf32>
    %cst = arith.constant dense<0.000000e+00> : vector<64x32xf32>
    %7 = tpu.matmul %1, %6, %cst {dimension_numbers = #tpu.dot_dimension_numbers<[1], [0], [0], [1], [0, 0, 1, 1], [], []>} : vector<64x32xf32>, vector<32x32xf32>, vector<64x32xf32> -> vector<64x32xf32>
    %c0_10 = arith.constant 0 : index
    %c0_11 = arith.constant 0 : index
    %8 = vector.load %arg7[%c0_10, %c0_11] : memref<16x128xf32, #tpu.memory_space<vmem>>, vector<1x32xf32>
    %9 = vector.broadcast %8 : vector<1x32xf32> to vector<64x32xf32>
    %10 = arith.addf %7, %9 : vector<64x32xf32>
    %11 = arith.addf %10, %0 : vector<64x32xf32>
    %c64_12 = arith.constant 64 : index
    %c0_13 = arith.constant 0 : index
    %12 = vector.load %arg6[%c64_12, %c0_13] : memref<320x128xbf16, #tpu.memory_space<vmem>>, vector<32x96xbf16>
    %13 = arith.extf %12 : vector<32x96xbf16> to vector<32x96xf32>
    %cst_14 = arith.constant dense<0.000000e+00> : vector<64x96xf32>
    %14 = tpu.matmul %11, %13, %cst_14 {dimension_numbers = #tpu.dot_dimension_numbers<[1], [0], [0], [1], [0, 0, 1, 1], [], []>} : vector<64x32xf32>, vector<32x96xf32>, vector<64x96xf32> -> vector<64x96xf32>
    %c2 = arith.constant 2 : index
    %c0_15 = arith.constant 0 : index
    %15 = vector.load %arg7[%c2, %c0_15] : memref<16x128xf32, #tpu.memory_space<vmem>>, vector<1x96xf32>
    %16 = vector.broadcast %15 : vector<1x96xf32> to vector<64x96xf32>
    %17 = arith.addf %14, %16 : vector<64x96xf32>
    %18 = vector.extract_strided_slice %17 {offsets = [0, 0], sizes = [64, 32], strides = [1, 1]} : vector<64x96xf32> to vector<64x32xf32>
    %19 = vector.extract_strided_slice %17 {offsets = [0, 32], sizes = [64, 32], strides = [1, 1]} : vector<64x96xf32> to vector<64x32xf32>
    %20 = vector.extract_strided_slice %17 {offsets = [0, 64], sizes = [64, 32], strides = [1, 1]} : vector<64x96xf32> to vector<64x32xf32>
    %c96 = arith.constant 96 : index
    %c0_16 = arith.constant 0 : index
    %21 = vector.load %arg6[%c96, %c0_16] : memref<320x128xbf16, #tpu.memory_space<vmem>>, vector<32x32xbf16>
    %22 = arith.extf %21 : vector<32x32xbf16> to vector<32x32xf32>
    %c3 = arith.constant 3 : index
    %c0_17 = arith.constant 0 : index
    %23 = vector.load %arg7[%c3, %c0_17] : memref<16x128xf32, #tpu.memory_space<vmem>>, vector<1x32xf32>
    %cst_18 = arith.constant 0.353553385 : f32
    %24 = vector.broadcast %cst_18 : f32 to vector<64x32xf32>
    %25 = arith.mulf %18, %24 : vector<64x32xf32>
    %26 = vector.extract_strided_slice %25 {offsets = [0, 0], sizes = [64, 8], strides = [1, 1]} : vector<64x32xf32> to vector<64x8xf32>
    %27 = vector.extract_strided_slice %19 {offsets = [0, 0], sizes = [64, 8], strides = [1, 1]} : vector<64x32xf32> to vector<64x8xf32>
    %cst_19 = arith.constant dense<0.000000e+00> : vector<64x64xf32>
    %28 = tpu.matmul %26, %27, %cst_19 {dimension_numbers = #tpu.dot_dimension_numbers<[1], [1], [0], [0], [0, 0, 1, 0], [], []>} : vector<64x8xf32>, vector<64x8xf32>, vector<64x64xf32> -> vector<64x64xf32>
    %29 = arith.addf %28, %3 : vector<64x64xf32>
    %cst_20 = arith.constant dense<0xFF800000> : vector<64xf32>
    %30 = vector.multi_reduction <maximumf>, %29, %cst_20 [1] : vector<64x64xf32> to vector<64xf32>
    %31 = vector.shape_cast %30 : vector<64xf32> to vector<64x1xf32>
    %32 = vector.broadcast %31 : vector<64x1xf32> to vector<64x64xf32>
    %33 = arith.subf %29, %32 : vector<64x64xf32>
    %34 = math.exp %33 : vector<64x64xf32>
    %cst_21 = arith.constant dense<0.000000e+00> : vector<64xf32>
    %35 = vector.multi_reduction <add>, %34, %cst_21 [1] : vector<64x64xf32> to vector<64xf32>
    %36 = vector.shape_cast %35 : vector<64xf32> to vector<64x1xf32>
    %37 = tpu.reciprocal %36 {approx = true} : vector<64x1xf32> -> vector<64x1xf32>
    %38 = vector.broadcast %37 : vector<64x1xf32> to vector<64x64xf32>
    %39 = arith.mulf %34, %38 : vector<64x64xf32>
    %40 = vector.extract_strided_slice %20 {offsets = [0, 0], sizes = [64, 8], strides = [1, 1]} : vector<64x32xf32> to vector<64x8xf32>
    %cst_22 = arith.constant dense<0.000000e+00> : vector<64x8xf32>
    %41 = tpu.matmul %39, %40, %cst_22 {dimension_numbers = #tpu.dot_dimension_numbers<[1], [0], [0], [1], [0, 0, 1, 1], [], []>} : vector<64x64xf32>, vector<64x8xf32>, vector<64x8xf32> -> vector<64x8xf32>
    %42 = vector.extract_strided_slice %25 {offsets = [0, 8], sizes = [64, 8], strides = [1, 1]} : vector<64x32xf32> to vector<64x8xf32>
    %43 = vector.extract_strided_slice %19 {offsets = [0, 8], sizes = [64, 8], strides = [1, 1]} : vector<64x32xf32> to vector<64x8xf32>
    %cst_23 = arith.constant dense<0.000000e+00> : vector<64x64xf32>
    %44 = tpu.matmul %42, %43, %cst_23 {dimension_numbers = #tpu.dot_dimension_numbers<[1], [1], [0], [0], [0, 0, 1, 0], [], []>} : vector<64x8xf32>, vector<64x8xf32>, vector<64x64xf32> -> vector<64x64xf32>
    %45 = arith.addf %44, %3 : vector<64x64xf32>
    %cst_24 = arith.constant dense<0xFF800000> : vector<64xf32>
    %46 = vector.multi_reduction <maximumf>, %45, %cst_24 [1] : vector<64x64xf32> to vector<64xf32>
    %47 = vector.shape_cast %46 : vector<64xf32> to vector<64x1xf32>
    %48 = vector.broadcast %47 : vector<64x1xf32> to vector<64x64xf32>
    %49 = arith.subf %45, %48 : vector<64x64xf32>
    %50 = math.exp %49 : vector<64x64xf32>
    %cst_25 = arith.constant dense<0.000000e+00> : vector<64xf32>
    %51 = vector.multi_reduction <add>, %50, %cst_25 [1] : vector<64x64xf32> to vector<64xf32>
    %52 = vector.shape_cast %51 : vector<64xf32> to vector<64x1xf32>
    %53 = tpu.reciprocal %52 {approx = true} : vector<64x1xf32> -> vector<64x1xf32>
    %54 = vector.broadcast %53 : vector<64x1xf32> to vector<64x64xf32>
    %55 = arith.mulf %50, %54 : vector<64x64xf32>
    %56 = vector.extract_strided_slice %20 {offsets = [0, 8], sizes = [64, 8], strides = [1, 1]} : vector<64x32xf32> to vector<64x8xf32>
    %cst_26 = arith.constant dense<0.000000e+00> : vector<64x8xf32>
    %57 = tpu.matmul %55, %56, %cst_26 {dimension_numbers = #tpu.dot_dimension_numbers<[1], [0], [0], [1], [0, 0, 1, 1], [], []>} : vector<64x64xf32>, vector<64x8xf32>, vector<64x8xf32> -> vector<64x8xf32>
    %58 = vector.extract_strided_slice %25 {offsets = [0, 16], sizes = [64, 8], strides = [1, 1]} : vector<64x32xf32> to vector<64x8xf32>
    %59 = vector.extract_strided_slice %19 {offsets = [0, 16], sizes = [64, 8], strides = [1, 1]} : vector<64x32xf32> to vector<64x8xf32>
    %cst_27 = arith.constant dense<0.000000e+00> : vector<64x64xf32>
    %60 = tpu.matmul %58, %59, %cst_27 {dimension_numbers = #tpu.dot_dimension_numbers<[1], [1], [0], [0], [0, 0, 1, 0], [], []>} : vector<64x8xf32>, vector<64x8xf32>, vector<64x64xf32> -> vector<64x64xf32>
    %61 = arith.addf %60, %3 : vector<64x64xf32>
    %cst_28 = arith.constant dense<0xFF800000> : vector<64xf32>
    %62 = vector.multi_reduction <maximumf>, %61, %cst_28 [1] : vector<64x64xf32> to vector<64xf32>
    %63 = vector.shape_cast %62 : vector<64xf32> to vector<64x1xf32>
    %64 = vector.broadcast %63 : vector<64x1xf32> to vector<64x64xf32>
    %65 = arith.subf %61, %64 : vector<64x64xf32>
    %66 = math.exp %65 : vector<64x64xf32>
    %cst_29 = arith.constant dense<0.000000e+00> : vector<64xf32>
    %67 = vector.multi_reduction <add>, %66, %cst_29 [1] : vector<64x64xf32> to vector<64xf32>
    %68 = vector.shape_cast %67 : vector<64xf32> to vector<64x1xf32>
    %69 = tpu.reciprocal %68 {approx = true} : vector<64x1xf32> -> vector<64x1xf32>
    %70 = vector.broadcast %69 : vector<64x1xf32> to vector<64x64xf32>
    %71 = arith.mulf %66, %70 : vector<64x64xf32>
    %72 = vector.extract_strided_slice %20 {offsets = [0, 16], sizes = [64, 8], strides = [1, 1]} : vector<64x32xf32> to vector<64x8xf32>
    %cst_30 = arith.constant dense<0.000000e+00> : vector<64x8xf32>
    %73 = tpu.matmul %71, %72, %cst_30 {dimension_numbers = #tpu.dot_dimension_numbers<[1], [0], [0], [1], [0, 0, 1, 1], [], []>} : vector<64x64xf32>, vector<64x8xf32>, vector<64x8xf32> -> vector<64x8xf32>
    %74 = vector.extract_strided_slice %25 {offsets = [0, 24], sizes = [64, 8], strides = [1, 1]} : vector<64x32xf32> to vector<64x8xf32>
    %75 = vector.extract_strided_slice %19 {offsets = [0, 24], sizes = [64, 8], strides = [1, 1]} : vector<64x32xf32> to vector<64x8xf32>
    %cst_31 = arith.constant dense<0.000000e+00> : vector<64x64xf32>
    %76 = tpu.matmul %74, %75, %cst_31 {dimension_numbers = #tpu.dot_dimension_numbers<[1], [1], [0], [0], [0, 0, 1, 0], [], []>} : vector<64x8xf32>, vector<64x8xf32>, vector<64x64xf32> -> vector<64x64xf32>
    %77 = arith.addf %76, %3 : vector<64x64xf32>
    %cst_32 = arith.constant dense<0xFF800000> : vector<64xf32>
    %78 = vector.multi_reduction <maximumf>, %77, %cst_32 [1] : vector<64x64xf32> to vector<64xf32>
    %79 = vector.shape_cast %78 : vector<64xf32> to vector<64x1xf32>
    %80 = vector.broadcast %79 : vector<64x1xf32> to vector<64x64xf32>
    %81 = arith.subf %77, %80 : vector<64x64xf32>
    %82 = math.exp %81 : vector<64x64xf32>
    %cst_33 = arith.constant dense<0.000000e+00> : vector<64xf32>
    %83 = vector.multi_reduction <add>, %82, %cst_33 [1] : vector<64x64xf32> to vector<64xf32>
    %84 = vector.shape_cast %83 : vector<64xf32> to vector<64x1xf32>
    %85 = tpu.reciprocal %84 {approx = true} : vector<64x1xf32> -> vector<64x1xf32>
    %86 = vector.broadcast %85 : vector<64x1xf32> to vector<64x64xf32>
    %87 = arith.mulf %82, %86 : vector<64x64xf32>
    %88 = vector.extract_strided_slice %20 {offsets = [0, 24], sizes = [64, 8], strides = [1, 1]} : vector<64x32xf32> to vector<64x8xf32>
    %cst_34 = arith.constant dense<0.000000e+00> : vector<64x8xf32>
    %89 = tpu.matmul %87, %88, %cst_34 {dimension_numbers = #tpu.dot_dimension_numbers<[1], [0], [0], [1], [0, 0, 1, 1], [], []>} : vector<64x64xf32>, vector<64x8xf32>, vector<64x8xf32> -> vector<64x8xf32>
    %90 = tpu.concatenate %41, %57, %73, %89 in 1 : vector<64x8xf32>, vector<64x8xf32>, vector<64x8xf32>, vector<64x8xf32> -> vector<64x32xf32>
    %cst_35 = arith.constant dense<0.000000e+00> : vector<64x32xf32>
    %91 = tpu.matmul %90, %22, %cst_35 {dimension_numbers = #tpu.dot_dimension_numbers<[1], [0], [0], [1], [0, 0, 1, 1], [], []>} : vector<64x32xf32>, vector<32x32xf32>, vector<64x32xf32> -> vector<64x32xf32>
    %92 = vector.broadcast %23 : vector<1x32xf32> to vector<64x32xf32>
    %93 = arith.addf %91, %92 : vector<64x32xf32>
    %94 = arith.addf %11, %93 : vector<64x32xf32>
    %c7 = arith.constant 7 : index
    %c0_36 = arith.constant 0 : index
    %95 = vector.load %arg7[%c7, %c0_36] : memref<16x128xf32, #tpu.memory_space<vmem>>, vector<1x32xf32>
    %c8 = arith.constant 8 : index
    %c0_37 = arith.constant 0 : index
    %96 = vector.load %arg7[%c8, %c0_37] : memref<16x128xf32, #tpu.memory_space<vmem>>, vector<1x32xf32>
    %cst_38 = arith.constant dense<0.000000e+00> : vector<64xf32>
    %97 = vector.multi_reduction <add>, %94, %cst_38 [1] : vector<64x32xf32> to vector<64xf32>
    %98 = vector.shape_cast %97 : vector<64xf32> to vector<64x1xf32>
    %cst_39 = arith.constant 3.200000e+01 : f32
    %99 = vector.broadcast %cst_39 : f32 to vector<64x1xf32>
    %100 = arith.divf %98, %99 : vector<64x1xf32>
    %101 = vector.broadcast %100 : vector<64x1xf32> to vector<64x32xf32>
    %102 = arith.subf %94, %101 : vector<64x32xf32>
    %103 = arith.mulf %102, %102 : vector<64x32xf32>
    %cst_40 = arith.constant dense<0.000000e+00> : vector<64xf32>
    %104 = vector.multi_reduction <add>, %103, %cst_40 [1] : vector<64x32xf32> to vector<64xf32>
    %105 = vector.shape_cast %104 : vector<64xf32> to vector<64x1xf32>
    %cst_41 = arith.constant 3.200000e+01 : f32
    %106 = vector.broadcast %cst_41 : f32 to vector<64x1xf32>
    %107 = arith.divf %105, %106 : vector<64x1xf32>
    %108 = vector.broadcast %100 : vector<64x1xf32> to vector<64x32xf32>
    %109 = arith.subf %94, %108 : vector<64x32xf32>
    %cst_42 = arith.constant 9.99999974E-6 : f32
    %110 = vector.broadcast %cst_42 : f32 to vector<64x1xf32>
    %111 = arith.addf %107, %110 : vector<64x1xf32>
    %112 = math.rsqrt %111 : vector<64x1xf32>
    %113 = vector.broadcast %112 : vector<64x1xf32> to vector<64x32xf32>
    %114 = arith.mulf %109, %113 : vector<64x32xf32>
    %115 = vector.broadcast %95 : vector<1x32xf32> to vector<64x32xf32>
    %116 = arith.mulf %114, %115 : vector<64x32xf32>
    %117 = vector.broadcast %96 : vector<1x32xf32> to vector<64x32xf32>
    %118 = arith.addf %116, %117 : vector<64x32xf32>
    %c128 = arith.constant 128 : index
    %c0_43 = arith.constant 0 : index
    %119 = vector.load %arg6[%c128, %c0_43] : memref<320x128xbf16, #tpu.memory_space<vmem>>, vector<32x32xbf16>
    %120 = arith.extf %119 : vector<32x32xbf16> to vector<32x32xf32>
    %cst_44 = arith.constant dense<0.000000e+00> : vector<64x32xf32>
    %121 = tpu.matmul %118, %120, %cst_44 {dimension_numbers = #tpu.dot_dimension_numbers<[1], [0], [0], [1], [0, 0, 1, 1], [], []>} : vector<64x32xf32>, vector<32x32xf32>, vector<64x32xf32> -> vector<64x32xf32>
    %c4 = arith.constant 4 : index
    %c0_45 = arith.constant 0 : index
    %122 = vector.load %arg7[%c4, %c0_45] : memref<16x128xf32, #tpu.memory_space<vmem>>, vector<1x32xf32>
    %123 = vector.broadcast %122 : vector<1x32xf32> to vector<64x32xf32>
    %124 = arith.addf %121, %123 : vector<64x32xf32>
    %c160 = arith.constant 160 : index
    %c0_46 = arith.constant 0 : index
    %125 = vector.load %arg6[%c160, %c0_46] : memref<320x128xbf16, #tpu.memory_space<vmem>>, vector<32x64xbf16>
    %126 = arith.extf %125 : vector<32x64xbf16> to vector<32x64xf32>
    %cst_47 = arith.constant dense<0.000000e+00> : vector<64x64xf32>
    %127 = tpu.matmul %2, %126, %cst_47 {dimension_numbers = #tpu.dot_dimension_numbers<[1], [0], [0], [1], [0, 0, 1, 1], [], []>} : vector<64x32xf32>, vector<32x64xf32>, vector<64x64xf32> -> vector<64x64xf32>
    %c5 = arith.constant 5 : index
    %c0_48 = arith.constant 0 : index
    %128 = vector.load %arg7[%c5, %c0_48] : memref<16x128xf32, #tpu.memory_space<vmem>>, vector<1x64xf32>
    %129 = vector.broadcast %128 : vector<1x64xf32> to vector<64x64xf32>
    %130 = arith.addf %127, %129 : vector<64x64xf32>
    %131 = vector.extract_strided_slice %130 {offsets = [0, 0], sizes = [64, 32], strides = [1, 1]} : vector<64x64xf32> to vector<64x32xf32>
    %132 = vector.extract_strided_slice %130 {offsets = [0, 32], sizes = [64, 32], strides = [1, 1]} : vector<64x64xf32> to vector<64x32xf32>
    %c192 = arith.constant 192 : index
    %c0_49 = arith.constant 0 : index
    %133 = vector.load %arg6[%c192, %c0_49] : memref<320x128xbf16, #tpu.memory_space<vmem>>, vector<32x32xbf16>
    %134 = arith.extf %133 : vector<32x32xbf16> to vector<32x32xf32>
    %c6 = arith.constant 6 : index
    %c0_50 = arith.constant 0 : index
    %135 = vector.load %arg7[%c6, %c0_50] : memref<16x128xf32, #tpu.memory_space<vmem>>, vector<1x32xf32>
    %cst_51 = arith.constant 0.353553385 : f32
    %136 = vector.broadcast %cst_51 : f32 to vector<64x32xf32>
    %137 = arith.mulf %124, %136 : vector<64x32xf32>
    %138 = vector.extract_strided_slice %137 {offsets = [0, 0], sizes = [64, 8], strides = [1, 1]} : vector<64x32xf32> to vector<64x8xf32>
    %139 = vector.extract_strided_slice %131 {offsets = [0, 0], sizes = [64, 8], strides = [1, 1]} : vector<64x32xf32> to vector<64x8xf32>
    %cst_52 = arith.constant dense<0.000000e+00> : vector<64x64xf32>
    %140 = tpu.matmul %138, %139, %cst_52 {dimension_numbers = #tpu.dot_dimension_numbers<[1], [1], [0], [0], [0, 0, 1, 0], [], []>} : vector<64x8xf32>, vector<64x8xf32>, vector<64x64xf32> -> vector<64x64xf32>
    %141 = arith.addf %140, %4 : vector<64x64xf32>
    %cst_53 = arith.constant dense<0xFF800000> : vector<64xf32>
    %142 = vector.multi_reduction <maximumf>, %141, %cst_53 [1] : vector<64x64xf32> to vector<64xf32>
    %143 = vector.shape_cast %142 : vector<64xf32> to vector<64x1xf32>
    %144 = vector.broadcast %143 : vector<64x1xf32> to vector<64x64xf32>
    %145 = arith.subf %141, %144 : vector<64x64xf32>
    %146 = math.exp %145 : vector<64x64xf32>
    %cst_54 = arith.constant dense<0.000000e+00> : vector<64xf32>
    %147 = vector.multi_reduction <add>, %146, %cst_54 [1] : vector<64x64xf32> to vector<64xf32>
    %148 = vector.shape_cast %147 : vector<64xf32> to vector<64x1xf32>
    %149 = tpu.reciprocal %148 {approx = true} : vector<64x1xf32> -> vector<64x1xf32>
    %150 = vector.broadcast %149 : vector<64x1xf32> to vector<64x64xf32>
    %151 = arith.mulf %146, %150 : vector<64x64xf32>
    %152 = vector.extract_strided_slice %132 {offsets = [0, 0], sizes = [64, 8], strides = [1, 1]} : vector<64x32xf32> to vector<64x8xf32>
    %cst_55 = arith.constant dense<0.000000e+00> : vector<64x8xf32>
    %153 = tpu.matmul %151, %152, %cst_55 {dimension_numbers = #tpu.dot_dimension_numbers<[1], [0], [0], [1], [0, 0, 1, 1], [], []>} : vector<64x64xf32>, vector<64x8xf32>, vector<64x8xf32> -> vector<64x8xf32>
    %154 = vector.extract_strided_slice %137 {offsets = [0, 8], sizes = [64, 8], strides = [1, 1]} : vector<64x32xf32> to vector<64x8xf32>
    %155 = vector.extract_strided_slice %131 {offsets = [0, 8], sizes = [64, 8], strides = [1, 1]} : vector<64x32xf32> to vector<64x8xf32>
    %cst_56 = arith.constant dense<0.000000e+00> : vector<64x64xf32>
    %156 = tpu.matmul %154, %155, %cst_56 {dimension_numbers = #tpu.dot_dimension_numbers<[1], [1], [0], [0], [0, 0, 1, 0], [], []>} : vector<64x8xf32>, vector<64x8xf32>, vector<64x64xf32> -> vector<64x64xf32>
    %157 = arith.addf %156, %4 : vector<64x64xf32>
    %cst_57 = arith.constant dense<0xFF800000> : vector<64xf32>
    %158 = vector.multi_reduction <maximumf>, %157, %cst_57 [1] : vector<64x64xf32> to vector<64xf32>
    %159 = vector.shape_cast %158 : vector<64xf32> to vector<64x1xf32>
    %160 = vector.broadcast %159 : vector<64x1xf32> to vector<64x64xf32>
    %161 = arith.subf %157, %160 : vector<64x64xf32>
    %162 = math.exp %161 : vector<64x64xf32>
    %cst_58 = arith.constant dense<0.000000e+00> : vector<64xf32>
    %163 = vector.multi_reduction <add>, %162, %cst_58 [1] : vector<64x64xf32> to vector<64xf32>
    %164 = vector.shape_cast %163 : vector<64xf32> to vector<64x1xf32>
    %165 = tpu.reciprocal %164 {approx = true} : vector<64x1xf32> -> vector<64x1xf32>
    %166 = vector.broadcast %165 : vector<64x1xf32> to vector<64x64xf32>
    %167 = arith.mulf %162, %166 : vector<64x64xf32>
    %168 = vector.extract_strided_slice %132 {offsets = [0, 8], sizes = [64, 8], strides = [1, 1]} : vector<64x32xf32> to vector<64x8xf32>
    %cst_59 = arith.constant dense<0.000000e+00> : vector<64x8xf32>
    %169 = tpu.matmul %167, %168, %cst_59 {dimension_numbers = #tpu.dot_dimension_numbers<[1], [0], [0], [1], [0, 0, 1, 1], [], []>} : vector<64x64xf32>, vector<64x8xf32>, vector<64x8xf32> -> vector<64x8xf32>
    %170 = vector.extract_strided_slice %137 {offsets = [0, 16], sizes = [64, 8], strides = [1, 1]} : vector<64x32xf32> to vector<64x8xf32>
    %171 = vector.extract_strided_slice %131 {offsets = [0, 16], sizes = [64, 8], strides = [1, 1]} : vector<64x32xf32> to vector<64x8xf32>
    %cst_60 = arith.constant dense<0.000000e+00> : vector<64x64xf32>
    %172 = tpu.matmul %170, %171, %cst_60 {dimension_numbers = #tpu.dot_dimension_numbers<[1], [1], [0], [0], [0, 0, 1, 0], [], []>} : vector<64x8xf32>, vector<64x8xf32>, vector<64x64xf32> -> vector<64x64xf32>
    %173 = arith.addf %172, %4 : vector<64x64xf32>
    %cst_61 = arith.constant dense<0xFF800000> : vector<64xf32>
    %174 = vector.multi_reduction <maximumf>, %173, %cst_61 [1] : vector<64x64xf32> to vector<64xf32>
    %175 = vector.shape_cast %174 : vector<64xf32> to vector<64x1xf32>
    %176 = vector.broadcast %175 : vector<64x1xf32> to vector<64x64xf32>
    %177 = arith.subf %173, %176 : vector<64x64xf32>
    %178 = math.exp %177 : vector<64x64xf32>
    %cst_62 = arith.constant dense<0.000000e+00> : vector<64xf32>
    %179 = vector.multi_reduction <add>, %178, %cst_62 [1] : vector<64x64xf32> to vector<64xf32>
    %180 = vector.shape_cast %179 : vector<64xf32> to vector<64x1xf32>
    %181 = tpu.reciprocal %180 {approx = true} : vector<64x1xf32> -> vector<64x1xf32>
    %182 = vector.broadcast %181 : vector<64x1xf32> to vector<64x64xf32>
    %183 = arith.mulf %178, %182 : vector<64x64xf32>
    %184 = vector.extract_strided_slice %132 {offsets = [0, 16], sizes = [64, 8], strides = [1, 1]} : vector<64x32xf32> to vector<64x8xf32>
    %cst_63 = arith.constant dense<0.000000e+00> : vector<64x8xf32>
    %185 = tpu.matmul %183, %184, %cst_63 {dimension_numbers = #tpu.dot_dimension_numbers<[1], [0], [0], [1], [0, 0, 1, 1], [], []>} : vector<64x64xf32>, vector<64x8xf32>, vector<64x8xf32> -> vector<64x8xf32>
    %186 = vector.extract_strided_slice %137 {offsets = [0, 24], sizes = [64, 8], strides = [1, 1]} : vector<64x32xf32> to vector<64x8xf32>
    %187 = vector.extract_strided_slice %131 {offsets = [0, 24], sizes = [64, 8], strides = [1, 1]} : vector<64x32xf32> to vector<64x8xf32>
    %cst_64 = arith.constant dense<0.000000e+00> : vector<64x64xf32>
    %188 = tpu.matmul %186, %187, %cst_64 {dimension_numbers = #tpu.dot_dimension_numbers<[1], [1], [0], [0], [0, 0, 1, 0], [], []>} : vector<64x8xf32>, vector<64x8xf32>, vector<64x64xf32> -> vector<64x64xf32>
    %189 = arith.addf %188, %4 : vector<64x64xf32>
    %cst_65 = arith.constant dense<0xFF800000> : vector<64xf32>
    %190 = vector.multi_reduction <maximumf>, %189, %cst_65 [1] : vector<64x64xf32> to vector<64xf32>
    %191 = vector.shape_cast %190 : vector<64xf32> to vector<64x1xf32>
    %192 = vector.broadcast %191 : vector<64x1xf32> to vector<64x64xf32>
    %193 = arith.subf %189, %192 : vector<64x64xf32>
    %194 = math.exp %193 : vector<64x64xf32>
    %cst_66 = arith.constant dense<0.000000e+00> : vector<64xf32>
    %195 = vector.multi_reduction <add>, %194, %cst_66 [1] : vector<64x64xf32> to vector<64xf32>
    %196 = vector.shape_cast %195 : vector<64xf32> to vector<64x1xf32>
    %197 = tpu.reciprocal %196 {approx = true} : vector<64x1xf32> -> vector<64x1xf32>
    %198 = vector.broadcast %197 : vector<64x1xf32> to vector<64x64xf32>
    %199 = arith.mulf %194, %198 : vector<64x64xf32>
    %200 = vector.extract_strided_slice %132 {offsets = [0, 24], sizes = [64, 8], strides = [1, 1]} : vector<64x32xf32> to vector<64x8xf32>
    %cst_67 = arith.constant dense<0.000000e+00> : vector<64x8xf32>
    %201 = tpu.matmul %199, %200, %cst_67 {dimension_numbers = #tpu.dot_dimension_numbers<[1], [0], [0], [1], [0, 0, 1, 1], [], []>} : vector<64x64xf32>, vector<64x8xf32>, vector<64x8xf32> -> vector<64x8xf32>
    %202 = tpu.concatenate %153, %169, %185, %201 in 1 : vector<64x8xf32>, vector<64x8xf32>, vector<64x8xf32>, vector<64x8xf32> -> vector<64x32xf32>
    %cst_68 = arith.constant dense<0.000000e+00> : vector<64x32xf32>
    %203 = tpu.matmul %202, %134, %cst_68 {dimension_numbers = #tpu.dot_dimension_numbers<[1], [0], [0], [1], [0, 0, 1, 1], [], []>} : vector<64x32xf32>, vector<32x32xf32>, vector<64x32xf32> -> vector<64x32xf32>
    %204 = vector.broadcast %135 : vector<1x32xf32> to vector<64x32xf32>
    %205 = arith.addf %203, %204 : vector<64x32xf32>
    %206 = arith.addf %118, %205 : vector<64x32xf32>
    %c9 = arith.constant 9 : index
    %c0_69 = arith.constant 0 : index
    %207 = vector.load %arg7[%c9, %c0_69] : memref<16x128xf32, #tpu.memory_space<vmem>>, vector<1x32xf32>
    %c10 = arith.constant 10 : index
    %c0_70 = arith.constant 0 : index
    %208 = vector.load %arg7[%c10, %c0_70] : memref<16x128xf32, #tpu.memory_space<vmem>>, vector<1x32xf32>
    %cst_71 = arith.constant dense<0.000000e+00> : vector<64xf32>
    %209 = vector.multi_reduction <add>, %206, %cst_71 [1] : vector<64x32xf32> to vector<64xf32>
    %210 = vector.shape_cast %209 : vector<64xf32> to vector<64x1xf32>
    %cst_72 = arith.constant 3.200000e+01 : f32
    %211 = vector.broadcast %cst_72 : f32 to vector<64x1xf32>
    %212 = arith.divf %210, %211 : vector<64x1xf32>
    %213 = vector.broadcast %212 : vector<64x1xf32> to vector<64x32xf32>
    %214 = arith.subf %206, %213 : vector<64x32xf32>
    %215 = arith.mulf %214, %214 : vector<64x32xf32>
    %cst_73 = arith.constant dense<0.000000e+00> : vector<64xf32>
    %216 = vector.multi_reduction <add>, %215, %cst_73 [1] : vector<64x32xf32> to vector<64xf32>
    %217 = vector.shape_cast %216 : vector<64xf32> to vector<64x1xf32>
    %cst_74 = arith.constant 3.200000e+01 : f32
    %218 = vector.broadcast %cst_74 : f32 to vector<64x1xf32>
    %219 = arith.divf %217, %218 : vector<64x1xf32>
    %220 = vector.broadcast %212 : vector<64x1xf32> to vector<64x32xf32>
    %221 = arith.subf %206, %220 : vector<64x32xf32>
    %cst_75 = arith.constant 9.99999974E-6 : f32
    %222 = vector.broadcast %cst_75 : f32 to vector<64x1xf32>
    %223 = arith.addf %219, %222 : vector<64x1xf32>
    %224 = math.rsqrt %223 : vector<64x1xf32>
    %225 = vector.broadcast %224 : vector<64x1xf32> to vector<64x32xf32>
    %226 = arith.mulf %221, %225 : vector<64x32xf32>
    %227 = vector.broadcast %207 : vector<1x32xf32> to vector<64x32xf32>
    %228 = arith.mulf %226, %227 : vector<64x32xf32>
    %229 = vector.broadcast %208 : vector<1x32xf32> to vector<64x32xf32>
    %230 = arith.addf %228, %229 : vector<64x32xf32>
    %c224 = arith.constant 224 : index
    %c0_76 = arith.constant 0 : index
    %231 = vector.load %arg6[%c224, %c0_76] : memref<320x128xbf16, #tpu.memory_space<vmem>>, vector<32x64xbf16>
    %232 = arith.extf %231 : vector<32x64xbf16> to vector<32x64xf32>
    %cst_77 = arith.constant dense<0.000000e+00> : vector<64x64xf32>
    %233 = tpu.matmul %230, %232, %cst_77 {dimension_numbers = #tpu.dot_dimension_numbers<[1], [0], [0], [1], [0, 0, 1, 1], [], []>} : vector<64x32xf32>, vector<32x64xf32>, vector<64x64xf32> -> vector<64x64xf32>
    %c13 = arith.constant 13 : index
    %c0_78 = arith.constant 0 : index
    %234 = vector.load %arg7[%c13, %c0_78] : memref<16x128xf32, #tpu.memory_space<vmem>>, vector<1x64xf32>
    %235 = vector.broadcast %234 : vector<1x64xf32> to vector<64x64xf32>
    %236 = arith.addf %233, %235 : vector<64x64xf32>
    %cst_79 = arith.constant 0.000000e+00 : f32
    %237 = vector.broadcast %cst_79 : f32 to vector<64x64xf32>
    %238 = arith.maximumf %236, %237 : vector<64x64xf32>
    %c256 = arith.constant 256 : index
    %c0_80 = arith.constant 0 : index
    %239 = vector.load %arg6[%c256, %c0_80] : memref<320x128xbf16, #tpu.memory_space<vmem>>, vector<64x32xbf16>
    %240 = arith.extf %239 : vector<64x32xbf16> to vector<64x32xf32>
    %cst_81 = arith.constant dense<0.000000e+00> : vector<64x32xf32>
    %241 = tpu.matmul %238, %240, %cst_81 {dimension_numbers = #tpu.dot_dimension_numbers<[1], [0], [0], [1], [0, 0, 1, 1], [], []>} : vector<64x64xf32>, vector<64x32xf32>, vector<64x32xf32> -> vector<64x32xf32>
    %c14 = arith.constant 14 : index
    %c0_82 = arith.constant 0 : index
    %242 = vector.load %arg7[%c14, %c0_82] : memref<16x128xf32, #tpu.memory_space<vmem>>, vector<1x32xf32>
    %243 = vector.broadcast %242 : vector<1x32xf32> to vector<64x32xf32>
    %244 = arith.addf %241, %243 : vector<64x32xf32>
    %245 = arith.addf %230, %244 : vector<64x32xf32>
    %c11 = arith.constant 11 : index
    %c0_83 = arith.constant 0 : index
    %246 = vector.load %arg7[%c11, %c0_83] : memref<16x128xf32, #tpu.memory_space<vmem>>, vector<1x32xf32>
    %c12 = arith.constant 12 : index
    %c0_84 = arith.constant 0 : index
    %247 = vector.load %arg7[%c12, %c0_84] : memref<16x128xf32, #tpu.memory_space<vmem>>, vector<1x32xf32>
    %cst_85 = arith.constant dense<0.000000e+00> : vector<64xf32>
    %248 = vector.multi_reduction <add>, %245, %cst_85 [1] : vector<64x32xf32> to vector<64xf32>
    %249 = vector.shape_cast %248 : vector<64xf32> to vector<64x1xf32>
    %cst_86 = arith.constant 3.200000e+01 : f32
    %250 = vector.broadcast %cst_86 : f32 to vector<64x1xf32>
    %251 = arith.divf %249, %250 : vector<64x1xf32>
    %252 = vector.broadcast %251 : vector<64x1xf32> to vector<64x32xf32>
    %253 = arith.subf %245, %252 : vector<64x32xf32>
    %254 = arith.mulf %253, %253 : vector<64x32xf32>
    %cst_87 = arith.constant dense<0.000000e+00> : vector<64xf32>
    %255 = vector.multi_reduction <add>, %254, %cst_87 [1] : vector<64x32xf32> to vector<64xf32>
    %256 = vector.shape_cast %255 : vector<64xf32> to vector<64x1xf32>
    %cst_88 = arith.constant 3.200000e+01 : f32
    %257 = vector.broadcast %cst_88 : f32 to vector<64x1xf32>
    %258 = arith.divf %256, %257 : vector<64x1xf32>
    %259 = vector.broadcast %251 : vector<64x1xf32> to vector<64x32xf32>
    %260 = arith.subf %245, %259 : vector<64x32xf32>
    %cst_89 = arith.constant 9.99999974E-6 : f32
    %261 = vector.broadcast %cst_89 : f32 to vector<64x1xf32>
    %262 = arith.addf %258, %261 : vector<64x1xf32>
    %263 = math.rsqrt %262 : vector<64x1xf32>
    %264 = vector.broadcast %263 : vector<64x1xf32> to vector<64x32xf32>
    %265 = arith.mulf %260, %264 : vector<64x32xf32>
    %266 = vector.broadcast %246 : vector<1x32xf32> to vector<64x32xf32>
    %267 = arith.mulf %265, %266 : vector<64x32xf32>
    %268 = vector.broadcast %247 : vector<1x32xf32> to vector<64x32xf32>
    %269 = arith.addf %267, %268 : vector<64x32xf32>
    %c0_90 = arith.constant 0 : index
    %c0_91 = arith.constant 0 : index
    %270 = vector.load %arg3[%c0_90, %c0_91] : memref<8x64xf32, #tpu.memory_space<vmem>>, vector<8x64xf32>
    %cst_92 = arith.constant dense<0.000000e+00> : vector<8x32xf32>
    %271 = tpu.matmul %270, %269, %cst_92 {dimension_numbers = #tpu.dot_dimension_numbers<[1], [0], [0], [1], [0, 0, 1, 1], [], []>} : vector<8x64xf32>, vector<64x32xf32>, vector<8x32xf32> -> vector<8x32xf32>
    %c32 = arith.constant 32 : index
    %c0_93 = arith.constant 0 : index
    %272 = vector.load %arg6[%c32, %c0_93] : memref<320x128xbf16, #tpu.memory_space<vmem>>, vector<32x128xbf16>
    %273 = arith.extf %272 : vector<32x128xbf16> to vector<32x128xf32>
    %cst_94 = arith.constant dense<0.000000e+00> : vector<8x128xf32>
    %274 = tpu.matmul %271, %273, %cst_94 {dimension_numbers = #tpu.dot_dimension_numbers<[1], [0], [0], [1], [0, 0, 1, 1], [], []>} : vector<8x32xf32>, vector<32x128xf32>, vector<8x128xf32> -> vector<8x128xf32>
    %c1 = arith.constant 1 : index
    %c0_95 = arith.constant 0 : index
    %275 = vector.load %arg7[%c1, %c0_95] : memref<16x128xf32, #tpu.memory_space<vmem>>, vector<1x128xf32>
    %276 = vector.broadcast %275 : vector<1x128xf32> to vector<8x128xf32>
    %277 = arith.addf %274, %276 : vector<8x128xf32>
    %c0_96 = arith.constant 0 : index
    %c0_97 = arith.constant 0 : index
    %278 = vector.load %arg8[%c0_96, %c0_97] : memref<8x128xf32, #tpu.memory_space<vmem>>, vector<8x128xf32>
    tpu.vector_store %arg8[%c0_96, %c0_97], %277 {strides = array<i32>} : memref<8x128xf32, #tpu.memory_space<vmem>>, vector<8x128xf32>,
    return
  }
  func.func @transform_0(%arg0: i32) -> (i32, i32) {
    %c0_i32 = arith.constant 0 : i32
    %c0_i32_0 = arith.constant 0 : i32
    return %arg0, %c0_i32 : i32, i32
  }
  func.func @transform_1(%arg0: i32) -> (i32, i32) {
    %c0_i32 = arith.constant 0 : i32
    %c0_i32_0 = arith.constant 0 : i32
    return %arg0, %c0_i32 : i32, i32
  }
  func.func @transform_2(%arg0: i32) -> (i32, i32) {
    %c0_i32 = arith.constant 0 : i32
    %c0_i32_0 = arith.constant 0 : i32
    return %arg0, %c0_i32 : i32, i32
  }
  func.func @transform_3(%arg0: i32) -> (i32, i32) {
    %c0_i32 = arith.constant 0 : i32
    %c0_i32_0 = arith.constant 0 : i32
    return %arg0, %c0_i32 : i32, i32
  }
  func.func @transform_4(%arg0: i32) -> (i32, i32) {
    %c0_i32 = arith.constant 0 : i32
    %c0_i32_0 = arith.constant 0 : i32
    return %arg0, %c0_i32 : i32, i32
  }
  func.func @transform_5(%arg0: i32) -> (i32, i32) {
    %c0_i32 = arith.constant 0 : i32
    %c0_i32_0 = arith.constant 0 : i32
    %c0_i32_1 = arith.constant 0 : i32
    return %c0_i32, %c0_i32_0 : i32, i32
  }
  func.func @transform_6(%arg0: i32) -> (i32, i32) {
    %c0_i32 = arith.constant 0 : i32
    %c0_i32_0 = arith.constant 0 : i32
    %c0_i32_1 = arith.constant 0 : i32
    return %c0_i32, %c0_i32_0 : i32, i32
  }
  func.func @transform_7(%arg0: i32) -> (i32, i32) {
    %c0_i32 = arith.constant 0 : i32
    %c0_i32_0 = arith.constant 0 : i32
    return %arg0, %c0_i32 : i32, i32
  }
}

</mosaic_0001>

<bundles_post_ra>
// kernel: tpu_custom_call.1
= control target key start
LH: loop header
LB: loop body
LE: loop exit
PB: predicated region body
PF: predicated region fallthrough
CT: control target
= control target key end

     0   :  { %12 = vsyncpa [#allocation3], 0  ;;  %s7215_s0 = inlined_call_operand.vmem [shape: f32[128,32], index: 0, kind: input, shape index: {}]   ;;  %s7216_s1 = inlined_call_operand.vmem [shape: f32[64,32], index: 1, kind: input, shape index: {}]   ;;  %s7217_s2 = inlined_call_operand.hbm [shape: f32[8,64], index: 2, kind: input, shape index: {}]   ;;  %s7218_s3 = inlined_call_operand.vmem [shape: f32[64,64], index: 3, kind: input, shape index: {}]   ;;  %s7219_s4 = inlined_call_operand.hbm [shape: f32[64,64], index: 4, kind: input, shape index: {}]   ;;  %s7220_s5 = inlined_call_operand.vmem [shape: bf16[320,128], index: 5, kind: input, shape index: {}]   ;;  %s7221_s6 = inlined_call_operand.hbm [shape: f32[16,128], index: 6, kind: input, shape index: {}]   ;;  %s7222_s7 = inlined_call_operand.hbm [shape: f32[8,128], index: 7, kind: output, shape index: {}]  }
   0x1   :  { %13 = vsyncpa [#allocation6], 0  ;;  %s36_s26 = sshll.u32 %s7219_s4, 4  ;;  %s37_s26 = int_to_ptr.hbm [resolvable:$true] %s36_s26 }
   0x2   :  { %14 = vsyncpa [#allocation4], 0  ;;  %s4896_s27 = smov [#allocation5]   ;;  %s24_s8 = sshll.u32 %s7217_s2, 4  ;;  %s25_s8 = int_to_ptr.hbm [resolvable:$true] %s24_s8 }
   0x3   :  { %s38_s28 = sshll.u32 %s4896_s27, 4  ;;  %s4897_s9 = smov 128   ;;  %s39_s28 = int_to_ptr.vmem [resolvable:$true] %s38_s28 }
   0x4   :  { %s4898_s10 = smov 8   ;;  %s4899_s11 = smov [#allocation2]  }
   0x5   :  { %44 = dma.hbm_to_vmem [thread:$0]  %s37_s26, 1024, %s39_s28, [#allocation6], %s4897_s9, %s4897_s9, %s4898_s10  }
   0x6   :  { %s26_s12 = sshll.u32 %s4899_s11, 4  ;;  %s51_s4 = sshll.u32 %s7221_s6, 4  ;;  %s27_s12 = int_to_ptr.vmem [resolvable:$true] %s26_s12  ;;  %s52_s4 = int_to_ptr.hbm [resolvable:$true] %s51_s4 }
   0x7   :  { %29 = dma.hbm_to_vmem [thread:$0]  %s25_s8, 128, %s27_s12, [#allocation3]  }
   0x8   :  { %s4900_s15 = smov [#allocation7]  }
   0x9   :  { %s53_s16 = sshll.u32 %s4900_s15, 4  ;;  %s54_s16 = int_to_ptr.vmem [resolvable:$true] %s53_s16 }
   0xa   :  { %59 = dma.hbm_to_vmem [thread:$0]  %s52_s4, 256, %s54_s16, [#allocation6], %s4897_s9, %s4897_s9, %s4898_s10  }
   0xb   :  { %4890 = dma.done.wait [#allocation3], 128  }
   0xc   :  { %4891 = vsyncadd [#allocation3], 4294967168 }
   0xd   :  { %4892 = dma.done.wait [#allocation6], 1280  }
   0xe   :  { %4893 = vsyncadd [#allocation6], 4294966016  ;;  %v4270_v0 = vld [vmem:[%s7220_s5 + $0x8] sm:$0xff]   ;;  %v4191_v1 = vld [vmem:[%s7220_s5] sm:$0xff]   ;;  %vm122_vm0 = vcmask 261120   ;;  %s4901_s30 = smov 96  }
   0xf   :  { %v4197_v2 = vunpack.c.h.bf16 %v4270_v0  ;;  %v4196_v3 = vunpack.c.l.bf16 %v4270_v0  ;;  %v4193_v4 = vunpack.c.h.bf16 %v4191_v1  ;;  %v4192_v5 = vunpack.c.l.bf16 %v4191_v1  ;;  %v80_v6 = vld [vmem:[%s7215_s0 + $0x40] sm:$0xff]  ;;  %v81_v7 = vld [vmem:[%s7215_s0 + $0x48] sm:$0xff]  ;;  %v82_v8 = vld [vmem:[%s7215_s0 + $0x50] sm:$0xff]  ;;  %s4903_s8 = smov 120   ;;  %s4904_s9 = smov 72  }
  0x10   :  { %v83_v9 = vld [vmem:[%s7215_s0 + $0x58] sm:$0xff]  ;;  %v4272_v10 = vld [vmem:[%s7220_s5 + $0x28] sm:$0xff]   ;;  %v84_v12 = vld [vmem:[%s7215_s0 + $0x60] sm:$0xff]  ;;  %s4905_s11 = smov 64   ;;  %s4906_s12 = smov 80   ;;  %vm312_vm1 = vcmask 64512  }
  0x11   :  { %159 = vmatpush.msra.mxu0 %v4197_v2  ;;  %v4205_v11 = vunpack.c.h.bf16 %v4272_v10  ;;  %v85_v13 = vld [vmem:[%s7215_s0 + $0x68] sm:$0xff]  ;;  %v86_v14 = vld [vmem:[%s7215_s0 + $0x70] sm:$0xff]  ;;  %v87_v15 = vld [vmem:[%s7215_s0 + $0x78] sm:$0xff]  ;;  %v4204_v16 = vunpack.c.l.bf16 %v4272_v10  ;;  %s4907_s13 = smov 112   ;;  %s4908_s14 = smov 104   ;;  %vm394_vm2 = vcmask 523264  }
  0x12   :  { %v4271_v17 = vld [vmem:[%s7220_s5 + $0x20] sm:$0xff]   ;;  %v4473_v20 = vld [vmem:[#allocation7] ss:$0 sm:$0xff]  ;;  %v74_v29 = vld [vmem:[%s7215_s0 + $0x10] sm:$0xff]  ;;  %s4910_s28 = smov 48   ;;  %s4911_s29 = smov 40  }
  0x13   :  { %160 = vmatpush.msra.mxu0 %v4196_v3  ;;  %242 = vmatpush.msra.mxu1 %v4205_v11  ;;  %v4201_v18 = vunpack.c.h.bf16 %v4271_v17  ;;  %v4200_v19 = vunpack.c.l.bf16 %v4271_v17  ;;  %v72_v21 = vld [vmem:[%s7215_s0] sm:$0xff]  ;;  %v73_v25 = vld [vmem:[%s7215_s0 + $0x8] sm:$0xff]  ;;  %v75_v33 = vld [vmem:[%s7215_s0 + $0x18] sm:$0xff]  ;;  %s4913_s4 = smov 16   ;;  %vm1522_vm3 = vcmask 130048   ;;  %vm1531_vm4 = vcmask 195584  }
  0x14   :  { %v76_v37 = vld [vmem:[%s7215_s0 + $0x20] sm:$0xff]  ;;  %v77_v41 = vld [vmem:[%s7215_s0 + $0x28] sm:$0xff]  ;;  %v78_v45 = vld [vmem:[%s7215_s0 + $0x30] sm:$0xff]  ;;  %s3921_s18 = sshll.u32 %s7222_s7, 4  ;;  %s3922_s18 = int_to_ptr.hbm [resolvable:$true] %s3921_s18 }
  0x15   :  { %161 = vmatpush.msra.mxu0 %v4193_v4  ;;  %243 = vmatpush.msra.mxu1 %v4204_v16  ;;  %v79_v49 = vld [vmem:[%s7215_s0 + $0x38] sm:$0xff]  ;;  %v4474_v56 = vld [vmem:[#allocation7 + $0x2] ss:$0 sm:$0xff]  ;;  %s4902_s0 = smov 88  }
  0x17   :  { %162 = vmatpush.msra.mxu0 %v4192_v5  ;;  %244 = vmatpush.msra.mxu1 %v4201_v18 }
  0x18   :  { %3932 = vmatmul.msk.f32.vlgmr.msra.gmra.mxu0 %vm122_vm0, %v80_v6 }
  0x19   :  { %245 = vmatpush.msra.mxu1 %v4200_v19 }
  0x20   :  { %3933 = vmatmul.msk.f32.gmra.mxu0 %vm122_vm0, %v81_v7 }
  0x28   :  { %3934 = vmatmul.msk.f32.gmra.mxu0 %vm122_vm0, %v82_v8 }
  0x30   :  { %3935 = vmatmul.msk.f32.gmra.mxu0 %vm122_vm0, %v83_v9 }
  0x38   :  { %3936 = vmatmul.msk.f32.gmra.mxu0 %vm122_vm0, %v84_v12 }
  0x40   :  { %3937 = vmatmul.msk.f32.gmra.mxu0 %vm122_vm0, %v85_v13 }
  0x48   :  { %3938 = vmatmul.msk.f32.gmra.mxu0 %vm122_vm0, %v86_v14 }
  0x50   :  { %3939 = vmatmul.msk.f32.gmra.mxu0 %vm122_vm0, %v87_v15 }
  0x95   :  { %v164_v22 = vpop.f32.mrf.mxu0 }
  0x96   :  { %v165_v23 = vadd.f32 %v4473_v20, %v164_v22 }
  0x98   :  { %v5014_v24 = vadd.f32 %v165_v23, %v72_v21 }
  0x9a   :  { %3940 = vmatmul.msk.f32.vlgmr.msra.gmra.mxu1 %vm122_vm0, %v5014_v24 }
  0x9d   :  { %v167_v26 = vpop.f32.mrf.mxu0 }
  0x9e   :  { %v168_v27 = vadd.f32 %v4473_v20, %v167_v26 }
  0xa0   :  { %v5021_v28 = vadd.f32 %v168_v27, %v73_v25 }
  0xa2   :  { %3941 = vmatmul.msk.f32.gmra.mxu1 %vm122_vm0, %v5021_v28 }
  0xa5   :  { %v170_v30 = vpop.f32.mrf.mxu0 }
  0xa6   :  { %v171_v31 = vadd.f32 %v4473_v20, %v170_v30 }
  0xa8   :  { %v5028_v32 = vadd.f32 %v171_v31, %v74_v29 }
  0xaa   :  { %3942 = vmatmul.msk.f32.gmra.mxu1 %vm122_vm0, %v5028_v32 }
  0xad   :  { %v173_v34 = vpop.f32.mrf.mxu0 }
  0xae   :  { %v174_v35 = vadd.f32 %v4473_v20, %v173_v34 }
  0xb0   :  { %v5035_v36 = vadd.f32 %v174_v35, %v75_v33 }
  0xb2   :  { %3943 = vmatmul.msk.f32.gmra.mxu1 %vm122_vm0, %v5035_v36 }
  0xb5   :  { %v176_v38 = vpop.f32.mrf.mxu0 }
  0xb6   :  { %v177_v39 = vadd.f32 %v4473_v20, %v176_v38 }
  0xb8   :  { %v5042_v40 = vadd.f32 %v177_v39, %v76_v37 }
  0xba   :  { %3944 = vmatmul.msk.f32.gmra.mxu1 %vm122_vm0, %v5042_v40 }
  0xbd   :  { %v179_v42 = vpop.f32.mrf.mxu0 }
  0xbe   :  { %v180_v43 = vadd.f32 %v4473_v20, %v179_v42 }
  0xc0   :  { %v5049_v44 = vadd.f32 %v180_v43, %v77_v41 }
  0xc2   :  { %3945 = vmatmul.msk.f32.gmra.mxu1 %vm122_vm0, %v5049_v44 }
  0xc5   :  { %v182_v46 = vpop.f32.mrf.mxu0 }
  0xc6   :  { %v183_v47 = vadd.f32 %v4473_v20, %v182_v46 }
  0xc8   :  { %v5056_v48 = vadd.f32 %v183_v47, %v78_v45 }
  0xca   :  { %3946 = vmatmul.msk.f32.gmra.mxu1 %vm122_vm0, %v5056_v48 }
  0xcd   :  { %v185_v50 = vpop.f32.mrf.mxu0 }
  0xce   :  { %v186_v51 = vadd.f32 %v4473_v20, %v185_v50 }
  0xd0   :  { %v5063_v52 = vadd.f32 %v186_v51, %v79_v49 }
  0xd2   :  { %3947 = vmatmul.msk.f32.gmra.mxu1 %vm122_vm0, %v5063_v52 }
 0x117   :  { %v247_v53 = vpop.f32.mrf.mxu1 }
 0x118   :  { %v5088_v5 = vadd.f32 %v4474_v56, %v247_v53 }
 0x11a   :  { %v5123_v11 = vmul.f32 0.35355338, %v5088_v5 }
 0x11f   :  { %v250_v54 = vpop.f32.mrf.mxu1 }
 0x120   :  { %v251_v8 = vadd.f32 %v4474_v56, %v250_v54 }
 0x122   :  { %v5131_v12 = vpack.i.bf16 %v5088_v5, %v251_v8  ;;  %v5133_v13 = vmul.f32 0.35355338, %v251_v8 }
 0x127   :  { %v253_v55 = vpop.f32.mrf.mxu1 }
 0x128   :  { %v5071_v60 = vadd.f32 %v4474_v56, %v253_v55 }
 0x12a   :  { %v5079_v1 = vmul.f32 0.35355338, %v5071_v60 }
 0x12f   :  { %v256_v57 = vpop.f32.mrf.mxu1 }
 0x130   :  { %v5067_v58 = vadd.f32 %v4474_v56, %v256_v57 }
 0x132   :  { %302 = vrot.lane.b32.xlu2 %v5067_v58, %s4901_s30  ;;  %v5115_v10 = vpack.i.bf16 %v5071_v60, %v5067_v58  ;;  %v5142_v14 = vmul.f32 0.35355338, %v5067_v58 }
 0x137   :  { %v259_v59 = vpop.f32.mrf.mxu1 }
 0x138   :  { %v260_v0 = vadd.f32 %v4474_v56, %v259_v59 }
 0x13a   :  { %300 = vrot.lane.b32.xlu2 %v5071_v60, %s4901_s30  ;;  %v5086_v4 = vmul.f32 0.35355338, %v260_v0 }
 0x13f   :  { %v262_v61 = vpop.f32.mrf.mxu1 }
 0x140   :  { %v263_v62 = vadd.f32 %v4474_v56, %v262_v61 }
 0x142   :  { %306 = vrot.lane.b32.xlu1 %v263_v62, %s4901_s30  ;;  %594 = vrot.lane.b32.xlu2 %v5067_v58, %s4902_s0  ;;  %v5096_v7 = vpack.i.bf16 %v260_v0, %v263_v62  ;;  %v5102_v9 = vmul.f32 0.35355338, %v263_v62 }
 0x147   :  { %v265_v63 = vpop.f32.mrf.mxu1 }
 0x148   :  { %v266_v6 = vadd.f32 %v4474_v56, %v265_v63 }
 0x14a   :  { %304 = vrot.lane.b32.xlu1 %v260_v0, %s4901_s30  ;;  %576 = vrot.lane.b32.xlu2 %v5079_v1, %s4903_s8  ;;  %v5168_v20 = vmul.f32 0.35355338, %v266_v6 }
 0x14f   :  { %v268_v2 = vpop.f32.mrf.mxu1 }
 0x150   :  { %v5084_v3 = vadd.f32 %v4474_v56, %v268_v2 }
 0x152   :  { %310 = vrot.lane.b32.xlu0 %v5084_v3, %s4901_s30  ;;  %580 = vrot.lane.b32.xlu2 %v5086_v4, %s4903_s8  ;;  %v5153_v17 = vpack.i.bf16 %v266_v6, %v5084_v3  ;;  %v5183_v25 = vmul.f32 0.35355338, %v5084_v3 }
 0x153   :  { %296 = vrot.lane.b32.xlu1 %v5088_v5, %s4901_s30 }
 0x15a   :  { %308 = vrot.lane.b32.xlu0 %v266_v6, %s4901_s30  ;;  %1164 = vrot.lane.b32.xlu2 %v266_v6, %s4904_s9 }
 0x15b   :  { %4314 = vrot.lane.b32.xlu1 %v5096_v7, %s4905_s11 }
 0x162   :  { %582 = vrot.lane.b32.xlu2 %v5102_v9, %s4903_s8  ;;  %298 = vrot.lane.b32.xlu0 %v251_v8, %s4901_s30 }
 0x163   :  { %598 = vrot.lane.b32.xlu1 %v263_v62, %s4902_s0 }
 0x16a   :  { %874 = vrot.lane.b32.xlu2 %v5071_v60, %s4906_s12  ;;  %600 = vrot.lane.b32.xlu0 %v266_v6, %s4902_s0 }
 0x16b   :  { %592 = vrot.lane.b32.xlu1 %v5071_v60, %s4902_s0 }
 0x172   :  { %1160 = vrot.lane.b32.xlu2 %v260_v0, %s4904_s9  ;;  %4319 = vrot.lane.b32.xlu0 %v5115_v10, %s4905_s11 }
 0x173   :  { %588 = vrot.lane.b32.xlu1 %v5088_v5, %s4902_s0 }
 0x17a   :  { %596 = vrot.lane.b32.xlu0 %v260_v0, %s4902_s0  ;;  %870 = vrot.lane.b32.xlu2 %v5088_v5, %s4906_s12 }
 0x17b   :  { %572 = vrot.lane.b32.xlu1 %v5123_v11, %s4903_s8 }
 0x182   :  { %4324 = vrot.lane.b32.xlu0 %v5131_v12, %s4905_s11  ;;  %854 = vrot.lane.b32.xlu2 %v5123_v11, %s4907_s13 }
 0x183   :  { %574 = vrot.lane.b32.xlu1 %v5133_v13, %s4903_s8 }
 0x18a   :  { %590 = vrot.lane.b32.xlu0 %v251_v8, %s4902_s0  ;;  %1154 = vrot.lane.b32.xlu2 %v251_v8, %s4904_s9 }
 0x18b   :  { %578 = vrot.lane.b32.xlu1 %v5142_v14, %s4903_s8 }
 0x18c   :  { %v303_v15 = vpop.permute.xlu2 %302 }
 0x192   :  { %882 = vrot.lane.b32.xlu0 %v266_v6, %s4906_s12  ;;  %856 = vrot.lane.b32.xlu2 %v5133_v13, %s4907_s13 }
 0x193   :  { %880 = vrot.lane.b32.xlu1 %v263_v62, %s4906_s12 }
 0x194   :  { %v301_v16 = vpop.permute.xlu2 %300 }
 0x19a   :  { %876 = vrot.lane.b32.xlu0 %v5067_v58, %s4906_s12  ;;  %4329 = vrot.lane.b32.xlu2 %v5153_v17, %s4905_s11  ;;  %s4912_s11 = smov 24  }
 0x19b   :  { %878 = vrot.lane.b32.xlu1 %v260_v0, %s4906_s12 }
 0x19c   :  { %v5160_v18 = vpop.permute.xlu2 %594 }
 0x1a2   :  { %1162 = vrot.lane.b32.xlu0 %v263_v62, %s4904_s9  ;;  %1166 = vrot.lane.b32.xlu2 %v5084_v3, %s4904_s9 }
 0x1a3   :  { %872 = vrot.lane.b32.xlu1 %v251_v8, %s4906_s12 }
 0x1a4   :  { %v5166_v19 = vpop.permute.xlu2 %576 }
 0x1aa   :  { %584 = vrot.lane.b32.xlu0 %v5168_v20, %s4903_s8 }
 0x1ab   :  { %1136 = vrot.lane.b32.xlu1 %v5123_v11, %s4908_s14 }
 0x1ac   :  { %v5174_v21 = vpop.permute.xlu2 %580 }
 0x1b2   :  { %1158 = vrot.lane.b32.xlu0 %v5067_v58, %s4904_s9 }
 0x1b3   :  { %602 = vrot.lane.b32.xlu1 %v5084_v3, %s4902_s0 }
 0x1b4   :  { %v307_v22 = vpop.permute.xlu1 %306  ;;  %v5180_v23 = vpop.permute.xlu2 %1164 }
 0x1ba   :  { %1156 = vrot.lane.b32.xlu0 %v5071_v60, %s4904_s9 }
 0x1bb   :  { %586 = vrot.lane.b32.xlu1 %v5183_v25, %s4903_s8 }
 0x1bc   :  { %v305_v26 = vpop.permute.xlu1 %304  ;;  %v5189_v27 = vpop.permute.xlu2 %582 }
 0x1c2   :  { %1152 = vrot.lane.b32.xlu0 %v5088_v5, %s4904_s9 }
 0x1c4   :  { %v311_v29 = vpop.permute.xlu0 %310  ;;  %v5193_v30 = vpop.permute.xlu2 %874 }
 0x1c5   :  { %v297_v31 = vpop.permute.xlu1 %296  ;;  %3948 = vmatpush.xpose.msk.msra.mxu2 %vm312_vm1, %v311_v29 }
 0x1ca   :  { %858 = vrot.lane.b32.xlu0 %v5079_v1, %s4907_s13 }
 0x1cc   :  { %v309_v33 = vpop.permute.xlu0 %308  ;;  %v5198_v34 = vpop.permute.xlu2 %1160 }
 0x1cd   :  { %v4315_v35 = vpop.permute.xlu1 %4314  ;;  %3949 = vmatpush.xpose.msk.msra.mxu2 %vm312_vm1, %v309_v33 }
 0x1ce   :  { %v4316_v58 = vunpack.i.l.bf16 %v4315_v35  ;;  %v4317_v59 = vunpack.i.h.bf16 %v4315_v35 }
 0x1d1   :  { %3950 = vmatpush.xpose.msk.msra.mxu2 %vm312_vm1, %v307_v22 }
 0x1d2   :  { %884 = vrot.lane.b32.xlu0 %v5084_v3, %s4906_s12 }
 0x1d4   :  { %v299_v37 = vpop.permute.xlu0 %298  ;;  %v5204_v38 = vpop.permute.xlu2 %870 }
 0x1d5   :  { %v599_v39 = vpop.permute.xlu1 %598  ;;  %3951 = vmatpush.xpose.msk.msra.mxu2 %vm312_vm1, %v305_v26 }
 0x1d9   :  { %3952 = vmatpush.xpose.msk.msra.mxu2 %vm312_vm1, %v303_v15 }
 0x1dc   :  { %v601_v41 = vpop.permute.xlu0 %600  ;;  %v5208_v42 = vpop.permute.xlu2 %854 }
 0x1dd   :  { %v593_v43 = vpop.permute.xlu1 %592  ;;  %3953 = vmatpush.xpose.msk.msra.mxu2 %vm312_vm1, %v301_v16 }
 0x1e1   :  { %3954 = vmatpush.xpose.msk.msra.mxu2 %vm312_vm1, %v299_v37 }
 0x1e4   :  { %v4320_v45 = vpop.permute.xlu0 %4319  ;;  %v5212_v46 = vpop.permute.xlu2 %1154 }
 0x1e5   :  { %v589_v47 = vpop.permute.xlu1 %588  ;;  %3955 = vmatpush.xpose.msk.msra.mxu2 %vm312_vm1, %v297_v31  ;;  %v4321_v62 = vunpack.i.l.bf16 %v4320_v45  ;;  %v4322_v63 = vunpack.i.h.bf16 %v4320_v45 }
 0x1e8   :  { %3956 = vmatmul.msk.f32.vlgmr.msra.gmra.mxu2 %vm312_vm1, %v5123_v11 }
 0x1ec   :  { %v597_v49 = vpop.permute.xlu0 %596  ;;  %v5217_v50 = vpop.permute.xlu2 %856 }
 0x1ed   :  { %v573_v51 = vpop.permute.xlu1 %572 }
 0x1f0   :  { %3957 = vmatmul.msk.f32.gmra.mxu2 %vm312_vm1, %v5133_v13 }
 0x1f4   :  { %v4325_v53 = vpop.permute.xlu0 %4324  ;;  %v4330_v54 = vpop.permute.xlu2 %4329 }
 0x1f5   :  { %v575_v55 = vpop.permute.xlu1 %574  ;;  %v4331_v56 = vunpack.i.l.bf16 %v4330_v54  ;;  %v4332_v57 = vunpack.i.h.bf16 %v4330_v54  ;;  %v4326_v0 = vunpack.i.l.bf16 %v4325_v53  ;;  %v4327_v2 = vunpack.i.h.bf16 %v4325_v53 }
 0x1f7   :  { %539 = vmatpush.msra.mxu3 %v4331_v56 }
 0x1f8   :  { %3958 = vmatmul.msk.f32.gmra.mxu2 %vm312_vm1, %v5079_v1 }
 0x1f9   :  { %540 = vmatpush.msra.mxu3 %v4332_v57 }
 0x1fb   :  { %541 = vmatpush.msra.mxu3 %v4316_v58 }
 0x1fc   :  { %v591_v60 = vpop.permute.xlu0 %590  ;;  %v1167_v37 = vpop.permute.xlu2 %1166 }
 0x1fd   :  { %v579_v61 = vpop.permute.xlu1 %578  ;;  %542 = vmatpush.msra.mxu3 %v4317_v59  ;;  %v5315_v59 = vld [vmem:[%s7218_s3 + $0x28] sm:$0xff] }
 0x1ff   :  { %543 = vmatpush.msra.mxu3 %v4321_v62 }
 0x200   :  { %3959 = vmatmul.msk.f32.gmra.mxu2 %vm312_vm1, %v5142_v14 }
 0x201   :  { %544 = vmatpush.msra.mxu3 %v4322_v63  ;;  %v5322_v63 = vld [vmem:[%s7218_s3 + $0x30] sm:$0xff] }
 0x203   :  { %545 = vmatpush.msra.mxu3 %v4326_v0 }
 0x204   :  { %v883_v3 = vpop.permute.xlu0 %882 }
 0x205   :  { %v881_v5 = vpop.permute.xlu1 %880  ;;  %546 = vmatpush.msra.mxu3 %v4327_v2 }
 0x208   :  { %3960 = vmatmul.msk.f32.gmra.mxu2 %vm312_vm1, %v5086_v4 }
 0x20c   :  { %v877_v6 = vpop.permute.xlu0 %876 }
 0x20d   :  { %v879_v8 = vpop.permute.xlu1 %878 }
 0x210   :  { %3961 = vmatmul.msk.f32.gmra.mxu2 %vm312_vm1, %v5102_v9 }
 0x214   :  { %v1163_v11 = vpop.permute.xlu0 %1162 }
 0x215   :  { %v873_v15 = vpop.permute.xlu1 %872 }
 0x218   :  { %3962 = vmatmul.msk.f32.gmra.mxu2 %vm312_vm1, %v5168_v20 }
 0x21c   :  { %v585_v16 = vpop.permute.xlu0 %584 }
 0x21d   :  { %v1137_v22 = vpop.permute.xlu1 %1136 }
 0x220   :  { %3963 = vmatmul.msk.f32.gmra.mxu2 %vm312_vm1, %v5183_v25 }
 0x224   :  { %v1159_v26 = vpop.permute.xlu0 %1158 }
 0x225   :  { %v603_v29 = vpop.permute.xlu1 %602 }
 0x226   :  { %3972 = vmatpush.xpose.msk.msrb.mxu0 %vm312_vm1, %v603_v29 }
 0x22a   :  { %3973 = vmatpush.xpose.msk.msrb.mxu0 %vm312_vm1, %v601_v41 }
 0x22c   :  { %v1157_v31 = vpop.permute.xlu0 %1156 }
 0x22d   :  { %v587_v45 = vpop.permute.xlu1 %586 }
 0x22e   :  { %3974 = vmatpush.xpose.msk.msrb.mxu0 %vm312_vm1, %v599_v39 }
 0x232   :  { %3975 = vmatpush.xpose.msk.msrb.mxu0 %vm312_vm1, %v597_v49  ;;  %v5300_v49 = vld [vmem:[%s7218_s3 + $0x18] sm:$0xff] }
 0x234   :  { %v1153_v33 = vpop.permute.xlu0 %1152 }
 0x236   :  { %3976 = vmatpush.xpose.msk.msrb.mxu0 %vm312_vm1, %v5160_v18  ;;  %v5275_v18 = vld [vmem:[%s7218_s3] sm:$0xff] }
 0x23a   :  { %3977 = vmatpush.xpose.msk.msrb.mxu0 %vm312_vm1, %v593_v43 }
 0x23c   :  { %v5240_v35 = vpop.permute.xlu0 %858 }
 0x23e   :  { %3978 = vmatpush.xpose.msk.msrb.mxu0 %vm312_vm1, %v591_v60 }
 0x242   :  { %3979 = vmatpush.xpose.msk.msrb.mxu0 %vm312_vm1, %v589_v47 }
 0x244   :  { %v885_v41 = vpop.permute.xlu0 %884 }
 0x245   :  { %3980 = vmatmul.msk.f32.vlgmr.msrb.gmra.mxu0 %vm312_vm1, %v573_v51  ;;  %3996 = vmatpush.xpose.msk.msrb.mxu3 %vm312_vm1, %v885_v41 }
 0x246   :  { %4020 = vmatpush.xpose.msk.msra.mxu0 %vm312_vm1, %v1167_v37 }
 0x249   :  { %3997 = vmatpush.xpose.msk.msrb.mxu3 %vm312_vm1, %v883_v3 }
 0x24a   :  { %4021 = vmatpush.xpose.msk.msra.mxu0 %vm312_vm1, %v5180_v23 }
 0x24d   :  { %3981 = vmatmul.msk.f32.gmra.mxu0 %vm312_vm1, %v575_v55  ;;  %3998 = vmatpush.xpose.msk.msrb.mxu3 %vm312_vm1, %v881_v5  ;;  %v5308_v55 = vld [vmem:[%s7218_s3 + $0x20] sm:$0xff]  ;;  %v5329_v5 = vld [vmem:[%s7218_s3 + $0x38] sm:$0xff] }
 0x24e   :  { %4022 = vmatpush.xpose.msk.msra.mxu0 %vm312_vm1, %v1163_v11 }
 0x251   :  { %3999 = vmatpush.xpose.msk.msrb.mxu3 %vm312_vm1, %v879_v8 }
 0x252   :  { %4023 = vmatpush.xpose.msk.msra.mxu0 %vm312_vm1, %v5198_v34  ;;  %v5284_v34 = vld [vmem:[%s7218_s3 + $0x8] sm:$0xff] }
 0x255   :  { %3982 = vmatmul.msk.f32.gmra.mxu0 %vm312_vm1, %v5166_v19  ;;  %4000 = vmatpush.xpose.msk.msrb.mxu3 %vm312_vm1, %v877_v6 }
 0x256   :  { %4024 = vmatpush.xpose.msk.msra.mxu0 %vm312_vm1, %v1159_v26 }
 0x259   :  { %4001 = vmatpush.xpose.msk.msrb.mxu3 %vm312_vm1, %v5193_v30 }
 0x25a   :  { %4025 = vmatpush.xpose.msk.msra.mxu0 %vm312_vm1, %v1157_v31 }
 0x25d   :  { %3983 = vmatmul.msk.f32.gmra.mxu0 %vm312_vm1, %v579_v61  ;;  %4002 = vmatpush.xpose.msk.msrb.mxu3 %vm312_vm1, %v873_v15 }
 0x25e   :  { %4026 = vmatpush.xpose.msk.msra.mxu0 %vm312_vm1, %v5212_v46 }
 0x261   :  { %4003 = vmatpush.xpose.msk.msrb.mxu3 %vm312_vm1, %v5204_v38 }
 0x262   :  { %4027 = vmatpush.xpose.msk.msra.mxu0 %vm312_vm1, %v1153_v33 }
 0x265   :  { %3984 = vmatmul.msk.f32.gmra.mxu0 %vm312_vm1, %v5174_v21 }
 0x26b   :  { %v370_v19 = vpop.f32.mrf.mxu2 }
 0x26c   :  { %v371_v23 = vadd.f32 %v370_v19, %v5275_v18 }
 0x26d   :  { %3985 = vmatmul.msk.f32.gmra.mxu0 %vm312_vm1, %v5189_v27  ;;  %v5292_v27 = vld [vmem:[%s7218_s3 + $0x10] sm:$0xff]  ;;  %s4909_s3 = smov 56  }
 0x26e   :  { %v395_v30 = vsel %vm394_vm2, %v371_v23, -inf }
 0x26f   :  { %396 = vmax.xlane.f32.xlu2 %v395_v30 }
 0x273   :  { %v373_v21 = vpop.f32.mrf.mxu2 }
 0x274   :  { %v374_v38 = vadd.f32 %v373_v21, %v5284_v34 }
 0x275   :  { %3986 = vmatmul.msk.f32.gmra.mxu0 %vm312_vm1, %v585_v16 }
 0x276   :  { %v398_v39 = vsel %vm394_vm2, %v374_v38, -inf }
 0x277   :  { %399 = vmax.xlane.f32.xlu0 %v398_v39 }
 0x27b   :  { %v376_v43 = vpop.f32.mrf.mxu2 }
 0x27c   :  { %v377_v46 = vadd.f32 %v376_v43, %v5292_v27 }
 0x27d   :  { %3987 = vmatmul.msk.f32.gmra.mxu0 %vm312_vm1, %v587_v45 }
 0x27e   :  { %v401_v47 = vsel %vm394_vm2, %v377_v46, -inf }
 0x27f   :  { %402 = vmax.xlane.f32.xlu1 %v401_v47 }
 0x283   :  { %v379_v51 = vpop.f32.mrf.mxu2 }
 0x284   :  { %v380_v53 = vadd.f32 %v379_v51, %v5300_v49 }
 0x285   :  { %4028 = vmatmul.msk.f32.vlgmr.msra.gmra.mxu0 %vm312_vm1, %v1137_v22 }
 0x286   :  { %v404_v54 = vsel %vm394_vm2, %v380_v53, -inf }
 0x287   :  { %405 = vmax.xlane.f32.xlu2 %v404_v54 }
 0x28b   :  { %v382_v56 = vpop.f32.mrf.mxu2 }
 0x28c   :  { %v383_v57 = vadd.f32 %v382_v56, %v5308_v55 }
 0x28e   :  { %v407_v58 = vsel %vm394_vm2, %v383_v57, -inf }
 0x28f   :  { %408 = vmax.xlane.f32.xlu2 %v407_v58 }
 0x293   :  { %v385_v60 = vpop.f32.mrf.mxu2 }
 0x294   :  { %v386_v61 = vadd.f32 %v385_v60, %v5315_v59 }
 0x296   :  { %v410_v62 = vsel %vm394_vm2, %v386_v61, -inf }
 0x297   :  { %411 = vmax.xlane.f32.xlu0 %v410_v62 }
 0x29b   :  { %v388_v0 = vpop.f32.mrf.mxu2 }
 0x29c   :  { %v389_v2 = vadd.f32 %v388_v0, %v5322_v63 }
 0x29e   :  { %v413_v3 = vsel %vm394_vm2, %v389_v2, -inf }
 0x29f   :  { %414 = vmax.xlane.f32.xlu0 %v413_v3 }
 0x2a3   :  { %v391_v6 = vpop.f32.mrf.mxu2 }
 0x2a4   :  { %v392_v8 = vadd.f32 %v391_v6, %v5329_v5 }
 0x2a6   :  { %v416_v11 = vsel %vm394_vm2, %v392_v8, -inf }
 0x2a7   :  { %417 = vmax.xlane.f32.xlu1 %v416_v11 }
 0x2e2   :  { %v397_v15 = vpop.xlane.xlu2 %396 }
 0x2e3   :  { %v419_v16 = vsub.f32 %v371_v23, %v397_v15 }
 0x2e5   :  { %v427_v22 = vmul.f32 1.442695, %v419_v16 }
 0x2e7   :  { %4488 = vpow2.f32 %v427_v22  ;;  %v653_v22 = vpop.f32.mrf.mxu0 }
 0x2ea   :  { %v400_v26 = vpop.xlane.xlu0 %399 }
 0x2eb   :  { %v420_v29 = vsub.f32 %v374_v38, %v400_v26  ;;  %v5368_v26 = vadd.f32 %v653_v22, %v5275_v18 }
 0x2ed   :  { %v5333_v31 = vpop.eup %4488  ;;  %v429_v33 = vmul.f32 1.442695, %v420_v29  ;;  %v677_v29 = vsel %vm394_vm2, %v5368_v26, -inf }
 0x2ee   :  { %v443_v37 = vsel %vm394_vm2, %v5333_v31, 0.0 }
 0x2ef   :  { %4490 = vpow2.f32 %v429_v33  ;;  %444 = vadd.xlane.f32.xlu2 %v443_v37 }
 0x2f2   :  { %v403_v41 = vpop.xlane.xlu1 %402 }
 0x2f3   :  { %v421_v19 = vsub.f32 %v377_v46, %v403_v41 }
 0x2f5   :  { %v5337_v30 = vpop.eup %4490  ;;  %v431_v21 = vmul.f32 1.442695, %v421_v19 }
 0x2f6   :  { %v446_v23 = vsel %vm394_vm2, %v5337_v30, 0.0 }
 0x2f7   :  { %4492 = vpow2.f32 %v431_v21  ;;  %447 = vadd.xlane.f32.xlu0 %v446_v23 }
 0x2fa   :  { %v406_v39 = vpop.xlane.xlu2 %405 }
 0x2fb   :  { %v422_v38 = vsub.f32 %v380_v53, %v406_v39 }
 0x2fd   :  { %v5341_v43 = vpop.eup %4492  ;;  %v433_v45 = vmul.f32 1.442695, %v422_v38 }
 0x2fe   :  { %v449_v47 = vsel %vm394_vm2, %v5341_v43, 0.0 }
 0x2ff   :  { %4494 = vpow2.f32 %v433_v45  ;;  %450 = vadd.xlane.f32.xlu2 %v449_v47  ;;  %v656_v47 = vpop.f32.mrf.mxu0 }
 0x302   :  { %v409_v51 = vpop.xlane.xlu2 %408 }
 0x303   :  { %v423_v46 = vsub.f32 %v383_v57, %v409_v51 }
 0x305   :  { %v5345_v54 = vpop.eup %4494  ;;  %v435_v56 = vmul.f32 1.442695, %v423_v46 }
 0x306   :  { %v452_v58 = vsel %vm394_vm2, %v5345_v54, 0.0 }
 0x307   :  { %4496 = vpow2.f32 %v435_v56  ;;  %453 = vadd.xlane.f32.xlu0 %v452_v58 }
 0x30a   :  { %v412_v57 = vpop.xlane.xlu0 %411 }
 0x30b   :  { %v424_v62 = vsub.f32 %v386_v61, %v412_v57  ;;  %v659_v57 = vpop.f32.mrf.mxu0 }
 0x30d   :  { %v5349_v60 = vpop.eup %4496  ;;  %v437_v0 = vmul.f32 1.442695, %v424_v62  ;;  %v5402_v62 = vadd.f32 %v659_v57, %v5292_v27 }
 0x30e   :  { %v455_v53 = vsel %vm394_vm2, %v5349_v60, 0.0 }
 0x30f   :  { %456 = vadd.xlane.f32.xlu1 %v455_v53  ;;  %4498 = vpow2.f32 %v437_v0  ;;  %v683_v0 = vsel %vm394_vm2, %v5402_v62, -inf }
 0x312   :  { %v415_v11 = vpop.xlane.xlu0 %414 }
 0x315   :  { %v5363_v3 = vpop.eup %4498 }
 0x316   :  { %v458_v6 = vsel %vm394_vm2, %v5363_v3, 0.0 }
 0x317   :  { %860 = vrot.lane.b32.xlu2 %v5142_v14, %s4907_s13 }
 0x31a   :  { %v418_v15 = vpop.xlane.xlu1 %417 }
 0x31b   :  { %1140 = vrot.lane.b32.xlu0 %v5079_v1, %s4908_s14  ;;  %v425_v1 = vsub.f32 %v389_v2, %v415_v11  ;;  %v426_v16 = vsub.f32 %v392_v8, %v418_v15 }
 0x323   :  { %1142 = vrot.lane.b32.xlu0 %v5142_v14, %s4908_s14  ;;  %v439_v14 = vmul.f32 1.442695, %v425_v1 }
 0x325   :  { %4500 = vpow2.f32 %v439_v14 }
 0x328   :  { %1138 = vrot.lane.b32.xlu1 %v5133_v13, %s4908_s14  ;;  %v441_v13 = vmul.f32 1.442695, %v426_v16 }
 0x32a   :  { %4502 = vpow2.f32 %v441_v13 }
 0x32b   :  { %864 = vrot.lane.b32.xlu0 %v5102_v9, %s4907_s13  ;;  %v5370_v61 = vpop.eup %4500 }
 0x32c   :  { %v461_v33 = vsel %vm394_vm2, %v5370_v61, 0.0 }
 0x330   :  { %v5376_v2 = vpop.eup %4502 }
 0x331   :  { %v464_v8 = vsel %vm394_vm2, %v5376_v2, 0.0 }
 0x340   :  { %459 = vadd.xlane.f32.xlu2 %v458_v6  ;;  %v662_v6 = vpop.f32.mrf.mxu0 }
 0x341   :  { %v5407_v11 = vadd.f32 %v662_v6, %v5300_v49 }
 0x348   :  { %v665_v16 = vpop.f32.mrf.mxu0 }
 0x350   :  { %v668_v13 = vpop.f32.mrf.mxu0 }
 0x352   :  { %678 = vmax.xlane.f32.xlu1 %v677_v29 }
 0x355   :  { %462 = vadd.xlane.f32.xlu0 %v461_v33  ;;  %v5427_v33 = vadd.f32 %v665_v16, %v5308_v55 }
 0x358   :  { %862 = vrot.lane.b32.xlu2 %v5086_v4, %s4907_s13 }
 0x35a   :  { %465 = vadd.xlane.f32.xlu1 %v464_v8 }
 0x362   :  { %v445_v37 = vpop.xlane.xlu2 %444 }
 0x363   :  { %4504 = vrcp.f32 %v445_v37 }
 0x369   :  { %v4505_v41 = vpop.eup %4504  ;;  %1144 = vrot.lane.b32.xlu0 %v5086_v4, %s4908_s14 }
 0x36a   :  { %v448_v19 = vpop.xlane.xlu0 %447  ;;  %v475_v21 = vmul.f32 %v4505_v41, %v5333_v31  ;;  %v5392_v31 = vadd.f32 %v656_v47, %v5284_v34  ;;  %v671_v41 = vpop.f32.mrf.mxu0  ;;  %v5440_v47 = vadd.f32 %v668_v13, %v5315_v59 }
 0x36b   :  { %4506 = vrcp.f32 %v448_v19  ;;  %v5432_v19 = vadd.f32 %v671_v41, %v5322_v63 }
 0x36c   :  { %3964 = vmatmul.msk.f32.vlgmr.msra.gmra.mxu3 %vm394_vm2, %v475_v21 }
 0x371   :  { %v4507_v23 = vpop.eup %4506 }
 0x372   :  { %v451_v39 = vpop.xlane.xlu2 %450  ;;  %v476_v38 = vmul.f32 %v4507_v23, %v5337_v30  ;;  %v680_v30 = vsel %vm394_vm2, %v5392_v31, -inf }
 0x373   :  { %4508 = vrcp.f32 %v451_v39  ;;  %866 = vrot.lane.b32.xlu1 %v5168_v20, %s4907_s13 }
 0x374   :  { %3965 = vmatmul.msk.f32.gmra.mxu3 %vm394_vm2, %v476_v38  ;;  %v695_v38 = vsel %vm394_vm2, %v5432_v19, -inf }
 0x379   :  { %v4509_v45 = vpop.eup %4508 }
 0x37a   :  { %v454_v51 = vpop.xlane.xlu0 %453  ;;  %v477_v4 = vmul.f32 %v4509_v45, %v5341_v43  ;;  %v861_v14 = vpop.permute.xlu2 %860 }
 0x37b   :  { %4510 = vrcp.f32 %v454_v51 }
 0x37c   :  { %3966 = vmatmul.msk.f32.gmra.mxu3 %vm394_vm2, %v477_v4  ;;  %v692_v4 = vsel %vm394_vm2, %v5440_v47, -inf }
 0x381   :  { %v4511_v46 = vpop.eup %4510  ;;  %681 = vmax.xlane.f32.xlu2 %v680_v30 }
 0x382   :  { %v457_v56 = vpop.xlane.xlu1 %456  ;;  %v478_v58 = vmul.f32 %v4511_v46, %v5345_v54 }
 0x383   :  { %4512 = vrcp.f32 %v457_v56 }
 0x384   :  { %3967 = vmatmul.msk.f32.gmra.mxu3 %vm394_vm2, %v478_v58 }
 0x389   :  { %v4513_v53 = vpop.eup %4512 }
 0x38a   :  { %v479_v43 = vmul.f32 %v4513_v53, %v5349_v60  ;;  %v686_v60 = vsel %vm394_vm2, %v5407_v11, -inf }
 0x38c   :  { %3968 = vmatmul.msk.f32.gmra.mxu3 %vm394_vm2, %v479_v43 }
 0x38d   :  { %v1141_v1 = vpop.permute.xlu0 %1140 }
 0x393   :  { %684 = vmax.xlane.f32.xlu0 %v683_v0  ;;  %v674_v0 = vpop.f32.mrf.mxu0 }
 0x395   :  { %v1143_v15 = vpop.permute.xlu0 %1142 }
 0x399   :  { %1146 = vrot.lane.b32.xlu2 %v5102_v9, %s4908_s14 }
 0x39a   :  { %v1139_v54 = vpop.permute.xlu1 %1138 }
 0x39b   :  { %4029 = vmatmul.msk.f32.gmra.mxu0 %vm312_vm1, %v1139_v54  ;;  %v5471_v54 = vadd.f32 %v674_v0, %v5329_v5 }
 0x39d   :  { %687 = vmax.xlane.f32.xlu1 %v686_v60  ;;  %v865_v29 = vpop.permute.xlu0 %864 }
 0x3a1   :  { %1148 = vrot.lane.b32.xlu2 %v5168_v20, %s4908_s14 }
 0x3a3   :  { %4030 = vmatmul.msk.f32.gmra.mxu0 %vm312_vm1, %v1141_v1 }
 0x3a7   :  { %868 = vrot.lane.b32.xlu0 %v5183_v25, %s4907_s13 }
 0x3ab   :  { %4031 = vmatmul.msk.f32.gmra.mxu0 %vm312_vm1, %v1143_v15 }
 0x3af   :  { %1150 = vrot.lane.b32.xlu0 %v5183_v25, %s4908_s14  ;;  %v689_v25 = vsel %vm394_vm2, %v5427_v33, -inf }
 0x3b3   :  { %v460_v9 = vpop.xlane.xlu2 %459 }
 0x3b4   :  { %4514 = vrcp.f32 %v460_v9 }
 0x3b6   :  { %4334 = vrot.lane.b32.xlu1 %v5153_v17, %s4909_s3 }
 0x3ba   :  { %v4515_v20 = vpop.eup %4514 }
 0x3bb   :  { %v480_v22 = vmul.f32 %v4515_v20, %v5363_v3  ;;  %v1217_v20 = vpop.f32.mrf.mxu0 }
 0x3bd   :  { %3969 = vmatmul.msk.f32.gmra.mxu3 %vm394_vm2, %v480_v22  ;;  %v5487_v22 = vadd.f32 %v1217_v20, %v5275_v18 }
 0x3c5   :  { %v679_v8 = vpop.xlane.xlu1 %678 }
 0x3c6   :  { %v701_v3 = vsub.f32 %v5368_v26, %v679_v8  ;;  %v1241_v8 = vsel %vm394_vm2, %v5487_v22, -inf }
 0x3c8   :  { %v463_v37 = vpop.xlane.xlu0 %462  ;;  %v709_v45 = vmul.f32 1.442695, %v701_v3 }
 0x3c9   :  { %4516 = vrcp.f32 %v463_v37 }
 0x3ca   :  { %690 = vmax.xlane.f32.xlu2 %v689_v25 }
 0x3cd   :  { %v466_v21 = vpop.xlane.xlu1 %465 }
 0x3ce   :  { %4518 = vrcp.f32 %v466_v21 }
 0x3cf   :  { %v4517_v23 = vpop.eup %4516  ;;  %4520 = vpow2.f32 %v709_v45 }
 0x3d0   :  { %v481_v39 = vmul.f32 %v4517_v23, %v5370_v61 }
 0x3d2   :  { %696 = vmax.xlane.f32.xlu2 %v695_v38  ;;  %3970 = vmatmul.msk.f32.gmra.mxu3 %vm394_vm2, %v481_v39 }
 0x3d4   :  { %v4519_v51 = vpop.eup %4518 }
 0x3d5   :  { %v482_v26 = vmul.f32 %v4519_v51, %v5376_v2  ;;  %v5446_v30 = vpop.eup %4520  ;;  %v863_v2 = vpop.permute.xlu2 %862 }
 0x3d6   :  { %v725_v46 = vsel %vm394_vm2, %v5446_v30, 0.0 }
 0x3d9   :  { %693 = vmax.xlane.f32.xlu0 %v692_v4 }
 0x3da   :  { %3971 = vmatmul.msk.f32.gmra.mxu3 %vm394_vm2, %v482_v26 }
 0x3db   :  { %v1145_v61 = vpop.permute.xlu0 %1144 }
 0x3dc   :  { %4032 = vmatmul.msk.f32.gmra.mxu0 %vm312_vm1, %v1145_v61 }
 0x3e0   :  { %726 = vadd.xlane.f32.xlu1 %v725_v46 }
 0x3e2   :  { %4004 = vmatmul.msk.f32.vlgmr.msrb.gmra.mxu3 %vm312_vm1, %v5208_v42 }
 0x3e5   :  { %v867_v43 = vpop.permute.xlu1 %866 }
 0x3ea   :  { %4339 = vrot.lane.b32.xlu2 %v5096_v7, %s4909_s3  ;;  %4005 = vmatmul.msk.f32.gmra.mxu3 %vm312_vm1, %v5217_v50 }
 0x3ed   :  { %4344 = vrot.lane.b32.xlu0 %v5115_v10, %s4909_s3 }
 0x3ef   :  { %v5497_v38 = vpop.f32.mrf.mxu3 }
 0x3f2   :  { %4006 = vmatmul.msk.f32.gmra.mxu3 %vm312_vm1, %v5240_v35 }
 0x3f4   :  { %v682_v56 = vpop.xlane.xlu2 %681 }
 0x3f5   :  { %v702_v35 = vsub.f32 %v5392_v31, %v682_v56 }
 0x3f7   :  { %v711_v6 = vmul.f32 1.442695, %v702_v35  ;;  %v5504_v46 = vpop.f32.mrf.mxu3 }
 0x3f9   :  { %4349 = vrot.lane.b32.xlu1 %v5131_v12, %s4909_s3 }
 0x3fa   :  { %4007 = vmatmul.msk.f32.gmra.mxu3 %vm312_vm1, %v861_v14 }
 0x3fc   :  { %v1147_v42 = vpop.permute.xlu2 %1146 }
 0x3fd   :  { %4033 = vmatmul.msk.f32.gmra.mxu0 %vm312_vm1, %v1147_v42 }
 0x402   :  { %4008 = vmatmul.msk.f32.gmra.mxu3 %vm312_vm1, %v863_v2 }
 0x404   :  { %v1149_v58 = vpop.permute.xlu2 %1148 }
 0x405   :  { %4034 = vmatmul.msk.f32.gmra.mxu0 %vm312_vm1, %v1149_v58 }
 0x406   :  { %v685_v50 = vpop.xlane.xlu0 %684 }
 0x407   :  { %v703_v53 = vsub.f32 %v5402_v62, %v685_v50  ;;  %v698_v62 = vsel %vm394_vm2, %v5471_v54, -inf }
 0x409   :  { %v713_v57 = vmul.f32 1.442695, %v703_v53 }
 0x40a   :  { %4009 = vmatmul.msk.f32.gmra.mxu3 %vm312_vm1, %v865_v29 }
 0x40b   :  { %4522 = vpow2.f32 %v713_v57 }
 0x40c   :  { %4524 = vpow2.f32 %v711_v6 }
 0x410   :  { %v688_v60 = vpop.xlane.xlu1 %687 }
 0x411   :  { %v704_v1 = vsub.f32 %v5407_v11, %v688_v60  ;;  %v5477_v15 = vpop.eup %4522 }
 0x412   :  { %4010 = vmatmul.msk.f32.gmra.mxu3 %vm312_vm1, %v867_v43  ;;  %v731_v14 = vsel %vm394_vm2, %v5477_v15, 0.0  ;;  %v5481_v9 = vpop.eup %4524  ;;  %v5511_v43 = vpop.f32.mrf.mxu3 }
 0x413   :  { %699 = vmax.xlane.f32.xlu2 %v698_v62  ;;  %v715_v31 = vmul.f32 1.442695, %v704_v1  ;;  %v728_v11 = vsel %vm394_vm2, %v5481_v9, 0.0 }
 0x415   :  { %4526 = vpow2.f32 %v715_v31 }
 0x417   :  { %732 = vadd.xlane.f32.xlu0 %v731_v14 }
 0x419   :  { %v869_v16 = vpop.permute.xlu0 %868 }
 0x41a   :  { %4011 = vmatmul.msk.f32.gmra.mxu3 %vm312_vm1, %v869_v16  ;;  %v5517_v0 = vpop.f32.mrf.mxu3 }
 0x41b   :  { %729 = vadd.xlane.f32.xlu2 %v728_v11  ;;  %v5489_v13 = vpop.eup %4526 }
 0x41c   :  { %v734_v37 = vsel %vm394_vm2, %v5489_v13, 0.0 }
 0x421   :  { %v1151_v29 = vpop.permute.xlu0 %1150 }
 0x422   :  { %4035 = vmatmul.msk.f32.gmra.mxu0 %vm312_vm1, %v1151_v29  ;;  %v5519_v62 = vpop.f32.mrf.mxu3 }
 0x423   :  { %1242 = vmax.xlane.f32.xlu1 %v1241_v8  ;;  %735 = vadd.xlane.f32.xlu2 %v734_v37 }
 0x428   :  { %v4335_v25 = vpop.permute.xlu1 %4334 }
 0x429   :  { %v4336_v41 = vunpack.i.l.bf16 %v4335_v25  ;;  %v4337_v21 = vunpack.i.h.bf16 %v4335_v25 }
 0x42b   :  { %821 = vmatpush.msrb.mxu1 %v4336_v41 }
 0x42d   :  { %822 = vmatpush.msrb.mxu1 %v4337_v21 }
 0x43d   :  { %v691_v3 = vpop.xlane.xlu2 %690 }
 0x43e   :  { %v705_v23 = vsub.f32 %v5427_v33, %v691_v3 }
 0x440   :  { %v717_v39 = vmul.f32 1.442695, %v705_v23  ;;  %v5525_v29 = vpop.f32.mrf.mxu3 }
 0x442   :  { %4528 = vpow2.f32 %v717_v39 }
 0x445   :  { %v697_v45 = vpop.xlane.xlu2 %696 }
 0x446   :  { %v707_v51 = vsub.f32 %v5432_v19, %v697_v45 }
 0x448   :  { %v5500_v4 = vpop.eup %4528  ;;  %v721_v26 = vmul.f32 1.442695, %v707_v51 }
 0x449   :  { %v737_v61 = vsel %vm394_vm2, %v5500_v4, 0.0 }
 0x44a   :  { %4530 = vpow2.f32 %v721_v26  ;;  %738 = vadd.xlane.f32.xlu0 %v737_v61 }
 0x44c   :  { %v694_v2 = vpop.xlane.xlu0 %693 }
 0x44d   :  { %v706_v33 = vsub.f32 %v5440_v47, %v694_v2  ;;  %v4340_v56 = vpop.permute.xlu2 %4339 }
 0x44e   :  { %v4341_v42 = vunpack.i.l.bf16 %v4340_v56  ;;  %v4342_v19 = vunpack.i.h.bf16 %v4340_v56 }
 0x44f   :  { %v719_v58 = vmul.f32 1.442695, %v706_v33 }
 0x450   :  { %v5507_v50 = vpop.eup %4530  ;;  %823 = vmatpush.msrb.mxu1 %v4341_v42 }
 0x451   :  { %4532 = vpow2.f32 %v719_v58  ;;  %v743_v53 = vsel %vm394_vm2, %v5507_v50, 0.0 }
 0x452   :  { %744 = vadd.xlane.f32.xlu0 %v743_v53  ;;  %824 = vmatpush.msrb.mxu1 %v4342_v19 }
 0x453   :  { %v727_v1 = vpop.xlane.xlu1 %726 }
 0x454   :  { %4534 = vrcp.f32 %v727_v1 }
 0x455   :  { %v5529_v8 = vpop.f32.mrf.mxu3 }
 0x457   :  { %v5513_v35 = vpop.eup %4532 }
 0x458   :  { %v740_v47 = vsel %vm394_vm2, %v5513_v35, 0.0 }
 0x459   :  { %741 = vadd.xlane.f32.xlu2 %v740_v47 }
 0x45a   :  { %v4535_v14 = vpop.eup %4534 }
 0x45b   :  { %v757_v20 = vmul.f32 %v4535_v14, %v5446_v30 }
 0x45d   :  { %v5533_v37 = vpop.f32.mrf.mxu3 }
 0x45f   :  { %v4345_v57 = vpop.permute.xlu0 %4344 }
 0x460   :  { %v4346_v6 = vunpack.i.l.bf16 %v4345_v57  ;;  %v4347_v60 = vunpack.i.h.bf16 %v4345_v57 }
 0x462   :  { %825 = vmatpush.msrb.mxu1 %v4346_v6 }
 0x464   :  { %826 = vmatpush.msrb.mxu1 %v4347_v60 }
 0x465   :  { %v935_v21 = vpop.f32.mrf.mxu3 }
 0x466   :  { %v5541_v51 = vadd.f32 %v935_v21, %v5275_v18 }
 0x468   :  { %v959_v56 = vsel %vm394_vm2, %v5541_v51, -inf }
 0x46b   :  { %v4350_v31 = vpop.permute.xlu1 %4349 }
 0x46c   :  { %v4351_v16 = vunpack.i.l.bf16 %v4350_v31  ;;  %v4352_v11 = vunpack.i.h.bf16 %v4350_v31 }
 0x46d   :  { %v5544_v61 = vpop.f32.mrf.mxu3 }
 0x46e   :  { %827 = vmatpush.msrb.mxu1 %v4351_v16 }
 0x470   :  { %828 = vmatpush.msrb.mxu1 %v4352_v11 }
 0x471   :  { %4354 = vrot.lane.b32.xlu2 %v5153_v17, %s4910_s28  ;;  %3988 = vmatmul.msk.f32.vlgmr.msrb.gmra.mxu1 %vm394_vm2, %v757_v20 }
 0x479   :  { %4364 = vrot.lane.b32.xlu2 %v5153_v17, %s4911_s29 }
 0x481   :  { %4374 = vrot.lane.b32.xlu2 %v5096_v7, %s4911_s29 }
 0x486   :  { %v700_v30 = vpop.xlane.xlu2 %699 }
 0x487   :  { %v708_v25 = vsub.f32 %v5471_v54, %v700_v30 }
 0x489   :  { %v723_v41 = vmul.f32 1.442695, %v708_v25 }
 0x48a   :  { %v733_v39 = vpop.xlane.xlu0 %732 }
 0x48b   :  { %4536 = vpow2.f32 %v723_v41 }
 0x48e   :  { %v730_v3 = vpop.xlane.xlu2 %729 }
 0x48f   :  { %4538 = vrcp.f32 %v730_v3 }
 0x490   :  { %4540 = vrcp.f32 %v733_v39 }
 0x491   :  { %v5536_v23 = vpop.eup %4536 }
 0x492   :  { %v746_v17 = vsel %vm394_vm2, %v5536_v23, 0.0 }
 0x493   :  { %747 = vadd.xlane.f32.xlu0 %v746_v17 }
 0x495   :  { %v4539_v45 = vpop.eup %4538 }
 0x496   :  { %v1243_v26 = vpop.xlane.xlu1 %1242  ;;  %v758_v54 = vmul.f32 %v4539_v45, %v5481_v9  ;;  %v736_v33 = vpop.xlane.xlu2 %735 }
 0x497   :  { %v1265_v2 = vsub.f32 %v5487_v22, %v1243_v26  ;;  %v4541_v42 = vpop.eup %4540  ;;  %4542 = vrcp.f32 %v736_v33  ;;  %v941_v9 = vpop.f32.mrf.mxu3 }
 0x498   :  { %3989 = vmatmul.msk.f32.gmra.mxu1 %vm394_vm2, %v758_v54  ;;  %v759_v18 = vmul.f32 %v4541_v42, %v5477_v15  ;;  %v1220_v22 = vpop.f32.mrf.mxu0  ;;  %v5559_v60 = vadd.f32 %v941_v9, %v5292_v27 }
 0x499   :  { %v1273_v58 = vmul.f32 1.442695, %v1265_v2 }
 0x49a   :  { %v965_v1 = vsel %vm394_vm2, %v5559_v60, -inf }
 0x49b   :  { %960 = vmax.xlane.f32.xlu0 %v959_v56  ;;  %4544 = vpow2.f32 %v1273_v58 }
 0x49d   :  { %v4543_v19 = vpop.eup %4542 }
 0x49e   :  { %v760_v47 = vmul.f32 %v4543_v19, %v5489_v13 }
 0x49f   :  { %v944_v6 = vpop.f32.mrf.mxu3 }
 0x4a0   :  { %3990 = vmatmul.msk.f32.gmra.mxu1 %vm394_vm2, %v759_v18  ;;  %v1223_v15 = vpop.f32.mrf.mxu0 }
 0x4a1   :  { %v5552_v53 = vpop.eup %4544  ;;  %v5566_v13 = vadd.f32 %v1223_v15, %v5292_v27 }
 0x4a2   :  { %v1289_v57 = vsel %vm394_vm2, %v5552_v53, 0.0 }
 0x4a3   :  { %v1247_v14 = vsel %vm394_vm2, %v5566_v13, -inf }
 0x4a7   :  { %v947_v31 = vpop.f32.mrf.mxu3 }
 0x4a8   :  { %3991 = vmatmul.msk.f32.gmra.mxu1 %vm394_vm2, %v760_v47  ;;  %v5572_v16 = vpop.f32.mrf.mxu0 }
 0x4aa   :  { %1290 = vadd.xlane.f32.xlu2 %v1289_v57 }
 0x4af   :  { %4359 = vrot.lane.b32.xlu0 %v5096_v7, %s4910_s28  ;;  %v5575_v7 = vadd.f32 %v944_v6, %v5300_v49  ;;  %v5579_v27 = vpop.f32.mrf.mxu3 }
 0x4b0   :  { %v1229_v30 = vpop.f32.mrf.mxu0 }
 0x4b1   :  { %v968_v20 = vsel %vm394_vm2, %v5575_v7, -inf  ;;  %v5584_v41 = vadd.f32 %v1229_v30, %v5308_v55 }
 0x4b2   :  { %966 = vmax.xlane.f32.xlu2 %v965_v1  ;;  %v5604_v1 = vadd.f32 %v947_v31, %v5308_v55 }
 0x4b3   :  { %v1253_v3 = vsel %vm394_vm2, %v5584_v41, -inf }
 0x4b7   :  { %4379 = vrot.lane.b32.xlu0 %v5131_v12, %s4910_s28  ;;  %v953_v39 = vpop.f32.mrf.mxu3 }
 0x4b8   :  { %v5593_v45 = vadd.f32 %v953_v39, %v5322_v63 }
 0x4ba   :  { %1248 = vmax.xlane.f32.xlu2 %v1247_v14  ;;  %v977_v54 = vsel %vm394_vm2, %v5593_v45, -inf  ;;  %v1232_v14 = vpop.f32.mrf.mxu0 }
 0x4bd   :  { %v739_v11 = vpop.xlane.xlu0 %738 }
 0x4be   :  { %4546 = vrcp.f32 %v739_v11  ;;  %v5609_v11 = vadd.f32 %v1232_v14, %v5315_v59  ;;  %v5641_v14 = vadd.f32 %v5572_v16, %v5300_v49 }
 0x4bf   :  { %4384 = vrot.lane.b32.xlu0 %v5115_v10, %s4911_s29  ;;  %v956_v30 = vpop.f32.mrf.mxu3 }
 0x4c2   :  { %969 = vmax.xlane.f32.xlu2 %v968_v20  ;;  %v1256_v20 = vsel %vm394_vm2, %v5609_v11, -inf  ;;  %v1235_v16 = vpop.f32.mrf.mxu0 }
 0x4c4   :  { %v4547_v25 = vpop.eup %4546 }
 0x4c5   :  { %v761_v21 = vmul.f32 %v4547_v25, %v5500_v4  ;;  %v745_v26 = vpop.xlane.xlu0 %744 }
 0x4c7   :  { %4389 = vrot.lane.b32.xlu0 %v5131_v12, %s4911_s29  ;;  %3992 = vmatmul.msk.f32.gmra.mxu1 %vm394_vm2, %v761_v21 }
 0x4ca   :  { %1254 = vmax.xlane.f32.xlu2 %v1253_v3 }
 0x4cc   :  { %v742_v17 = vpop.xlane.xlu2 %741 }
 0x4cd   :  { %4548 = vrcp.f32 %v742_v17 }
 0x4ce   :  { %4550 = vrcp.f32 %v745_v26 }
 0x4d2   :  { %978 = vmax.xlane.f32.xlu2 %v977_v54 }
 0x4d3   :  { %v4549_v4 = vpop.eup %4548 }
 0x4d4   :  { %v4355_v12 = vpop.permute.xlu2 %4354  ;;  %v762_v2 = vmul.f32 %v4549_v4, %v5513_v35  ;;  %v4551_v42 = vpop.eup %4550  ;;  %v1221_v35 = vadd.f32 %v1220_v22, %v5284_v34  ;;  %v5614_v22 = vadd.f32 %v956_v30, %v5329_v5  ;;  %v1250_v30 = vsel %vm394_vm2, %v5641_v14, -inf }
 0x4d5   :  { %v4356_v33 = vunpack.i.l.bf16 %v4355_v12  ;;  %v4357_v56 = vunpack.i.h.bf16 %v4355_v12  ;;  %v763_v18 = vmul.f32 %v4551_v42, %v5507_v50  ;;  %v971_v50 = vsel %vm394_vm2, %v5604_v1, -inf }
 0x4d6   :  { %3993 = vmatmul.msk.f32.gmra.mxu1 %vm394_vm2, %v762_v2  ;;  %v1244_v15 = vsel %vm394_vm2, %v1221_v35, -inf  ;;  %v980_v55 = vsel %vm394_vm2, %v5614_v22, -inf }
 0x4d7   :  { %1103 = vmatpush.msrb.mxu2 %v4356_v33 }
 0x4d9   :  { %1104 = vmatpush.msrb.mxu2 %v4357_v56 }
 0x4dc   :  { %v4365_v58 = vpop.permute.xlu2 %4364 }
 0x4dd   :  { %v4366_v9 = vunpack.i.l.bf16 %v4365_v58  ;;  %v4367_v19 = vunpack.i.h.bf16 %v4365_v58 }
 0x4de   :  { %3994 = vmatmul.msk.f32.gmra.mxu1 %vm394_vm2, %v763_v18 }
 0x4df   :  { %1385 = vmatpush.msra.mxu1 %v4366_v9 }
 0x4e1   :  { %1386 = vmatpush.msra.mxu1 %v4367_v19 }
 0x4e4   :  { %v4375_v47 = vpop.permute.xlu2 %4374 }
 0x4e5   :  { %v4376_v57 = vunpack.i.l.bf16 %v4375_v47  ;;  %v4377_v6 = vunpack.i.h.bf16 %v4375_v47 }
 0x4e7   :  { %1387 = vmatpush.msra.mxu1 %v4376_v57 }
 0x4e9   :  { %1388 = vmatpush.msra.mxu1 %v4377_v6 }
 0x4f1   :  { %1245 = vmax.xlane.f32.xlu0 %v1244_v15  ;;  %v5635_v15 = vadd.f32 %v5544_v61, %v5284_v34  ;;  %v5648_v34 = vadd.f32 %v5579_v27, %v5315_v59 }
 0x4f3   :  { %v974_v49 = vsel %vm394_vm2, %v5648_v34, -inf }
 0x4f9   :  { %972 = vmax.xlane.f32.xlu0 %v971_v50 }
 0x501   :  { %1257 = vmax.xlane.f32.xlu0 %v1256_v20 }
 0x506   :  { %v748_v25 = vpop.xlane.xlu0 %747 }
 0x507   :  { %4552 = vrcp.f32 %v748_v25 }
 0x509   :  { %981 = vmax.xlane.f32.xlu0 %v980_v55 }
 0x50d   :  { %v4553_v31 = vpop.eup %4552 }
 0x50e   :  { %v961_v21 = vpop.xlane.xlu0 %960  ;;  %v764_v3 = vmul.f32 %v4553_v31, %v5536_v23 }
 0x50f   :  { %v983_v39 = vsub.f32 %v5541_v51, %v961_v21 }
 0x510   :  { %3995 = vmatmul.msk.f32.gmra.mxu1 %vm394_vm2, %v764_v3  ;;  %v5658_v3 = vadd.f32 %v1235_v16, %v5322_v63 }
 0x511   :  { %v991_v17 = vmul.f32 1.442695, %v983_v39 }
 0x513   :  { %4554 = vpow2.f32 %v991_v17 }
 0x519   :  { %v5621_v26 = vpop.eup %4554 }
 0x51a   :  { %v1007_v54 = vsel %vm394_vm2, %v5621_v26, 0.0 }
 0x51b   :  { %1008 = vadd.xlane.f32.xlu1 %v1007_v54 }
 0x51d   :  { %v1291_v23 = vpop.xlane.xlu2 %1290 }
 0x51e   :  { %4556 = vrcp.f32 %v1291_v23 }
 0x521   :  { %v4360_v4 = vpop.permute.xlu0 %4359 }
 0x522   :  { %v4361_v12 = vunpack.i.l.bf16 %v4360_v4  ;;  %v4362_v2 = vunpack.i.h.bf16 %v4360_v4  ;;  %v1259_v4 = vsel %vm394_vm2, %v5658_v3, -inf }
 0x524   :  { %1105 = vmatpush.msrb.mxu2 %v4361_v12  ;;  %v4557_v18 = vpop.eup %4556  ;;  %v1238_v12 = vpop.f32.mrf.mxu0 }
 0x525   :  { %v1321_v47 = vmul.f32 %v4557_v18, %v5552_v53  ;;  %v5631_v57 = vpop.xlane.xlu2 %966  ;;  %v5669_v23 = vadd.f32 %v1238_v12, %v5329_v5 }
 0x526   :  { %1106 = vmatpush.msrb.mxu2 %v4362_v2 }
 0x529   :  { %v5625_v33 = vpop.permute.xlu0 %4379 }
 0x52d   :  { %v1249_v6 = vpop.xlane.xlu2 %1248 }
 0x52e   :  { %v1267_v27 = vsub.f32 %v5566_v13, %v1249_v6 }
 0x530   :  { %v1277_v2 = vmul.f32 1.442695, %v1267_v27 }
 0x531   :  { %v4385_v56 = vpop.permute.xlu0 %4384 }
 0x532   :  { %v4386_v51 = vunpack.i.l.bf16 %v4385_v56  ;;  %v4387_v42 = vunpack.i.h.bf16 %v4385_v56 }
 0x534   :  { %4369 = vrot.lane.b32.xlu1 %v5115_v10, %s4910_s28  ;;  %1389 = vmatpush.msra.mxu1 %v4386_v51  ;;  %v962_v10 = vsel %vm394_vm2, %v5635_v15, -inf }
 0x535   :  { %v970_v50 = vpop.xlane.xlu2 %969 }
 0x536   :  { %1390 = vmatpush.msra.mxu1 %v4387_v42  ;;  %v986_v25 = vsub.f32 %v5575_v7, %v970_v50  ;;  %v1262_v42 = vsel %vm394_vm2, %v5669_v23, -inf }
 0x538   :  { %v997_v31 = vmul.f32 1.442695, %v986_v25 }
 0x539   :  { %v4390_v58 = vpop.permute.xlu0 %4389 }
 0x53a   :  { %v4391_v9 = vunpack.i.l.bf16 %v4390_v58  ;;  %v4392_v19 = vunpack.i.h.bf16 %v4390_v58 }
 0x53c   :  { %1391 = vmatpush.msra.mxu1 %v4391_v9 }
 0x53d   :  { %v1255_v61 = vpop.xlane.xlu2 %1254 }
 0x53e   :  { %1392 = vmatpush.msra.mxu1 %v4392_v19  ;;  %v1269_v21 = vsub.f32 %v5584_v41, %v1255_v61 }
 0x53f   :  { %4036 = vmatmul.msk.f32.vlgmr.msra.gmra.mxu1 %vm394_vm2, %v1321_v47 }
 0x540   :  { %v1281_v59 = vmul.f32 1.442695, %v1269_v21 }
 0x545   :  { %v979_v39 = vpop.xlane.xlu2 %978 }
 0x546   :  { %v989_v41 = vsub.f32 %v5593_v45, %v979_v39  ;;  %v830_v39 = vpop.f32.mrf.mxu1 }
 0x548   :  { %v1003_v13 = vmul.f32 1.442695, %v989_v41  ;;  %v985_v41 = vsub.f32 %v5559_v60, %v5631_v57 }
 0x54e   :  { %v833_v12 = vpop.f32.mrf.mxu1 }
 0x55e   :  { %963 = vmax.xlane.f32.xlu1 %v962_v10 }
 0x564   :  { %v1246_v53 = vpop.xlane.xlu0 %1245 }
 0x565   :  { %v1266_v20 = vsub.f32 %v1221_v35, %v1246_v53 }
 0x566   :  { %1251 = vmax.xlane.f32.xlu1 %v1250_v30 }
 0x567   :  { %v1275_v55 = vmul.f32 1.442695, %v1266_v20 }
 0x569   :  { %4558 = vpow2.f32 %v1275_v55 }
 0x56a   :  { %4560 = vpow2.f32 %v997_v31 }
 0x56b   :  { %4562 = vpow2.f32 %v1281_v59  ;;  %v4382_v59 = vunpack.i.h.bf16 %v5625_v33 }
 0x56c   :  { %v973_v54 = vpop.xlane.xlu0 %972  ;;  %4564 = vpow2.f32 %v1277_v2 }
 0x56d   :  { %v987_v56 = vsub.f32 %v5604_v1, %v973_v54  ;;  %4566 = vpow2.f32 %v1003_v13 }
 0x56e   :  { %975 = vmax.xlane.f32.xlu1 %v974_v49 }
 0x56f   :  { %v5652_v35 = vpop.eup %4558  ;;  %v999_v58 = vmul.f32 1.442695, %v987_v56 }
 0x570   :  { %v1292_v7 = vsel %vm394_vm2, %v5652_v35, 0.0  ;;  %v5661_v17 = vpop.eup %4560 }
 0x571   :  { %1293 = vadd.xlane.f32.xlu0 %v1292_v7  ;;  %v1016_v63 = vsel %vm394_vm2, %v5661_v17, 0.0  ;;  %v5672_v51 = vpop.eup %4562  ;;  %4568 = vpow2.f32 %v999_v58  ;;  %v4381_v7 = vunpack.i.l.bf16 %v5625_v33  ;;  %v836_v33 = vpop.f32.mrf.mxu1 }
 0x572   :  { %v1301_v18 = vsel %vm394_vm2, %v5672_v51, 0.0  ;;  %v5678_v5 = vpop.eup %4564 }
 0x573   :  { %v5681_v19 = vpop.eup %4566  ;;  %v1295_v1 = vsel %vm394_vm2, %v5678_v5, 0.0 }
 0x574   :  { %v1258_v45 = vpop.xlane.xlu0 %1257  ;;  %v1025_v6 = vsel %vm394_vm2, %v5681_v19, 0.0 }
 0x575   :  { %v1270_v9 = vsub.f32 %v5609_v11, %v1258_v45 }
 0x576   :  { %1260 = vmax.xlane.f32.xlu1 %v1259_v4 }
 0x577   :  { %v1283_v47 = vmul.f32 1.442695, %v1270_v9  ;;  %v5687_v50 = vpop.eup %4568 }
 0x578   :  { %v1019_v11 = vsel %vm394_vm2, %v5687_v50, 0.0 }
 0x579   :  { %1017 = vadd.xlane.f32.xlu0 %v1016_v63  ;;  %4570 = vpow2.f32 %v1283_v47  ;;  %v995_v63 = vmul.f32 1.442695, %v985_v41  ;;  %v839_v9 = vpop.f32.mrf.mxu1 }
 0x57c   :  { %v982_v10 = vpop.xlane.xlu0 %981 }
 0x57d   :  { %v990_v53 = vsub.f32 %v5614_v22, %v982_v10 }
 0x57e   :  { %1263 = vmax.xlane.f32.xlu1 %v1262_v42 }
 0x57f   :  { %v1005_v20 = vmul.f32 1.442695, %v990_v53  ;;  %v5692_v30 = vpop.eup %4570 }
 0x580   :  { %v1304_v25 = vsel %vm394_vm2, %v5692_v30, 0.0 }
 0x581   :  { %1302 = vadd.xlane.f32.xlu0 %v1301_v18  ;;  %4572 = vpow2.f32 %v1005_v20 }
 0x586   :  { %1296 = vadd.xlane.f32.xlu1 %v1295_v1 }
 0x587   :  { %v5696_v55 = vpop.eup %4572 }
 0x588   :  { %v1028_v61 = vsel %vm394_vm2, %v5696_v55, 0.0 }
 0x589   :  { %1026 = vadd.xlane.f32.xlu0 %v1025_v6 }
 0x58e   :  { %1020 = vadd.xlane.f32.xlu1 %v1019_v11  ;;  %v1009_v31 = vpop.xlane.xlu1 %1008  ;;  %v842_v11 = vpop.f32.mrf.mxu1 }
 0x58f   :  { %4574 = vrcp.f32 %v1009_v31 }
 0x595   :  { %v4575_v21 = vpop.eup %4574 }
 0x596   :  { %1305 = vadd.xlane.f32.xlu1 %v1304_v25  ;;  %v1039_v27 = vmul.f32 %v4575_v21, %v5621_v26 }
 0x59e   :  { %1029 = vadd.xlane.f32.xlu1 %v1028_v61 }
 0x5a6   :  { %v4370_v22 = vpop.permute.xlu1 %4369 }
 0x5a7   :  { %v4371_v49 = vunpack.i.l.bf16 %v4370_v22  ;;  %v4372_v16 = vunpack.i.h.bf16 %v4370_v22 }
 0x5a9   :  { %1107 = vmatpush.msrb.mxu2 %v4371_v49 }
 0x5ab   :  { %1108 = vmatpush.msrb.mxu2 %v4372_v16 }
 0x5ad   :  { %1109 = vmatpush.msrb.mxu2 %v4381_v7 }
 0x5af   :  { %1110 = vmatpush.msrb.mxu2 %v4382_v59 }
 0x5b0   :  { %4012 = vmatmul.msk.f32.vlgmr.msrb.gmra.mxu2 %vm394_vm2, %v1039_v27 }
 0x5d1   :  { %v964_v54 = vpop.xlane.xlu1 %963 }
 0x5d2   :  { %v984_v4 = vsub.f32 %v5635_v15, %v964_v54 }
 0x5d4   :  { %v993_v2 = vmul.f32 1.442695, %v984_v4 }
 0x5d6   :  { %4576 = vpow2.f32 %v993_v2 }
 0x5d7   :  { %4578 = vpow2.f32 %v995_v63 }
 0x5d9   :  { %v1252_v13 = vpop.xlane.xlu1 %1251 }
 0x5da   :  { %v1268_v26 = vsub.f32 %v5641_v14, %v1252_v13 }
 0x5dc   :  { %v5707_v56 = vpop.eup %4576  ;;  %v1279_v45 = vmul.f32 1.442695, %v1268_v26 }
 0x5dd   :  { %v1010_v42 = vsel %vm394_vm2, %v5707_v56, 0.0  ;;  %v5712_v58 = vpop.eup %4578 }
 0x5de   :  { %1011 = vadd.xlane.f32.xlu2 %v1010_v42  ;;  %4580 = vpow2.f32 %v1279_v45  ;;  %v1013_v18 = vsel %vm394_vm2, %v5712_v58, 0.0 }
 0x5e1   :  { %v976_v15 = vpop.xlane.xlu1 %975 }
 0x5e2   :  { %v988_v60 = vsub.f32 %v5648_v34, %v976_v15 }
 0x5e4   :  { %v1294_v57 = vpop.xlane.xlu0 %1293  ;;  %v1001_v14 = vmul.f32 1.442695, %v988_v60  ;;  %v5717_v47 = vpop.eup %4580 }
 0x5e5   :  { %4582 = vrcp.f32 %v1294_v57  ;;  %v1298_v34 = vsel %vm394_vm2, %v5717_v47, 0.0 }
 0x5e6   :  { %1014 = vadd.xlane.f32.xlu2 %v1013_v18  ;;  %4584 = vpow2.f32 %v1001_v14 }
 0x5e9   :  { %v1261_v1 = vpop.xlane.xlu1 %1260 }
 0x5ea   :  { %v1271_v10 = vsub.f32 %v5658_v3, %v1261_v1 }
 0x5eb   :  { %v4583_v6 = vpop.eup %4582 }
 0x5ec   :  { %v1322_v53 = vmul.f32 %v4583_v6, %v5652_v35  ;;  %v1285_v20 = vmul.f32 1.442695, %v1271_v10  ;;  %v5724_v61 = vpop.eup %4584  ;;  %v845_v35 = vpop.f32.mrf.mxu1 }
 0x5ed   :  { %v1022_v3 = vsel %vm394_vm2, %v5724_v61, 0.0  ;;  %v1018_v13 = vpop.xlane.xlu0 %1017 }
 0x5ee   :  { %1299 = vadd.xlane.f32.xlu2 %v1298_v34  ;;  %4037 = vmatmul.msk.f32.gmra.mxu1 %vm394_vm2, %v1322_v53  ;;  %4586 = vpow2.f32 %v1285_v20 }
 0x5f1   :  { %v1264_v25 = vpop.xlane.xlu1 %1263 }
 0x5f2   :  { %v1272_v31 = vsub.f32 %v5669_v23, %v1264_v25 }
 0x5f4   :  { %v1287_v22 = vmul.f32 1.442695, %v1272_v31  ;;  %v5729_v16 = vpop.eup %4586  ;;  %v848_v27 = vpop.f32.mrf.mxu1 }
 0x5f5   :  { %v1307_v7 = vsel %vm394_vm2, %v5729_v16, 0.0  ;;  %v1303_v15 = vpop.xlane.xlu0 %1302 }
 0x5f6   :  { %4588 = vpow2.f32 %v1287_v22  ;;  %1023 = vadd.xlane.f32.xlu2 %v1022_v3  ;;  %v4274_v22 = vld [vmem:[%s7220_s5 + $0x38] sm:$0xff]  }
 0x5f9   :  { %v1297_v49 = vpop.xlane.xlu1 %1296 }
 0x5fa   :  { %4590 = vrcp.f32 %v1297_v49  ;;  %v4212_v49 = vunpack.c.l.bf16 %v4274_v22 }
 0x5fc   :  { %v5731_v21 = vpop.eup %4588  ;;  %v851_v4 = vpop.f32.mrf.mxu1 }
 0x5fd   :  { %v1310_v23 = vsel %vm394_vm2, %v5731_v21, 0.0 }
 0x5fe   :  { %1308 = vadd.xlane.f32.xlu2 %v1307_v7  ;;  %1311 = vadd.xlane.f32.xlu0 %v1310_v23  ;;  %v4273_v23 = vld [vmem:[%s7220_s5 + $0x30] sm:$0xff]  }
 0x600   :  { %v4591_v59 = vpop.eup %4590 }
 0x601   :  { %v1323_v54 = vmul.f32 %v4591_v59, %v5678_v5  ;;  %v1021_v45 = vpop.xlane.xlu1 %1020 }
 0x603   :  { %4038 = vmatmul.msk.f32.gmra.mxu1 %vm394_vm2, %v1323_v54 }
 0x604   :  { %v1394_v41 = vpop.f32.mrf.mxu1 }
 0x612   :  { %1490 = vrot.lane.b32.xlu0 %v1394_v41, %s4912_s11 }
 0x616   :  { %1426 = vrot.lane.b32.xlu2 %v830_v39, %s4898_s10 }
 0x61a   :  { %1428 = vrot.lane.b32.xlu0 %v833_v12, %s4898_s10 }
 0x622   :  { %1430 = vrot.lane.b32.xlu0 %v836_v33, %s4898_s10 }
 0x62a   :  { %1432 = vrot.lane.b32.xlu0 %v839_v9, %s4898_s10 }
 0x632   :  { %1434 = vrot.lane.b32.xlu0 %v842_v11, %s4898_s10 }
 0x633   :  { %v1112_v2 = vpop.f32.mrf.mxu2 }
 0x634   :  { %1458 = vrot.lane.b32.xlu1 %v1112_v2, %s4913_s4 }
 0x63a   :  { %1436 = vrot.lane.b32.xlu0 %v845_v35, %s4898_s10  ;;  %v4213_v35 = vunpack.c.h.bf16 %v4274_v22 }
 0x63c   :  { %1577 = vmatpush.msra.mxu3 %v4213_v35 }
 0x63e   :  { %1578 = vmatpush.msra.mxu3 %v4212_v49 }
 0x642   :  { %1438 = vrot.lane.b32.xlu0 %v848_v27, %s4898_s10  ;;  %v4209_v27 = vunpack.c.h.bf16 %v4273_v23 }
 0x644   :  { %1579 = vmatpush.msra.mxu3 %v4209_v27 }
 0x64a   :  { %1440 = vrot.lane.b32.xlu0 %v851_v4, %s4898_s10  ;;  %v4208_v4 = vunpack.c.l.bf16 %v4273_v23 }
 0x64c   :  { %1580 = vmatpush.msra.mxu3 %v4208_v4 }
 0x651   :  { %v1012_v5 = vpop.xlane.xlu2 %1011 }
 0x652   :  { %4592 = vrcp.f32 %v1012_v5 }
 0x658   :  { %v4593_v39 = vpop.eup %4592 }
 0x659   :  { %v1015_v12 = vpop.xlane.xlu2 %1014  ;;  %v1040_v63 = vmul.f32 %v4593_v39, %v5707_v56 }
 0x65a   :  { %4594 = vrcp.f32 %v1015_v12 }
 0x65b   :  { %4013 = vmatmul.msk.f32.gmra.mxu2 %vm394_vm2, %v1040_v63  ;;  %4596 = vrcp.f32 %v1018_v13 }
 0x660   :  { %v4595_v26 = vpop.eup %4594 }
 0x661   :  { %v1300_v33 = vpop.xlane.xlu2 %1299  ;;  %v1041_v42 = vmul.f32 %v4595_v26, %v5712_v58  ;;  %v4597_v60 = vpop.eup %4596 }
 0x662   :  { %4598 = vrcp.f32 %v1300_v33  ;;  %v1042_v56 = vmul.f32 %v4597_v60, %v5661_v17  ;;  %v1306_v58 = vpop.xlane.xlu1 %1305  ;;  %v1027_v17 = vpop.xlane.xlu0 %1026 }
 0x663   :  { %4014 = vmatmul.msk.f32.gmra.mxu2 %vm394_vm2, %v1041_v42  ;;  %4600 = vrcp.f32 %v1303_v15 }
 0x664   :  { %4602 = vrcp.f32 %v1021_v45 }
 0x665   :  { %4604 = vrcp.f32 %v1306_v58 }
 0x668   :  { %v4599_v57 = vpop.eup %4598 }
 0x669   :  { %v1324_v18 = vmul.f32 %v4599_v57, %v5717_v47  ;;  %v1024_v9 = vpop.xlane.xlu2 %1023  ;;  %v4601_v1 = vpop.eup %4600 }
 0x66a   :  { %v4603_v6 = vpop.eup %4602  ;;  %4606 = vrcp.f32 %v1024_v9  ;;  %v1325_v53 = vmul.f32 %v4601_v1, %v5672_v51 }
 0x66b   :  { %4015 = vmatmul.msk.f32.gmra.mxu2 %vm394_vm2, %v1042_v56  ;;  %v1397_v14 = vpop.f32.mrf.mxu1  ;;  %4039 = vmatmul.msk.f32.gmra.mxu1 %vm394_vm2, %v1324_v18  ;;  %v1043_v10 = vmul.f32 %v4603_v6, %v5687_v50  ;;  %v4605_v47 = vpop.eup %4604  ;;  %4608 = vrcp.f32 %v1027_v17  ;;  %v5798_v18 = vld [vmem:[#allocation7 + $0x3] ss:$0 sm:$0xff] }
 0x66c   :  { %1492 = vrot.lane.b32.xlu1 %v1397_v14, %s4912_s11  ;;  %v1326_v25 = vmul.f32 %v4605_v47, %v5692_v30  ;;  %v1030_v50 = vpop.xlane.xlu1 %1029 }
 0x670   :  { %v4607_v11 = vpop.eup %4606 }
 0x671   :  { %v1309_v34 = vpop.xlane.xlu2 %1308  ;;  %v1044_v20 = vmul.f32 %v4607_v11, %v5724_v61  ;;  %v4609_v51 = vpop.eup %4608 }
 0x672   :  { %4610 = vrcp.f32 %v1309_v34  ;;  %v1312_v31 = vpop.xlane.xlu0 %1311  ;;  %v1045_v30 = vmul.f32 %v4609_v51, %v5681_v19 }
 0x673   :  { %4016 = vmatmul.msk.f32.gmra.mxu2 %vm394_vm2, %v1043_v10  ;;  %4040 = vmatmul.msk.f32.gmra.mxu1 %vm394_vm2, %v1325_v53  ;;  %4612 = vrcp.f32 %v1030_v50 }
 0x674   :  { %4614 = vrcp.f32 %v1312_v31 }
 0x678   :  { %v4611_v3 = vpop.eup %4610 }
 0x679   :  { %v1327_v61 = vmul.f32 %v4611_v3, %v5729_v16  ;;  %v4613_v59 = vpop.eup %4612  ;;  %v1427_v16 = vpop.permute.xlu2 %1426 }
 0x67a   :  { %v4615_v54 = vpop.eup %4614  ;;  %v1046_v41 = vmul.f32 %v4613_v59, %v5696_v55  ;;  %v1514_v2 = vsel %vm312_vm1, %v5497_v38, %v1427_v16 }
 0x67b   :  { %4017 = vmatmul.msk.f32.gmra.mxu2 %vm394_vm2, %v1044_v20  ;;  %4041 = vmatmul.msk.f32.gmra.mxu1 %vm394_vm2, %v1326_v25  ;;  %v1328_v19 = vmul.f32 %v4615_v54, %v5731_v21 }
 0x680   :  { %v1400_v7 = vpop.f32.mrf.mxu1 }
 0x681   :  { %1494 = vrot.lane.b32.xlu1 %v1400_v7, %s4912_s11 }
 0x683   :  { %4018 = vmatmul.msk.f32.gmra.mxu2 %vm394_vm2, %v1045_v30  ;;  %4042 = vmatmul.msk.f32.gmra.mxu1 %vm394_vm2, %v1327_v61 }
 0x684   :  { %v1491_v39 = vpop.permute.xlu0 %1490 }
 0x68b   :  { %4019 = vmatmul.msk.f32.gmra.mxu2 %vm394_vm2, %v1046_v41  ;;  %4043 = vmatmul.msk.f32.gmra.mxu1 %vm394_vm2, %v1328_v19 }
 0x68c   :  { %v1429_v6 = vpop.permute.xlu0 %1428 }
 0x68d   :  { %v1515_v10 = vsel %vm312_vm1, %v5504_v46, %v1429_v6 }
 0x694   :  { %v1431_v11 = vpop.permute.xlu0 %1430 }
 0x69c   :  { %v1433_v46 = vpop.permute.xlu0 %1432 }
 0x69d   :  { %v1517_v3 = vsel %vm312_vm1, %v5517_v0, %v1433_v46 }
 0x6a4   :  { %v1435_v22 = vpop.permute.xlu0 %1434 }
 0x6a5   :  { %v1518_v30 = vsel %vm312_vm1, %v5519_v62, %v1435_v22 }
 0x6a6   :  { %v1459_v5 = vpop.permute.xlu1 %1458 }
 0x6a7   :  { %v1523_v12 = vsel %vm1522_vm3, %v1514_v2, %v1459_v5 }
 0x6a8   :  { %v1532_v63 = vsel %vm1531_vm4, %v1523_v12, %v1491_v39 }
 0x6a9   :  { %4044 = vmatmul.msk.f32.vlgmr.msra.gmra.mxu3 %vm122_vm0, %v1532_v63 }
 0x6ac   :  { %v1437_v61 = vpop.permute.xlu0 %1436 }
 0x6ad   :  { %v1519_v0 = vsel %vm312_vm1, %v5525_v29, %v1437_v61  ;;  %v4276_v61 = vld [vmem:[%s7220_s5 + $0x48] sm:$0xff]  }
 0x6b4   :  { %v1439_v16 = vpop.permute.xlu0 %1438 }
 0x6b5   :  { %v1520_v2 = vsel %vm312_vm1, %v5529_v8, %v1439_v16  ;;  %v4914_v8 = vmov 32.0  }
 0x6b6   :  { %4616 = vrcp.f32 %v4914_v8 }
 0x6bc   :  { %v1441_v29 = vpop.permute.xlu0 %1440 }
 0x6de   :  { %v1115_v55 = vpop.f32.mrf.mxu2  ;;  %v1493_v17 = vpop.permute.xlu1 %1492 }
 0x6df   :  { %1460 = vrot.lane.b32.xlu2 %v1115_v55, %s4913_s4  ;;  %v1521_v55 = vsel %vm312_vm1, %v5533_v37, %v1441_v29 }
 0x6e6   :  { %v1118_v21 = vpop.f32.mrf.mxu2 }
 0x6e7   :  { %1462 = vrot.lane.b32.xlu2 %v1118_v21, %s4913_s4 }
 0x6e8   :  { %v1403_v13 = vpop.f32.mrf.mxu1 }
 0x6e9   :  { %1496 = vrot.lane.b32.xlu1 %v1403_v13, %s4912_s11 }
 0x6ee   :  { %v1121_v26 = vpop.f32.mrf.mxu2 }
 0x6ef   :  { %1464 = vrot.lane.b32.xlu2 %v1121_v26, %s4913_s4 }
 0x6f0   :  { %v1406_v38 = vpop.f32.mrf.mxu1 }
 0x6f1   :  { %1498 = vrot.lane.b32.xlu1 %v1406_v38, %s4912_s11  ;;  %v4617_v38 = vpop.eup %4616 }
 0x6f2   :  { %vm1645_vm5 = vweird.f32 %v4617_v38 }
 0x6f3   :  { %v1495_v25 = vpop.permute.xlu1 %1494 }
 0x6f6   :  { %v1124_v33 = vpop.f32.mrf.mxu2 }
 0x6f7   :  { %1466 = vrot.lane.b32.xlu2 %v1124_v33, %s4913_s4  ;;  %v1641_v33 = vmul.f32 32.0, %v4617_v38 }
 0x6f8   :  { %v1409_v42 = vpop.f32.mrf.mxu1 }
 0x6f9   :  { %1500 = vrot.lane.b32.xlu1 %v1409_v42, %s4912_s11  ;;  %v1642_v42 = vsub.f32 1.0, %v1641_v33 }
 0x6fe   :  { %v1127_v45 = vpop.f32.mrf.mxu2 }
 0x6ff   :  { %1468 = vrot.lane.b32.xlu2 %v1127_v45, %s4913_s4  ;;  %v1643_v45 = vmul.f32 %v4617_v38, %v1642_v42 }
 0x700   :  { %v1412_v15 = vpop.f32.mrf.mxu1 }
 0x701   :  { %1502 = vrot.lane.b32.xlu1 %v1412_v15, %s4912_s11  ;;  %v1644_v15 = vadd.f32 %v4617_v38, %v1643_v45 }
 0x706   :  { %v1130_v60 = vpop.f32.mrf.mxu2 }
 0x707   :  { %1470 = vrot.lane.b32.xlu2 %v1130_v60, %s4913_s4  ;;  %v5841_v60 = vsel %vm1645_vm5, %v4617_v38, %v1644_v15 }
 0x708   :  { %v1415_v57 = vpop.f32.mrf.mxu1 }
 0x709   :  { %1504 = vrot.lane.b32.xlu1 %v1415_v57, %s4912_s11 }
 0x70e   :  { %v1133_v56 = vpop.f32.mrf.mxu2 }
 0x70f   :  { %1472 = vrot.lane.b32.xlu2 %v1133_v56, %s4913_s4 }
 0x72c   :  { %v1582_v9 = vpop.f32.mrf.mxu3 }
 0x72d   :  { %v1583_v14 = vadd.f32 %v5798_v18, %v1582_v9 }
 0x72f   :  { %v5802_v58 = vadd.f32 %v1583_v14, %v5014_v24  ;;  %v1516_v24 = vsel %vm312_vm1, %v5511_v43, %v1431_v11 }
 0x731   :  { %v1616_v1 = vsel %vm122_vm0, %v5802_v58, 0.0 }
 0x732   :  { %1617 = vadd.xlane.f32.xlu0 %v1616_v1 }
 0x739   :  { %v1461_v53 = vpop.permute.xlu2 %1460 }
 0x73a   :  { %v1524_v47 = vsel %vm1522_vm3, %v1515_v10, %v1461_v53 }
 0x73b   :  { %v1533_v34 = vsel %vm1531_vm4, %v1524_v47, %v1493_v17 }
 0x73c   :  { %4045 = vmatmul.msk.f32.gmra.mxu3 %vm122_vm0, %v1533_v34 }
 0x741   :  { %v1463_v20 = vpop.permute.xlu2 %1462 }
 0x742   :  { %v1525_v50 = vsel %vm1522_vm3, %v1516_v24, %v1463_v20 }
 0x743   :  { %v1534_v51 = vsel %vm1531_vm4, %v1525_v50, %v1495_v25 }
 0x744   :  { %4046 = vmatmul.msk.f32.gmra.mxu3 %vm122_vm0, %v1534_v51 }
 0x749   :  { %v1465_v31 = vpop.permute.xlu2 %1464 }
 0x74a   :  { %v1526_v49 = vsel %vm1522_vm3, %v1517_v3, %v1465_v31 }
 0x751   :  { %v1467_v35 = vpop.permute.xlu2 %1466 }
 0x752   :  { %v1527_v23 = vsel %vm1522_vm3, %v1518_v30, %v1467_v35 }
 0x759   :  { %v1469_v27 = vpop.permute.xlu2 %1468 }
 0x75a   :  { %v1528_v4 = vsel %vm1522_vm3, %v1519_v0, %v1469_v27  ;;  %v4278_v27 = vld [vmem:[%s7220_s5 + $0x58] sm:$0xff]  }
 0x75b   :  { %v1497_v7 = vpop.permute.xlu1 %1496  ;;  %v4228_v0 = vunpack.c.l.bf16 %v4278_v27 }
 0x75c   :  { %v1535_v43 = vsel %vm1531_vm4, %v1526_v49, %v1497_v7 }
 0x75d   :  { %4047 = vmatmul.msk.f32.gmra.mxu3 %vm122_vm0, %v1535_v43 }
 0x761   :  { %v1471_v62 = vpop.permute.xlu2 %1470 }
 0x762   :  { %v1529_v5 = vsel %vm1522_vm3, %v1520_v2, %v1471_v62 }
 0x763   :  { %v1499_v59 = vpop.permute.xlu1 %1498 }
 0x764   :  { %v1536_v54 = vsel %vm1531_vm4, %v1527_v23, %v1499_v59  ;;  %v4220_v23 = vunpack.c.l.bf16 %v4276_v61  ;;  %v4275_v59 = vld [vmem:[%s7220_s5 + $0x40] sm:$0xff]  }
 0x765   :  { %4048 = vmatmul.msk.f32.gmra.mxu3 %vm122_vm0, %v1536_v54  ;;  %v4229_v54 = vunpack.c.h.bf16 %v4278_v27 }
 0x769   :  { %v1473_v63 = vpop.permute.xlu2 %1472 }
 0x76a   :  { %v1530_v21 = vsel %vm1522_vm3, %v1521_v55, %v1473_v63 }
 0x76b   :  { %v1501_v41 = vpop.permute.xlu1 %1500 }
 0x76c   :  { %v1537_v19 = vsel %vm1531_vm4, %v1528_v4, %v1501_v41  ;;  %v4277_v41 = vld [vmem:[%s7220_s5 + $0x50] sm:$0xff]  }
 0x76d   :  { %4049 = vmatmul.msk.f32.gmra.mxu3 %vm122_vm0, %v1537_v19  ;;  %v4225_v16 = vunpack.c.h.bf16 %v4277_v41  ;;  %v4224_v2 = vunpack.c.l.bf16 %v4277_v41 }
 0x773   :  { %v1503_v39 = vpop.permute.xlu1 %1502 }
 0x774   :  { %v1538_v12 = vsel %vm1531_vm4, %v1529_v5, %v1503_v39 }
 0x775   :  { %4050 = vmatmul.msk.f32.gmra.mxu3 %vm122_vm0, %v1538_v12 }
 0x77b   :  { %v1505_v13 = vpop.permute.xlu1 %1504 }
 0x77c   :  { %v1539_v26 = vsel %vm1531_vm4, %v1530_v21, %v1505_v13  ;;  %v5905_v21 = vld [vmem:[#allocation7 + $0x7] ss:$0 sm:$0xff] }
 0x77d   :  { %4051 = vmatmul.msk.f32.gmra.mxu3 %vm122_vm0, %v1539_v26  ;;  %v5907_v26 = vld [vmem:[#allocation7 + $0x8] ss:$0 sm:$0xff] }
 0x7a5   :  { %v1618_v57 = vpop.xlane.xlu0 %1617 }
 0x7a6   :  { %v1647_v37 = vmul.f32 %v5841_v60, %v1618_v57 }
 0x7a8   :  { %v5845_v56 = vsub.f32 %v5802_v58, %v1647_v37 }
 0x7aa   :  { %v1663_v9 = vmul.f32 %v5845_v56, %v5845_v56 }
 0x7ac   :  { %v1671_v14 = vsel %vm122_vm0, %v1663_v9, 0.0 }
 0x7ad   :  { %1672 = vadd.xlane.f32.xlu2 %v1671_v14  ;;  %v88_v14 = vld [vmem:[%s7216_s1] sm:$0xff] }
 0x7bf   :  { %v1585_v1 = vpop.f32.mrf.mxu3 }
 0x7c0   :  { %v1586_v6 = vadd.f32 %v5798_v18, %v1585_v1 }
 0x7c2   :  { %v5852_v10 = vadd.f32 %v1586_v6, %v5021_v28 }
 0x7c4   :  { %v1619_v53 = vsel %vm122_vm0, %v5852_v10, 0.0 }
 0x7c5   :  { %1620 = vadd.xlane.f32.xlu1 %v1619_v53  ;;  %v89_v53 = vld [vmem:[%s7216_s1 + $0x8] sm:$0xff] }
 0x7c7   :  { %v1588_v17 = vpop.f32.mrf.mxu3 }
 0x7c8   :  { %v1589_v58 = vadd.f32 %v5798_v18, %v1588_v17  ;;  %v90_v17 = vld [vmem:[%s7216_s1 + $0x10] sm:$0xff] }
 0x7ca   :  { %v5858_v47 = vadd.f32 %v1589_v58, %v5028_v32 }
 0x7cc   :  { %v1622_v34 = vsel %vm122_vm0, %v5858_v47, 0.0 }
 0x7cd   :  { %1623 = vadd.xlane.f32.xlu2 %v1622_v34  ;;  %v91_v34 = vld [vmem:[%s7216_s1 + $0x18] sm:$0xff] }
 0x7e0   :  { %v1591_v11 = vpop.f32.mrf.mxu3 }
 0x7e1   :  { %v1592_v24 = vadd.f32 %v5798_v18, %v1591_v11 }
 0x7e3   :  { %v5864_v28 = vadd.f32 %v1592_v24, %v5035_v36 }
 0x7e5   :  { %v1625_v20 = vsel %vm122_vm0, %v5864_v28, 0.0 }
 0x7e6   :  { %1626 = vadd.xlane.f32.xlu0 %v1625_v20 }
 0x7e8   :  { %v1594_v25 = vpop.f32.mrf.mxu3 }
 0x7e9   :  { %v1595_v50 = vadd.f32 %v5798_v18, %v1594_v25 }
 0x7eb   :  { %v5870_v32 = vadd.f32 %v1595_v50, %v5042_v40 }
 0x7ed   :  { %v1628_v51 = vsel %vm122_vm0, %v5870_v32, 0.0 }
 0x7ee   :  { %1629 = vadd.xlane.f32.xlu1 %v1628_v51  ;;  %v92_v51 = vld [vmem:[%s7216_s1 + $0x20] sm:$0xff] }
 0x7f0   :  { %v1597_v46 = vpop.f32.mrf.mxu3 }
 0x7f1   :  { %v1598_v31 = vadd.f32 %v5798_v18, %v1597_v46 }
 0x7f3   :  { %v5876_v36 = vadd.f32 %v1598_v31, %v5049_v44 }
 0x7f5   :  { %v1631_v22 = vsel %vm122_vm0, %v5876_v36, 0.0 }
 0x7f6   :  { %1632 = vadd.xlane.f32.xlu2 %v1631_v22 }
 0x7f8   :  { %v1600_v3 = vpop.f32.mrf.mxu3 }
 0x7f9   :  { %v1601_v35 = vadd.f32 %v5798_v18, %v1600_v3 }
 0x7fb   :  { %v5882_v40 = vadd.f32 %v1601_v35, %v5056_v48  ;;  %v4221_v48 = vunpack.c.h.bf16 %v4276_v61  ;;  %v93_v35 = vld [vmem:[%s7216_s1 + $0x28] sm:$0xff]  ;;  %v94_v61 = vld [vmem:[%s7216_s1 + $0x30] sm:$0xff] }
 0x7fd   :  { %v1634_v49 = vsel %vm122_vm0, %v5882_v40, 0.0  ;;  %1863 = vmatpush.msrb.mxu0 %v4221_v48  ;;  %4289 = vmatpush.msra.mxu2 %v4221_v48 }
 0x7fe   :  { %1635 = vadd.xlane.f32.xlu0 %v1634_v49 }
 0x7ff   :  { %1864 = vmatpush.msrb.mxu0 %v4220_v23  ;;  %4290 = vmatpush.msra.mxu2 %v4220_v23 }
 0x800   :  { %v1603_v7 = vpop.f32.mrf.mxu3 }
 0x801   :  { %v1604_v43 = vadd.f32 %v5798_v18, %v1603_v7  ;;  %v4217_v18 = vunpack.c.h.bf16 %v4275_v59 }
 0x803   :  { %v5888_v44 = vadd.f32 %v1604_v43, %v5063_v52  ;;  %1865 = vmatpush.msrb.mxu0 %v4217_v18  ;;  %v4216_v52 = vunpack.c.l.bf16 %v4275_v59  ;;  %4291 = vmatpush.msra.mxu2 %v4217_v18 }
 0x805   :  { %v1637_v30 = vsel %vm122_vm0, %v5888_v44, 0.0  ;;  %1866 = vmatpush.msrb.mxu0 %v4216_v52  ;;  %4292 = vmatpush.msra.mxu2 %v4216_v52  ;;  %v95_v52 = vld [vmem:[%s7216_s1 + $0x38] sm:$0xff] }
 0x806   :  { %1638 = vadd.xlane.f32.xlu2 %v1637_v30 }
 0x807   :  { %1938 = vmatpush.msra.mxu0 %v4229_v54 }
 0x809   :  { %1939 = vmatpush.msra.mxu0 %v4228_v0 }
 0x80b   :  { %1940 = vmatpush.msra.mxu0 %v4225_v16 }
 0x80d   :  { %1941 = vmatpush.msra.mxu0 %v4224_v2 }
 0x820   :  { %v1673_v4 = vpop.xlane.xlu2 %1672 }
 0x821   :  { %v1695_v19 = vmul.f32 %v1673_v4, %v5841_v60 }
 0x823   :  { %v1703_v62 = vadd.f32 1e-05, %v1695_v19 }
 0x825   :  { %4618 = vrsqrt.f32 %v1703_v62  ;;  %vm1717_vm7 = vweird.f32 %v1703_v62 }
 0x82b   :  { %v4619_v5 = vpop.eup %4618 }
 0x82c   :  { %v1712_v39 = vmul.f32 %v4619_v5, %v1703_v62  ;;  %vm1718_vm6 = vweird.f32 %v4619_v5 }
 0x82d   :  { %vm1719_vm8 = vmor %vm1717_vm7, %vm1718_vm6 }
 0x82e   :  { %v1713_v12 = vmul.f32 %v4619_v5, %v1712_v39 }
 0x830   :  { %v1714_v29 = vmul.f32 0.5, %v1713_v12  ;;  %v6001_v12 = vld [vmem:[#allocation7 + $0x5] ss:$0 sm:$0xff] }
 0x832   :  { %v1715_v63 = vsub.f32 1.5, %v1714_v29 }
 0x834   :  { %v1716_v55 = vmul.f32 %v4619_v5, %v1715_v63 }
 0x836   :  { %v1720_v13 = vsel %vm1719_vm8, %v4619_v5, %v1716_v55 }
 0x837   :  { %v1791_v8 = vmul.f32 %v1720_v13, %v5845_v56 }
 0x838   :  { %v1621_v38 = vpop.xlane.xlu1 %1620 }
 0x839   :  { %v1800_v33 = vmul.f32 %v5905_v21, %v1791_v8  ;;  %v1648_v42 = vmul.f32 %v5841_v60, %v1621_v38 }
 0x83b   :  { %v5913_v45 = vadd.f32 %v5907_v26, %v1800_v33  ;;  %v5916_v15 = vsub.f32 %v5852_v10, %v1648_v42 }
 0x83d   :  { %4052 = vmatmul.msk.f32.vlgmr.msrb.gmra.mxu0 %vm122_vm0, %v5913_v45  ;;  %v1664_v57 = vmul.f32 %v5916_v15, %v5916_v15 }
 0x83f   :  { %v1674_v37 = vsel %vm122_vm0, %v1664_v57, 0.0 }
 0x840   :  { %v1624_v56 = vpop.xlane.xlu2 %1623  ;;  %1675 = vadd.xlane.f32.xlu1 %v1674_v37 }
 0x841   :  { %v1649_v9 = vmul.f32 %v5841_v60, %v1624_v56 }
 0x843   :  { %v5928_v1 = vsub.f32 %v5858_v47, %v1649_v9 }
 0x845   :  { %4060 = vmatmul.msk.f32.vlgmr.msra.gmra.mxu0 %vm122_vm0, %v88_v14  ;;  %v1665_v6 = vmul.f32 %v5928_v1, %v5928_v1 }
 0x847   :  { %v1677_v10 = vsel %vm122_vm0, %v1665_v6, 0.0 }
 0x848   :  { %1678 = vadd.xlane.f32.xlu0 %v1677_v10 }
 0x84d   :  { %4061 = vmatmul.msk.f32.gmra.mxu0 %vm122_vm0, %v89_v53 }
 0x855   :  { %4062 = vmatmul.msk.f32.gmra.mxu0 %vm122_vm0, %v90_v17 }
 0x859   :  { %v1627_v58 = vpop.xlane.xlu0 %1626 }
 0x85a   :  { %v1650_v47 = vmul.f32 %v5841_v60, %v1627_v58 }
 0x85c   :  { %v5947_v11 = vsub.f32 %v5864_v28, %v1650_v47 }
 0x85d   :  { %4063 = vmatmul.msk.f32.gmra.mxu0 %vm122_vm0, %v91_v34 }
 0x85e   :  { %v1666_v24 = vmul.f32 %v5947_v11, %v5947_v11 }
 0x860   :  { %v1680_v20 = vsel %vm122_vm0, %v1666_v24, 0.0 }
 0x861   :  { %1681 = vadd.xlane.f32.xlu1 %v1680_v20  ;;  %v1630_v25 = vpop.xlane.xlu1 %1629 }
 0x862   :  { %v1651_v50 = vmul.f32 %v5841_v60, %v1630_v25 }
 0x864   :  { %v5958_v46 = vsub.f32 %v5870_v32, %v1651_v50 }
 0x865   :  { %4064 = vmatmul.msk.f32.gmra.mxu0 %vm122_vm0, %v92_v51 }
 0x866   :  { %v1667_v28 = vmul.f32 %v5958_v46, %v5958_v46 }
 0x868   :  { %v1683_v31 = vsel %vm122_vm0, %v1667_v28, 0.0 }
 0x869   :  { %v1633_v22 = vpop.xlane.xlu2 %1632  ;;  %1684 = vadd.xlane.f32.xlu2 %v1683_v31 }
 0x86a   :  { %v1652_v3 = vmul.f32 %v5841_v60, %v1633_v22 }
 0x86c   :  { %v5969_v49 = vsub.f32 %v5876_v36, %v1652_v3 }
 0x86d   :  { %4065 = vmatmul.msk.f32.gmra.mxu0 %vm122_vm0, %v93_v35 }
 0x86e   :  { %v1668_v32 = vmul.f32 %v5969_v49, %v5969_v49 }
 0x870   :  { %v1686_v7 = vsel %vm122_vm0, %v1668_v32, 0.0 }
 0x871   :  { %1687 = vadd.xlane.f32.xlu0 %v1686_v7  ;;  %v1636_v43 = vpop.xlane.xlu0 %1635 }
 0x872   :  { %v1653_v30 = vmul.f32 %v5841_v60, %v1636_v43 }
 0x874   :  { %v5980_v48 = vsub.f32 %v5882_v40, %v1653_v30 }
 0x875   :  { %4066 = vmatmul.msk.f32.gmra.mxu0 %vm122_vm0, %v94_v61 }
 0x876   :  { %v1669_v36 = vmul.f32 %v5980_v48, %v5980_v48 }
 0x878   :  { %v1689_v23 = vsel %vm122_vm0, %v1669_v36, 0.0 }
 0x879   :  { %v1639_v59 = vpop.xlane.xlu2 %1638  ;;  %1690 = vadd.xlane.f32.xlu1 %v1689_v23 }
 0x87a   :  { %v1654_v18 = vmul.f32 %v5841_v60, %v1639_v59 }
 0x87c   :  { %v5991_v27 = vsub.f32 %v5888_v44, %v1654_v18 }
 0x87d   :  { %4067 = vmatmul.msk.f32.gmra.mxu0 %vm122_vm0, %v95_v52 }
 0x87e   :  { %v1670_v40 = vmul.f32 %v5991_v27, %v5991_v27 }
 0x880   :  { %v1692_v54 = vsel %vm122_vm0, %v1670_v40, 0.0 }
 0x881   :  { %1693 = vadd.xlane.f32.xlu2 %v1692_v54 }
 0x8b3   :  { %v1676_v0 = vpop.xlane.xlu1 %1675 }
 0x8b4   :  { %v1696_v4 = vmul.f32 %v1676_v0, %v5841_v60 }
 0x8b6   :  { %v1704_v41 = vadd.f32 1e-05, %v1696_v4 }
 0x8b8   :  { %4620 = vrsqrt.f32 %v1704_v41  ;;  %vm1727_vm10 = vweird.f32 %v1704_v41 }
 0x8ba   :  { %v5998_v19 = vpop.f32.mrf.mxu0 }
 0x8bb   :  { %v1679_v16 = vpop.xlane.xlu0 %1678 }
 0x8bc   :  { %v1697_v62 = vmul.f32 %v1679_v16, %v5841_v60 }
 0x8be   :  { %v4621_v44 = vpop.eup %4620  ;;  %v1705_v2 = vadd.f32 1e-05, %v1697_v62 }
 0x8bf   :  { %v1722_v5 = vmul.f32 %v4621_v44, %v1704_v41  ;;  %vm1728_vm9 = vweird.f32 %v4621_v44 }
 0x8c0   :  { %4622 = vrsqrt.f32 %v1705_v2  ;;  %vm1729_vm11 = vmor %vm1727_vm10, %vm1728_vm9  ;;  %vm1737_vm13 = vweird.f32 %v1705_v2 }
 0x8c1   :  { %v1723_v39 = vmul.f32 %v4621_v44, %v1722_v5 }
 0x8c2   :  { %v1943_v29 = vpop.f32.mrf.mxu0 }
 0x8c3   :  { %v1724_v63 = vmul.f32 0.5, %v1723_v39  ;;  %v6004_v55 = vadd.f32 %v6001_v12, %v1943_v29 }
 0x8c5   :  { %v1725_v13 = vsub.f32 1.5, %v1724_v63  ;;  %2266 = vrot.lane.b32.xlu0 %v6004_v55, %s4903_s8 }
 0x8c6   :  { %v4623_v8 = vpop.eup %4622 }
 0x8c7   :  { %v1726_v38 = vmul.f32 %v4621_v44, %v1725_v13  ;;  %v1732_v33 = vmul.f32 %v4623_v8, %v1705_v2  ;;  %vm1738_vm12 = vweird.f32 %v4623_v8 }
 0x8c8   :  { %vm1739_vm14 = vmor %vm1737_vm13, %vm1738_vm12 }
 0x8c9   :  { %v1730_v42 = vsel %vm1729_vm11, %v4621_v44, %v1726_v38  ;;  %v1733_v57 = vmul.f32 %v4623_v8, %v1732_v33 }
 0x8ca   :  { %v1792_v37 = vmul.f32 %v1730_v42, %v5916_v15  ;;  %v1946_v56 = vpop.f32.mrf.mxu0 }
 0x8cb   :  { %v1734_v9 = vmul.f32 0.5, %v1733_v57  ;;  %v6010_v14 = vadd.f32 %v6001_v12, %v1946_v56 }
 0x8cc   :  { %v1801_v6 = vmul.f32 %v5905_v21, %v1792_v37  ;;  %v6058_v37 = vld [vmem:[#allocation7 + $0x4] ss:$0 sm:$0xff] }
 0x8cd   :  { %v1735_v10 = vsub.f32 1.5, %v1734_v9  ;;  %2268 = vrot.lane.b32.xlu2 %v6010_v14, %s4903_s8 }
 0x8ce   :  { %v6016_v53 = vadd.f32 %v5907_v26, %v1801_v6 }
 0x8cf   :  { %v1736_v17 = vmul.f32 %v4623_v8, %v1735_v10 }
 0x8d0   :  { %4053 = vmatmul.msk.f32.vlgmr.msra.gmra.mxu2 %vm122_vm0, %v6016_v53 }
 0x8d1   :  { %v1740_v15 = vsel %vm1739_vm14, %v4623_v8, %v1736_v17 }
 0x8d2   :  { %v1949_v58 = vpop.f32.mrf.mxu0  ;;  %v1793_v47 = vmul.f32 %v1740_v15, %v5928_v1 }
 0x8d3   :  { %v6022_v34 = vadd.f32 %v6001_v12, %v1949_v58 }
 0x8d4   :  { %v1682_v24 = vpop.xlane.xlu1 %1681  ;;  %v1802_v20 = vmul.f32 %v5905_v21, %v1793_v47 }
 0x8d5   :  { %v1698_v25 = vmul.f32 %v1682_v24, %v5841_v60  ;;  %2270 = vrot.lane.b32.xlu1 %v6022_v34, %s4903_s8  ;;  %v1869_v24 = vadd.f32 %v6058_v37, %v5998_v19 }
 0x8d6   :  { %v6029_v50 = vadd.f32 %v5907_v26, %v1802_v20 }
 0x8d7   :  { %v1706_v51 = vadd.f32 1e-05, %v1698_v25 }
 0x8d8   :  { %4054 = vmatmul.msk.f32.gmra.mxu2 %vm122_vm0, %v6029_v50 }
 0x8d9   :  { %4624 = vrsqrt.f32 %v1706_v51  ;;  %vm1747_vm5 = vweird.f32 %v1706_v51 }
 0x8da   :  { %v1952_v1 = vpop.f32.mrf.mxu0 }
 0x8db   :  { %v6034_v28 = vadd.f32 %v6001_v12, %v1952_v1 }
 0x8dc   :  { %v1685_v31 = vpop.xlane.xlu2 %1684 }
 0x8dd   :  { %v1699_v22 = vmul.f32 %v1685_v31, %v5841_v60  ;;  %2272 = vrot.lane.b32.xlu0 %v6034_v28, %s4903_s8 }
 0x8df   :  { %v4625_v3 = vpop.eup %4624  ;;  %v1707_v35 = vadd.f32 1e-05, %v1699_v22 }
 0x8e0   :  { %v1742_v32 = vmul.f32 %v4625_v3, %v1706_v51  ;;  %vm1748_vm15 = vweird.f32 %v4625_v3 }
 0x8e1   :  { %4626 = vrsqrt.f32 %v1707_v35  ;;  %vm1749_vm6 = vmor %vm1747_vm5, %vm1748_vm15  ;;  %vm1757_vm8 = vweird.f32 %v1707_v35 }
 0x8e2   :  { %v1743_v7 = vmul.f32 %v4625_v3, %v1742_v32  ;;  %v1955_v43 = vpop.f32.mrf.mxu0 }
 0x8e3   :  { %v6040_v30 = vadd.f32 %v6001_v12, %v1955_v43 }
 0x8e4   :  { %v1744_v61 = vmul.f32 0.5, %v1743_v7  ;;  %v1688_v36 = vpop.xlane.xlu0 %1687 }
 0x8e5   :  { %v1700_v23 = vmul.f32 %v1688_v36, %v5841_v60  ;;  %2274 = vrot.lane.b32.xlu0 %v6040_v30, %s4903_s8 }
 0x8e6   :  { %v1745_v59 = vsub.f32 1.5, %v1744_v61 }
 0x8e7   :  { %v4627_v18 = vpop.eup %4626  ;;  %v1708_v52 = vadd.f32 1e-05, %v1700_v23 }
 0x8e8   :  { %v1746_v40 = vmul.f32 %v4625_v3, %v1745_v59  ;;  %v1752_v54 = vmul.f32 %v4627_v18, %v1707_v35  ;;  %vm1758_vm7 = vweird.f32 %v4627_v18 }
 0x8e9   :  { %4628 = vrsqrt.f32 %v1708_v52  ;;  %vm1759_vm9 = vmor %vm1757_vm8, %vm1758_vm7  ;;  %vm1767_vm11 = vweird.f32 %v1708_v52 }
 0x8ea   :  { %v1753_v0 = vmul.f32 %v4627_v18, %v1752_v54  ;;  %v1958_v4 = vpop.f32.mrf.mxu0  ;;  %v1750_v41 = vsel %vm1749_vm6, %v4625_v3, %v1746_v40  ;;  %v6075_v3 = vmul.f32 0.35355338, %v1869_v24 }
 0x8eb   :  { %v6046_v16 = vadd.f32 %v6001_v12, %v1958_v4  ;;  %v1794_v62 = vmul.f32 %v1750_v41, %v5947_v11 }
 0x8ec   :  { %v1754_v44 = vmul.f32 0.5, %v1753_v0  ;;  %v1691_v2 = vpop.xlane.xlu1 %1690 }
 0x8ed   :  { %v1701_v5 = vmul.f32 %v1691_v2, %v5841_v60  ;;  %v1803_v39 = vmul.f32 %v5905_v21, %v1794_v62  ;;  %2276 = vrot.lane.b32.xlu2 %v6046_v16, %s4903_s8 }
 0x8ee   :  { %v1755_v29 = vsub.f32 1.5, %v1754_v44 }
 0x8ef   :  { %v4629_v63 = vpop.eup %4628  ;;  %v1709_v13 = vadd.f32 1e-05, %v1701_v5  ;;  %v6054_v8 = vadd.f32 %v5907_v26, %v1803_v39 }
 0x8f0   :  { %v1756_v38 = vmul.f32 %v4627_v18, %v1755_v29  ;;  %v1762_v33 = vmul.f32 %v4629_v63, %v1708_v52  ;;  %vm1768_vm10 = vweird.f32 %v4629_v63 }
 0x8f1   :  { %4630 = vrsqrt.f32 %v1709_v13  ;;  %4055 = vmatmul.msk.f32.gmra.mxu2 %vm122_vm0, %v6054_v8  ;;  %vm1769_vm12 = vmor %vm1767_vm11, %vm1768_vm10  ;;  %vm1777_vm14 = vweird.f32 %v1709_v13 }
 0x8f2   :  { %v1763_v11 = vmul.f32 %v4629_v63, %v1762_v33  ;;  %v1961_v42 = vpop.f32.mrf.mxu0  ;;  %v1760_v57 = vsel %vm1759_vm9, %v4627_v18, %v1756_v38 }
 0x8f3   :  { %v6061_v56 = vadd.f32 %v6001_v12, %v1961_v42  ;;  %v1795_v9 = vmul.f32 %v1760_v57, %v5958_v46 }
 0x8f4   :  { %v1764_v6 = vmul.f32 0.5, %v1763_v11  ;;  %v1694_v10 = vpop.xlane.xlu2 %1693 }
 0x8f5   :  { %v1702_v17 = vmul.f32 %v1694_v10, %v5841_v60  ;;  %2278 = vrot.lane.b32.xlu1 %v6061_v56, %s4903_s8  ;;  %v1804_v15 = vmul.f32 %v5905_v21, %v1795_v9 }
 0x8f6   :  { %v1765_v58 = vsub.f32 1.5, %v1764_v6 }
 0x8f7   :  { %v4631_v47 = vpop.eup %4630  ;;  %v1710_v20 = vadd.f32 1e-05, %v1702_v17  ;;  %v6071_v25 = vadd.f32 %v5907_v26, %v1804_v15 }
 0x8f8   :  { %v1766_v46 = vmul.f32 %v4629_v63, %v1765_v58  ;;  %v1772_v51 = vmul.f32 %v4631_v47, %v1709_v13  ;;  %vm1778_vm13 = vweird.f32 %v4631_v47 }
 0x8f9   :  { %4632 = vrsqrt.f32 %v1710_v20  ;;  %4056 = vmatmul.msk.f32.gmra.mxu2 %vm122_vm0, %v6071_v25  ;;  %vm1779_vm15 = vmor %vm1777_vm14, %vm1778_vm13  ;;  %vm1787_vm6 = vweird.f32 %v1710_v20 }
 0x8fa   :  { %v1773_v1 = vmul.f32 %v4631_v47, %v1772_v51  ;;  %v1964_v31 = vpop.f32.mrf.mxu0  ;;  %v1770_v22 = vsel %vm1769_vm12, %v4629_v63, %v1766_v46  ;;  %v4403_v46 = vpack.i.bf16 %v6040_v30, %v6046_v16 }
 0x8fb   :  { %v6078_v35 = vadd.f32 %v6001_v12, %v1964_v31  ;;  %v1796_v19 = vmul.f32 %v1770_v22, %v5969_v49  ;;  %v6205_v31 = vpack.i.bf16 %v6004_v55, %v6010_v14 }
 0x8fc   :  { %v1774_v32 = vmul.f32 0.5, %v1773_v1 }
 0x8fd   :  { %4068 = vmatpush.xpose.msk.msrb.mxu1 %vm312_vm1, %v6078_v35  ;;  %2250 = vrot.lane.b32.xlu1 %v6075_v3, %s4903_s8  ;;  %v1805_v7 = vmul.f32 %v5905_v21, %v1796_v19 }
 0x8fe   :  { %v1775_v43 = vsub.f32 1.5, %v1774_v32 }
 0x8ff   :  { %v4633_v61 = vpop.eup %4632  ;;  %v6087_v36 = vadd.f32 %v5907_v26, %v1805_v7 }
 0x900   :  { %v1776_v23 = vmul.f32 %v4631_v47, %v1775_v43  ;;  %v1782_v12 = vmul.f32 %v4633_v61, %v1710_v20  ;;  %vm1788_vm5 = vweird.f32 %v4633_v61 }
 0x901   :  { %4057 = vmatmul.msk.f32.gmra.mxu2 %vm122_vm0, %v6087_v36  ;;  %4069 = vmatpush.xpose.msk.msrb.mxu1 %vm312_vm1, %v6061_v56  ;;  %vm1789_vm7 = vmor %vm1787_vm6, %vm1788_vm5 }
 0x902   :  { %v1783_v49 = vmul.f32 %v4633_v61, %v1782_v12  ;;  %v1780_v59 = vsel %vm1779_vm15, %v4631_v47, %v1776_v23  ;;  %v4448_v23 = vpack.i.bf16 %v6061_v56, %v6078_v35 }
 0x903   :  { %v1797_v18 = vmul.f32 %v1780_v59, %v5980_v48 }
 0x904   :  { %v1784_v52 = vmul.f32 0.5, %v1783_v49 }
 0x905   :  { %4070 = vmatpush.xpose.msk.msrb.mxu1 %vm312_vm1, %v6046_v16  ;;  %v1806_v40 = vmul.f32 %v5905_v21, %v1797_v18 }
 0x906   :  { %v1785_v54 = vsub.f32 1.5, %v1784_v52 }
 0x907   :  { %v6098_v0 = vadd.f32 %v5907_v26, %v1806_v40 }
 0x908   :  { %v1786_v4 = vmul.f32 %v4633_v61, %v1785_v54 }
 0x909   :  { %4058 = vmatmul.msk.f32.gmra.mxu2 %vm122_vm0, %v6098_v0  ;;  %4071 = vmatpush.xpose.msk.msrb.mxu1 %vm312_vm1, %v6040_v30 }
 0x90a   :  { %v1790_v48 = vsel %vm1789_vm7, %v4633_v61, %v1786_v4 }
 0x90b   :  { %v1798_v41 = vmul.f32 %v1790_v48, %v5991_v27 }
 0x90d   :  { %4072 = vmatpush.xpose.msk.msrb.mxu1 %vm312_vm1, %v6034_v28  ;;  %v1807_v62 = vmul.f32 %v5905_v21, %v1798_v41 }
 0x90f   :  { %v6109_v44 = vadd.f32 %v5907_v26, %v1807_v62 }
 0x911   :  { %4059 = vmatmul.msk.f32.gmra.mxu2 %vm122_vm0, %v6109_v44  ;;  %4073 = vmatpush.xpose.msk.msrb.mxu1 %vm312_vm1, %v6022_v34 }
 0x915   :  { %4074 = vmatpush.xpose.msk.msrb.mxu1 %vm312_vm1, %v6010_v14 }
 0x919   :  { %4075 = vmatpush.xpose.msk.msrb.mxu1 %vm312_vm1, %v6004_v55 }
 0x91c   :  { %4076 = vmatmul.msk.f32.vlgmr.msrb.gmra.mxu1 %vm312_vm1, %v6075_v3 }
 0x927   :  { %v6190_v20 = vpop.permute.xlu2 %2268 }
 0x947   :  { %v2277_v1 = vpop.permute.xlu2 %2276  ;;  %v6215_v22 = vpop.permute.xlu1 %2270 }
 0x953   :  { %v1871_v27 = vpop.f32.mrf.mxu2 }
 0x954   :  { %v1872_v21 = vadd.f32 %v6058_v37, %v1871_v27 }
 0x956   :  { %v1977_v26 = vmul.f32 0.35355338, %v1872_v21 }
 0x958   :  { %2252 = vrot.lane.b32.xlu2 %v1977_v26, %s4903_s8  ;;  %4077 = vmatmul.msk.f32.gmra.mxu1 %vm312_vm1, %v1977_v26 }
 0x95b   :  { %v1874_v2 = vpop.f32.mrf.mxu2 }
 0x95c   :  { %v1875_v5 = vadd.f32 %v6058_v37, %v1874_v2  ;;  %v6274_v2 = vld [vmem:[#allocation5 + $0x10] sm:$0xff] }
 0x95e   :  { %v1978_v39 = vmul.f32 0.35355338, %v1875_v5 }
 0x960   :  { %2254 = vrot.lane.b32.xlu0 %v1978_v39, %s4903_s8  ;;  %4078 = vmatmul.msk.f32.gmra.mxu1 %vm312_vm1, %v1978_v39 }
 0x967   :  { %v2279_v19 = vpop.permute.xlu1 %2278 }
 0x968   :  { %2840 = vrot.lane.b32.xlu0 %v6046_v16, %s4908_s14 }
 0x96f   :  { %v6243_v43 = vpop.permute.xlu1 %2250 }
 0x970   :  { %2552 = vrot.lane.b32.xlu0 %v6022_v34, %s4907_s13 }
 0x974   :  { %v1877_v29 = vpop.f32.mrf.mxu2 }
 0x975   :  { %v1878_v63 = vadd.f32 %v6058_v37, %v1877_v29 }
 0x977   :  { %v1979_v13 = vmul.f32 0.35355338, %v1878_v63 }
 0x978   :  { %2550 = vrot.lane.b32.xlu0 %v6010_v14, %s4907_s13 }
 0x979   :  { %2256 = vrot.lane.b32.xlu1 %v1979_v13, %s4903_s8  ;;  %4079 = vmatmul.msk.f32.gmra.mxu1 %vm312_vm1, %v1979_v13 }
 0x97c   :  { %v1880_v38 = vpop.f32.mrf.mxu2 }
 0x97d   :  { %v1881_v33 = vadd.f32 %v6058_v37, %v1880_v38 }
 0x97f   :  { %v1980_v11 = vmul.f32 0.35355338, %v1881_v33 }
 0x980   :  { %2830 = vrot.lane.b32.xlu0 %v6004_v55, %s4908_s14 }
 0x981   :  { %2258 = vrot.lane.b32.xlu2 %v1980_v11, %s4903_s8  ;;  %4080 = vmatmul.msk.f32.gmra.mxu1 %vm312_vm1, %v1980_v11 }
 0x984   :  { %v1883_v42 = vpop.f32.mrf.mxu2 }
 0x985   :  { %v1884_v57 = vadd.f32 %v6058_v37, %v1883_v42 }
 0x987   :  { %v1981_v9 = vmul.f32 0.35355338, %v1884_v57 }
 0x988   :  { %2842 = vrot.lane.b32.xlu0 %v6061_v56, %s4908_s14 }
 0x989   :  { %2558 = vrot.lane.b32.xlu2 %v6046_v16, %s4907_s13  ;;  %2260 = vrot.lane.b32.xlu1 %v1981_v9, %s4903_s8 }
 0x98a   :  { %4081 = vmatmul.msk.f32.gmra.mxu1 %vm312_vm1, %v1981_v9 }
 0x98c   :  { %v1886_v6 = vpop.f32.mrf.mxu2 }
 0x98d   :  { %v1887_v10 = vadd.f32 %v6058_v37, %v1886_v6 }
 0x98f   :  { %v1982_v17 = vmul.f32 0.35355338, %v1887_v10 }
 0x991   :  { %2838 = vrot.lane.b32.xlu2 %v6040_v30, %s4908_s14  ;;  %2556 = vrot.lane.b32.xlu1 %v6040_v30, %s4907_s13 }
 0x992   :  { %2262 = vrot.lane.b32.xlu0 %v1982_v17, %s4903_s8  ;;  %4082 = vmatmul.msk.f32.gmra.mxu1 %vm312_vm1, %v1982_v17 }
 0x994   :  { %v1889_v15 = vpop.f32.mrf.mxu2 }
 0x995   :  { %v1890_v58 = vadd.f32 %v6058_v37, %v1889_v15  ;;  %v6182_v37 = vpop.permute.xlu0 %2266  ;;  %v6308_v15 = vld [vmem:[#allocation5 + $0x18] sm:$0xff] }
 0x997   :  { %v6156_v47 = vmul.f32 0.35355338, %v1890_v58  ;;  %v6310_v58 = vld [vmem:[#allocation5 + $0x8] sm:$0xff] }
 0x999   :  { %2836 = vrot.lane.b32.xlu2 %v6034_v28, %s4908_s14  ;;  %2554 = vrot.lane.b32.xlu1 %v6034_v28, %s4907_s13  ;;  %v2049_v32 = vpop.f32.mrf.mxu1 }
 0x99a   :  { %2280 = vrot.lane.b32.xlu0 %v6078_v35, %s4903_s8  ;;  %4083 = vmatmul.msk.f32.gmra.mxu1 %vm312_vm1, %v6156_v47 }
 0x99d   :  { %v6188_v24 = vpop.permute.xlu0 %2272 }
 0x9a1   :  { %2548 = vrot.lane.b32.xlu2 %v6004_v55, %s4907_s13  ;;  %2834 = vrot.lane.b32.xlu1 %v6022_v34, %s4908_s14 }
 0x9a2   :  { %2562 = vrot.lane.b32.xlu0 %v6078_v35, %s4907_s13 }
 0x9a5   :  { %v6197_v51 = vpop.permute.xlu0 %2274 }
 0x9a9   :  { %2560 = vrot.lane.b32.xlu2 %v6061_v56, %s4907_s13  ;;  %2832 = vrot.lane.b32.xlu1 %v6010_v14, %s4908_s14 }
 0x9aa   :  { %2534 = vrot.lane.b32.xlu0 %v1977_v26, %s4907_s13 }
 0x9b1   :  { %2814 = vrot.lane.b32.xlu2 %v6075_v3, %s4908_s14  ;;  %2844 = vrot.lane.b32.xlu1 %v6078_v35, %s4908_s14 }
 0x9b2   :  { %2818 = vrot.lane.b32.xlu0 %v1978_v39, %s4908_s14  ;;  %v6213_v16 = vpop.permute.xlu2 %2252 }
 0x9b9   :  { %2536 = vrot.lane.b32.xlu2 %v1978_v39, %s4907_s13  ;;  %2532 = vrot.lane.b32.xlu1 %v6075_v3, %s4907_s13  ;;  %v6219_v3 = vpack.i.bf16 %v6022_v34, %v6034_v28 }
 0x9ba   :  { %2540 = vrot.lane.b32.xlu0 %v1980_v11, %s4907_s13 }
 0x9c1   :  { %2820 = vrot.lane.b32.xlu2 %v1979_v13, %s4908_s14  ;;  %2816 = vrot.lane.b32.xlu1 %v1977_v26, %s4908_s14 }
 0x9c2   :  { %2824 = vrot.lane.b32.xlu0 %v1981_v9, %s4908_s14 }
 0x9c9   :  { %2538 = vrot.lane.b32.xlu1 %v1979_v13, %s4907_s13  ;;  %2264 = vrot.lane.b32.xlu2 %v6156_v47, %s4903_s8  ;;  %v6286_v13 = vld [vmem:[#allocation5] sm:$0xff] }
 0x9ca   :  { %4404 = vrot.lane.b32.xlu0 %v4403_v46, %s4902_s0  ;;  %v6295_v57 = vadd.f32 %v2049_v32, %v6286_v13  ;;  %v6336_v32 = vld [vmem:[#allocation5 + $0x38] sm:$0xff] }
 0x9d1   :  { %2822 = vrot.lane.b32.xlu1 %v1980_v11, %s4908_s14  ;;  %2542 = vrot.lane.b32.xlu2 %v1981_v9, %s4907_s13  ;;  %v6292_v11 = vld [vmem:[#allocation5 + $0x28] sm:$0xff] }
 0x9d2   :  { %4409 = vrot.lane.b32.xlu0 %v6205_v31, %s4901_s30  ;;  %v6211_v30 = vpop.permute.xlu0 %2254 }
 0x9d5   :  { %v2052_v12 = vpop.f32.mrf.mxu1 }
 0x9d9   :  { %2826 = vrot.lane.b32.xlu2 %v1982_v17, %s4908_s14  ;;  %2544 = vrot.lane.b32.xlu1 %v1982_v17, %s4907_s13  ;;  %v2073_v17 = vsel %vm394_vm2, %v6295_v57, -inf }
 0x9da   :  { %4429 = vrot.lane.b32.xlu0 %v6219_v3, %s4906_s12  ;;  %v6225_v55 = vpop.permute.xlu0 %2840 }
 0x9db   :  { %v6227_v14 = vpop.permute.xlu2 %2258 }
 0x9dd   :  { %v2055_v52 = vpop.f32.mrf.mxu1 }
 0x9de   :  { %v6279_v29 = vadd.f32 %v2055_v52, %v6274_v2 }
 0x9e0   :  { %v2079_v33 = vsel %vm394_vm2, %v6279_v29, -inf }
 0x9e1   :  { %4394 = vrot.lane.b32.xlu2 %v4403_v46, %s4901_s30  ;;  %4399 = vrot.lane.b32.xlu1 %v6219_v3, %s4901_s30 }
 0x9e2   :  { %4434 = vrot.lane.b32.xlu0 %v4403_v46, %s4904_s9  ;;  %v6233_v34 = vpop.permute.xlu0 %2552 }
 0x9e3   :  { %v2559_v28 = vpop.permute.xlu2 %2558 }
 0x9e9   :  { %4414 = vrot.lane.b32.xlu2 %v6219_v3, %s4902_s0  ;;  %4419 = vrot.lane.b32.xlu1 %v6205_v31, %s4902_s0 }
 0x9ea   :  { %2546 = vrot.lane.b32.xlu0 %v6156_v47, %s4907_s13  ;;  %v6241_v7 = vpop.permute.xlu0 %2550 }
 0x9eb   :  { %v6245_v61 = vpop.permute.xlu2 %2838  ;;  %v6254_v59 = vpop.permute.xlu1 %2256 }
 0x9f1   :  { %4449 = vrot.lane.b32.xlu2 %v4448_v23, %s4906_s12  ;;  %4424 = vrot.lane.b32.xlu1 %v4403_v46, %s4906_s12  ;;  %v6314_v46 = vld [vmem:[#allocation5 + $0x30] sm:$0xff] }
 0x9f2   :  { %4444 = vrot.lane.b32.xlu0 %v4448_v23, %s4902_s0  ;;  %v6252_v49 = vpop.permute.xlu0 %2830 }
 0x9f3   :  { %v6256_v18 = vpop.permute.xlu2 %2836 }
 0x9f6   :  { %v2058_v40 = vpop.f32.mrf.mxu1 }
 0x9f9   :  { %4454 = vrot.lane.b32.xlu2 %v4448_v23, %s4904_s9  ;;  %2828 = vrot.lane.b32.xlu1 %v6156_v47, %s4908_s14 }
 0x9fa   :  { %v6261_v56 = vpop.permute.xlu0 %2842 }
 0x9fb   :  { %v6263_v35 = vpop.permute.xlu1 %2260  ;;  %v6266_v54 = vpop.permute.xlu2 %2548 }
 0x9fe   :  { %v2061_v62 = vpop.f32.mrf.mxu1 }
 0xa01   :  { %4439 = vrot.lane.b32.xlu1 %v4448_v23, %s4901_s30 }
 0xa03   :  { %v2557_v4 = vpop.permute.xlu1 %2556  ;;  %v2561_v21 = vpop.permute.xlu2 %2560 }
 0xa04   :  { %v6268_v48 = vpop.permute.xlu0 %2262 }
 0xa07   :  { %v2064_v39 = vpop.f32.mrf.mxu1 }
 0xa08   :  { %v6301_v9 = vadd.f32 %v2064_v39, %v6292_v11 }
 0xa0b   :  { %v2555_v41 = vpop.permute.xlu1 %2554  ;;  %v6281_v63 = vpop.permute.xlu2 %2814 }
 0xa0c   :  { %v2281_v27 = vpop.permute.xlu0 %2280 }
 0xa0d   :  { %4092 = vmatpush.xpose.msk.msrb.mxu2 %vm312_vm1, %v2281_v27 }
 0xa0f   :  { %v2067_v6 = vpop.f32.mrf.mxu1 }
 0xa11   :  { %4093 = vmatpush.xpose.msk.msrb.mxu2 %vm312_vm1, %v2279_v19  ;;  %v6328_v19 = vadd.f32 %v2067_v6, %v6314_v46 }
 0xa13   :  { %v6272_v26 = vpop.permute.xlu1 %2834  ;;  %v2537_v10 = vpop.permute.xlu2 %2536 }
 0xa14   :  { %v2563_v5 = vpop.permute.xlu0 %2562 }
 0xa15   :  { %4094 = vmatpush.xpose.msk.msrb.mxu2 %vm312_vm1, %v2277_v1  ;;  %4116 = vmatpush.xpose.msk.msra.mxu1 %vm312_vm1, %v2563_v5  ;;  %v6319_v1 = vadd.f32 %v2058_v40, %v6308_v15 }
 0xa19   :  { %4095 = vmatpush.xpose.msk.msrb.mxu2 %vm312_vm1, %v6197_v51  ;;  %4117 = vmatpush.xpose.msk.msra.mxu1 %vm312_vm1, %v2561_v21 }
 0xa1b   :  { %v6288_v38 = vpop.permute.xlu1 %2832  ;;  %v6343_v52 = vpop.permute.xlu2 %2820 }
 0xa1c   :  { %v2535_v42 = vpop.permute.xlu0 %2534  ;;  %2080 = vmax.xlane.f32.xlu0 %v2079_v33 }
 0xa1d   :  { %4096 = vmatpush.xpose.msk.msrb.mxu2 %vm312_vm1, %v6188_v24  ;;  %4118 = vmatpush.xpose.msk.msra.mxu1 %vm312_vm1, %v2559_v28  ;;  %v2088_v24 = vsel %vm394_vm2, %v6301_v9, -inf  ;;  %v2082_v28 = vsel %vm394_vm2, %v6319_v1, -inf }
 0xa21   :  { %4097 = vmatpush.xpose.msk.msrb.mxu2 %vm312_vm1, %v6215_v22  ;;  %4119 = vmatpush.xpose.msk.msra.mxu1 %vm312_vm1, %v2557_v4  ;;  %v6325_v22 = vadd.f32 %v2052_v12, %v6310_v58  ;;  %v6341_v12 = vld [vmem:[#allocation5 + $0x20] sm:$0xff] }
 0xa22   :  { %2074 = vmax.xlane.f32.xlu2 %v2073_v17 }
 0xa23   :  { %v2845_v47 = vpop.permute.xlu1 %2844  ;;  %v2076_v23 = vsel %vm394_vm2, %v6325_v22, -inf }
 0xa24   :  { %v6316_v51 = vpop.permute.xlu0 %2818  ;;  %2089 = vmax.xlane.f32.xlu0 %v2088_v24 }
 0xa25   :  { %4098 = vmatpush.xpose.msk.msrb.mxu2 %vm312_vm1, %v6190_v20  ;;  %4120 = vmatpush.xpose.msk.msra.mxu1 %vm312_vm1, %v2555_v41  ;;  %v2070_v20 = vpop.f32.mrf.mxu1  ;;  %v6355_v41 = vadd.f32 %v2061_v62, %v6341_v12 }
 0xa26   :  { %v6350_v4 = vadd.f32 %v2070_v20, %v6336_v32 }
 0xa28   :  { %v2094_v27 = vsel %vm394_vm2, %v6350_v4, -inf }
 0xa29   :  { %4099 = vmatpush.xpose.msk.msrb.mxu2 %vm312_vm1, %v6182_v37  ;;  %4121 = vmatpush.xpose.msk.msra.mxu1 %vm312_vm1, %v6233_v34  ;;  %v2091_v34 = vsel %vm394_vm2, %v6328_v19, -inf }
 0xa2a   :  { %2083 = vmax.xlane.f32.xlu2 %v2082_v28 }
 0xa2b   :  { %v2533_v37 = vpop.permute.xlu1 %2532  ;;  %2077 = vmax.xlane.f32.xlu1 %v2076_v23 }
 0xa2c   :  { %v2541_v40 = vpop.permute.xlu0 %2540  ;;  %4100 = vmatmul.msk.f32.vlgmr.msrb.gmra.mxu2 %vm312_vm1, %v6243_v43  ;;  %2092 = vmax.xlane.f32.xlu0 %v2091_v34  ;;  %v2085_v43 = vsel %vm394_vm2, %v6355_v41, -inf }
 0xa2d   :  { %4140 = vmatpush.xpose.msk.msra.mxu2 %vm312_vm1, %v2845_v47  ;;  %4122 = vmatpush.xpose.msk.msra.mxu1 %vm312_vm1, %v6241_v7 }
 0xa31   :  { %4141 = vmatpush.xpose.msk.msra.mxu2 %vm312_vm1, %v6261_v56  ;;  %4123 = vmatpush.xpose.msk.msra.mxu1 %vm312_vm1, %v6266_v54  ;;  %v2265_v56 = vpop.permute.xlu2 %2264 }
 0xa32   :  { %2095 = vmax.xlane.f32.xlu2 %v2094_v27 }
 0xa33   :  { %v2817_v7 = vpop.permute.xlu1 %2816  ;;  %2086 = vmax.xlane.f32.xlu1 %v2085_v43 }
 0xa34   :  { %v6367_v62 = vpop.permute.xlu0 %2824  ;;  %4101 = vmatmul.msk.f32.gmra.mxu2 %vm312_vm1, %v6213_v16  ;;  %4124 = vmatmul.msk.f32.vlgmr.msra.gmra.mxu1 %vm312_vm1, %v2533_v37 }
 0xa35   :  { %4142 = vmatpush.xpose.msk.msra.mxu2 %vm312_vm1, %v6225_v55 }
 0xa39   :  { %4143 = vmatpush.xpose.msk.msra.mxu2 %vm312_vm1, %v6245_v61  ;;  %v2543_v16 = vpop.permute.xlu2 %2542 }
 0xa3b   :  { %v2539_v55 = vpop.permute.xlu1 %2538 }
 0xa3c   :  { %v4405_v54 = vpop.permute.xlu0 %4404  ;;  %4102 = vmatmul.msk.f32.gmra.mxu2 %vm312_vm1, %v6211_v30  ;;  %4125 = vmatmul.msk.f32.gmra.mxu1 %vm312_vm1, %v2535_v42 }
 0xa3d   :  { %4144 = vmatpush.xpose.msk.msra.mxu2 %vm312_vm1, %v6256_v18  ;;  %v4407_v47 = vunpack.i.h.bf16 %v4405_v54 }
 0xa41   :  { %4145 = vmatpush.xpose.msk.msra.mxu2 %vm312_vm1, %v6272_v26  ;;  %v6392_v30 = vpop.permute.xlu2 %2826 }
 0xa43   :  { %v6383_v21 = vpop.permute.xlu1 %2822 }
 0xa44   :  { %v6385_v61 = vpop.permute.xlu0 %4409  ;;  %4103 = vmatmul.msk.f32.gmra.mxu2 %vm312_vm1, %v6254_v59  ;;  %4126 = vmatmul.msk.f32.gmra.mxu1 %vm312_vm1, %v2537_v10 }
 0xa45   :  { %4146 = vmatpush.xpose.msk.msra.mxu2 %vm312_vm1, %v6288_v38 }
 0xa49   :  { %4147 = vmatpush.xpose.msk.msra.mxu2 %vm312_vm1, %v6252_v49  ;;  %v4395_v5 = vpop.permute.xlu2 %4394 }
 0xa4b   :  { %v2545_v18 = vpop.permute.xlu1 %2544 }
 0xa4c   :  { %v6394_v26 = vpop.permute.xlu0 %4429  ;;  %4104 = vmatmul.msk.f32.gmra.mxu2 %vm312_vm1, %v6227_v14  ;;  %4127 = vmatmul.msk.f32.gmra.mxu1 %vm312_vm1, %v2539_v55 }
 0xa51   :  { %v4415_v33 = vpop.permute.xlu2 %4414 }
 0xa52   :  { %v4417_v28 = vunpack.i.h.bf16 %v4415_v33 }
 0xa53   :  { %v4400_v39 = vpop.permute.xlu1 %4399 }
 0xa54   :  { %v4435_v38 = vpop.permute.xlu0 %4434  ;;  %4105 = vmatmul.msk.f32.gmra.mxu2 %vm312_vm1, %v6263_v35  ;;  %4128 = vmatmul.msk.f32.gmra.mxu1 %vm312_vm1, %v2541_v40  ;;  %v4406_v35 = vunpack.i.l.bf16 %v4405_v54 }
 0xa55   :  { %v4436_v55 = vunpack.i.l.bf16 %v4435_v38  ;;  %v4437_v54 = vunpack.i.h.bf16 %v4435_v38 }
 0xa59   :  { %v4450_v10 = vpop.permute.xlu2 %4449 }
 0xa5b   :  { %v4420_v59 = vpop.permute.xlu1 %4419 }
 0xa5c   :  { %v2547_v49 = vpop.permute.xlu0 %2546  ;;  %4106 = vmatmul.msk.f32.gmra.mxu2 %vm312_vm1, %v6268_v48  ;;  %4129 = vmatmul.msk.f32.gmra.mxu1 %vm312_vm1, %v2543_v16  ;;  %v4416_v48 = vunpack.i.l.bf16 %v4415_v33  ;;  %v4421_v23 = vunpack.i.l.bf16 %v4420_v59  ;;  %v4422_v37 = vunpack.i.h.bf16 %v4420_v59  ;;  %v4397_v16 = vunpack.i.h.bf16 %v4395_v5 }
 0xa5d   :  { %v4411_v59 = vunpack.i.l.bf16 %v6385_v61  ;;  %v4451_v33 = vunpack.i.l.bf16 %v4450_v10 }
 0xa61   :  { %v4455_v20 = vpop.permute.xlu2 %4454 }
 0xa62   :  { %v4456_v40 = vunpack.i.l.bf16 %v4455_v20  ;;  %v4457_v43 = vunpack.i.h.bf16 %v4455_v20 }
 0xa63   :  { %v4425_v42 = vpop.permute.xlu1 %4424 }
 0xa64   :  { %v4445_v14 = vpop.permute.xlu0 %4444  ;;  %4107 = vmatmul.msk.f32.gmra.mxu2 %vm312_vm1, %v2265_v56  ;;  %4130 = vmatmul.msk.f32.gmra.mxu1 %vm312_vm1, %v2545_v18  ;;  %v4401_v18 = vunpack.i.l.bf16 %v4400_v39  ;;  %v4426_v38 = vunpack.i.l.bf16 %v4425_v42 }
 0xa65   :  { %v4446_v6 = vunpack.i.l.bf16 %v4445_v14  ;;  %v4447_v17 = vunpack.i.h.bf16 %v4445_v14 }
 0xa67   :  { %2499 = vmatpush.msrb.mxu0 %v4446_v6 }
 0xa69   :  { %2500 = vmatpush.msrb.mxu0 %v4447_v17 }
 0xa6b   :  { %2501 = vmatpush.msrb.mxu0 %v4406_v35  ;;  %v2829_v24 = vpop.permute.xlu1 %2828 }
 0xa6c   :  { %4131 = vmatmul.msk.f32.gmra.mxu1 %vm312_vm1, %v2547_v49  ;;  %4148 = vmatmul.msk.f32.vlgmr.msra.gmra.mxu2 %vm312_vm1, %v6281_v63  ;;  %v4396_v63 = vunpack.i.l.bf16 %v4395_v5  ;;  %v4412_v49 = vunpack.i.h.bf16 %v6385_v61  ;;  %v4452_v5 = vunpack.i.h.bf16 %v4450_v10  ;;  %v4432_v61 = vunpack.i.h.bf16 %v6394_v26 }
 0xa6d   :  { %2502 = vmatpush.msrb.mxu0 %v4407_v47 }
 0xa6f   :  { %2503 = vmatpush.msrb.mxu0 %v4416_v48 }
 0xa71   :  { %2504 = vmatpush.msrb.mxu0 %v4417_v28 }
 0xa73   :  { %2505 = vmatpush.msrb.mxu0 %v4421_v23  ;;  %v4440_v34 = vpop.permute.xlu1 %4439 }
 0xa74   :  { %4149 = vmatmul.msk.f32.gmra.mxu2 %vm312_vm1, %v2817_v7  ;;  %v4441_v27 = vunpack.i.l.bf16 %v4440_v34  ;;  %v4442_v56 = vunpack.i.h.bf16 %v4440_v34  ;;  %v4402_v7 = vunpack.i.h.bf16 %v4400_v39  ;;  %v4431_v39 = vunpack.i.l.bf16 %v6394_v26 }
 0xa75   :  { %2506 = vmatpush.msrb.mxu0 %v4422_v37 }
 0xa76   :  { %2217 = vmatpush.msrb.mxu3 %v4441_v27 }
 0xa77   :  { %3063 = vmatpush.msra.mxu0 %v4456_v40 }
 0xa78   :  { %2218 = vmatpush.msrb.mxu3 %v4442_v56 }
 0xa79   :  { %3064 = vmatpush.msra.mxu0 %v4457_v43 }
 0xa7a   :  { %2219 = vmatpush.msrb.mxu3 %v4396_v63 }
 0xa7b   :  { %3065 = vmatpush.msra.mxu0 %v4436_v55 }
 0xa7c   :  { %4150 = vmatmul.msk.f32.gmra.mxu2 %vm312_vm1, %v6316_v51  ;;  %2220 = vmatpush.msrb.mxu3 %v4397_v16  ;;  %v4427_v51 = vunpack.i.h.bf16 %v4425_v42 }
 0xa7d   :  { %3066 = vmatpush.msra.mxu0 %v4437_v54 }
 0xa7e   :  { %2221 = vmatpush.msrb.mxu3 %v4401_v18 }
 0xa80   :  { %2222 = vmatpush.msrb.mxu3 %v4402_v7 }
 0xa82   :  { %2223 = vmatpush.msrb.mxu3 %v4411_v59 }
 0xa84   :  { %4151 = vmatmul.msk.f32.gmra.mxu2 %vm312_vm1, %v6343_v52  ;;  %2224 = vmatpush.msrb.mxu3 %v4412_v49 }
 0xa86   :  { %2781 = vmatpush.msra.mxu3 %v4451_v33 }
 0xa88   :  { %2782 = vmatpush.msra.mxu3 %v4452_v5 }
 0xa8a   :  { %2783 = vmatpush.msra.mxu3 %v4426_v38 }
 0xa8c   :  { %2784 = vmatpush.msra.mxu3 %v4427_v51  ;;  %4152 = vmatmul.msk.f32.gmra.mxu2 %vm312_vm1, %v6383_v21 }
 0xa8e   :  { %2785 = vmatpush.msra.mxu3 %v4431_v39 }
 0xa8f   :  { %v2081_v28 = vpop.xlane.xlu0 %2080 }
 0xa90   :  { %2786 = vmatpush.msra.mxu3 %v4432_v61 }
 0xa94   :  { %4153 = vmatmul.msk.f32.gmra.mxu2 %vm312_vm1, %v6367_v62 }
 0xa95   :  { %v2075_v21 = vpop.xlane.xlu2 %2074 }
 0xa97   :  { %v2090_v7 = vpop.xlane.xlu0 %2089 }
 0xa9c   :  { %4154 = vmatmul.msk.f32.gmra.mxu2 %vm312_vm1, %v6392_v30  ;;  %v2097_v30 = vsub.f32 %v6295_v57, %v2075_v21  ;;  %v2099_v57 = vsub.f32 %v6279_v29, %v2081_v28 }
 0xa9d   :  { %v2084_v49 = vpop.xlane.xlu2 %2083 }
 0xa9e   :  { %v2078_v52 = vpop.xlane.xlu1 %2077  ;;  %v2105_v47 = vmul.f32 1.442695, %v2097_v30  ;;  %v2109_v43 = vmul.f32 1.442695, %v2099_v57  ;;  %v2100_v51 = vsub.f32 %v6319_v1, %v2084_v49 }
 0xa9f   :  { %v2098_v42 = vsub.f32 %v6325_v22, %v2078_v52  ;;  %v2093_v21 = vpop.xlane.xlu0 %2092 }
 0xaa1   :  { %v2107_v14 = vmul.f32 1.442695, %v2098_v42  ;;  %v2111_v42 = vmul.f32 1.442695, %v2100_v51 }
 0xaa3   :  { %4634 = vpow2.f32 %v2107_v14 }
 0xaa4   :  { %4155 = vmatmul.msk.f32.gmra.mxu2 %vm312_vm1, %v2829_v24  ;;  %4636 = vpow2.f32 %v2105_v47 }
 0xaa5   :  { %4638 = vpow2.f32 %v2109_v43 }
 0xaa6   :  { %v2087_v14 = vpop.xlane.xlu1 %2086  ;;  %4640 = vpow2.f32 %v2111_v42 }
 0xaa7   :  { %v2101_v30 = vsub.f32 %v6355_v41, %v2087_v14 }
 0xaa9   :  { %v6441_v48 = vpop.eup %4634 }
 0xaaa   :  { %v2124_v40 = vsel %vm394_vm2, %v6441_v48, 0.0  ;;  %v6456_v55 = vpop.eup %4636 }
 0xaab   :  { %v2121_v18 = vsel %vm394_vm2, %v6456_v55, 0.0  ;;  %v6467_v5 = vpop.eup %4638 }
 0xaac   :  { %v2127_v61 = vsel %vm394_vm2, %v6467_v5, 0.0  ;;  %v6494_v41 = vpop.eup %4640 }
 0xaaf   :  { %v2331_v6 = vpop.f32.mrf.mxu2 }
 0xab0   :  { %v6428_v10 = vadd.f32 %v2331_v6, %v6286_v13 }
 0xab1   :  { %v2613_v26 = vpop.f32.mrf.mxu1 }
 0xab2   :  { %v6431_v17 = vadd.f32 %v2613_v26, %v6286_v13  ;;  %v2355_v62 = vsel %vm394_vm2, %v6428_v10, -inf }
 0xab3   :  { %2356 = vmax.xlane.f32.xlu0 %v2355_v62 }
 0xab4   :  { %v2637_v22 = vsel %vm394_vm2, %v6431_v17, -inf }
 0xab5   :  { %2638 = vmax.xlane.f32.xlu1 %v2637_v22  ;;  %v2103_v22 = vsub.f32 %v6328_v19, %v2093_v21 }
 0xab7   :  { %v2334_v35 = vpop.f32.mrf.mxu2  ;;  %v2117_v57 = vmul.f32 1.442695, %v2103_v22 }
 0xab8   :  { %v6439_v24 = vadd.f32 %v2334_v35, %v6310_v58 }
 0xab9   :  { %v2616_v20 = vpop.f32.mrf.mxu1 }
 0xaba   :  { %v6444_v23 = vadd.f32 %v2616_v20, %v6310_v58  ;;  %v2358_v37 = vsel %vm394_vm2, %v6439_v24, -inf  ;;  %v2113_v20 = vmul.f32 1.442695, %v2101_v30 }
 0xabb   :  { %2359 = vmax.xlane.f32.xlu2 %v2358_v37 }
 0xabc   :  { %v2640_v34 = vsel %vm394_vm2, %v6444_v23, -inf  ;;  %4642 = vpow2.f32 %v2113_v20 }
 0xabd   :  { %2641 = vmax.xlane.f32.xlu0 %v2640_v34  ;;  %2125 = vadd.xlane.f32.xlu1 %v2124_v40  ;;  %4644 = vpow2.f32 %v2117_v57 }
 0xabf   :  { %v2337_v27 = vpop.f32.mrf.mxu2 }
 0xac0   :  { %v6454_v56 = vadd.f32 %v2337_v27, %v6274_v2  ;;  %v2130_v27 = vsel %vm394_vm2, %v6494_v41, 0.0 }
 0xac1   :  { %v2619_v63 = vpop.f32.mrf.mxu1 }
 0xac2   :  { %v6459_v54 = vadd.f32 %v2619_v63, %v6274_v2  ;;  %v2361_v29 = vsel %vm394_vm2, %v6454_v56, -inf  ;;  %v6503_v63 = vpop.eup %4642 }
 0xac4   :  { %v2643_v16 = vsel %vm394_vm2, %v6459_v54, -inf }
 0xac5   :  { %2362 = vmax.xlane.f32.xlu1 %v2361_v29  ;;  %2644 = vmax.xlane.f32.xlu2 %v2643_v16  ;;  %v6505_v16 = vpop.eup %4644 }
 0xac6   :  { %2122 = vadd.xlane.f32.xlu0 %v2121_v18  ;;  %v2139_v51 = vsel %vm394_vm2, %v6505_v16, 0.0 }
 0xac7   :  { %v2340_v59 = vpop.f32.mrf.mxu2 }
 0xac8   :  { %v6481_v26 = vadd.f32 %v2340_v59, %v6308_v15  ;;  %v2102_v59 = vsub.f32 %v6301_v9, %v2090_v7 }
 0xac9   :  { %v2622_v33 = vpop.f32.mrf.mxu1 }
 0xaca   :  { %v6470_v38 = vadd.f32 %v2622_v33, %v6308_v15  ;;  %v2364_v28 = vsel %vm394_vm2, %v6481_v26, -inf  ;;  %v2133_v33 = vsel %vm394_vm2, %v6503_v63, 0.0 }
 0xacc   :  { %v2646_v39 = vsel %vm394_vm2, %v6470_v38, -inf }
 0xacd   :  { %2647 = vmax.xlane.f32.xlu2 %v2646_v39  ;;  %v2115_v39 = vmul.f32 1.442695, %v2102_v59 }
 0xace   :  { %2128 = vadd.xlane.f32.xlu0 %v2127_v61 }
 0xacf   :  { %v2343_v52 = vpop.f32.mrf.mxu2  ;;  %4646 = vpow2.f32 %v2115_v39 }
 0xad0   :  { %v6478_v6 = vadd.f32 %v2343_v52, %v6341_v12 }
 0xad1   :  { %v2625_v62 = vpop.f32.mrf.mxu1 }
 0xad2   :  { %v6484_v1 = vadd.f32 %v2625_v62, %v6341_v12  ;;  %v2367_v47 = vsel %vm394_vm2, %v6478_v6, -inf  ;;  %v2096_v62 = vpop.xlane.xlu2 %2095 }
 0xad4   :  { %v2649_v35 = vsel %vm394_vm2, %v6484_v1, -inf }
 0xad5   :  { %2650 = vmax.xlane.f32.xlu1 %v2649_v35  ;;  %2368 = vmax.xlane.f32.xlu2 %v2367_v47  ;;  %v6533_v35 = vpop.eup %4646 }
 0xad6   :  { %2365 = vmax.xlane.f32.xlu0 %v2364_v28  ;;  %v2104_v28 = vsub.f32 %v6350_v4, %v2096_v62 }
 0xad7   :  { %v2346_v37 = vpop.f32.mrf.mxu2 }
 0xad8   :  { %v6518_v52 = vadd.f32 %v2346_v37, %v6292_v11  ;;  %v2136_v37 = vsel %vm394_vm2, %v6533_v35, 0.0  ;;  %v2119_v57 = vmul.f32 1.442695, %v2104_v28 }
 0xad9   :  { %v2628_v34 = vpop.f32.mrf.mxu1 }
 0xada   :  { %v6497_v19 = vadd.f32 %v2628_v34, %v6292_v11  ;;  %v2370_v7 = vsel %vm394_vm2, %v6518_v52, -inf  ;;  %4648 = vpow2.f32 %v2119_v57 }
 0xadc   :  { %v2652_v40 = vsel %vm394_vm2, %v6497_v19, -inf }
 0xadd   :  { %2653 = vmax.xlane.f32.xlu2 %v2652_v40 }
 0xade   :  { %2131 = vadd.xlane.f32.xlu0 %v2130_v27 }
 0xadf   :  { %v2349_v43 = vpop.f32.mrf.mxu2 }
 0xae0   :  { %v6521_v42 = vadd.f32 %v2349_v43, %v6314_v46  ;;  %v6555_v59 = vpop.eup %4648 }
 0xae1   :  { %v2631_v29 = vpop.f32.mrf.mxu1 }
 0xae2   :  { %v6508_v18 = vadd.f32 %v2631_v29, %v6314_v46  ;;  %v2373_v9 = vsel %vm394_vm2, %v6521_v42, -inf }
 0xae4   :  { %v2655_v49 = vsel %vm394_vm2, %v6508_v18, -inf }
 0xae5   :  { %2656 = vmax.xlane.f32.xlu1 %v2655_v49  ;;  %2134 = vadd.xlane.f32.xlu2 %v2133_v33 }
 0xae6   :  { %2140 = vadd.xlane.f32.xlu0 %v2139_v51 }
 0xae7   :  { %v2352_v61 = vpop.f32.mrf.mxu2 }
 0xae9   :  { %v2634_v14 = vpop.f32.mrf.mxu1 }
 0xaea   :  { %v6528_v30 = vadd.f32 %v2634_v14, %v6336_v32 }
 0xaec   :  { %v2658_v20 = vsel %vm394_vm2, %v6528_v30, -inf }
 0xaed   :  { %2374 = vmax.xlane.f32.xlu1 %v2373_v9  ;;  %2371 = vmax.xlane.f32.xlu2 %v2370_v7 }
 0xaef   :  { %v2895_v21 = vpop.f32.mrf.mxu2 }
 0xaf0   :  { %v6531_v22 = vadd.f32 %v2895_v21, %v6286_v13  ;;  %v6543_v13 = vadd.f32 %v2352_v61, %v6336_v32 }
 0xaf2   :  { %v2919_v47 = vsel %vm394_vm2, %v6531_v22, -inf  ;;  %v2376_v27 = vsel %vm394_vm2, %v6543_v13, -inf }
 0xaf3   :  { %2920 = vmax.xlane.f32.xlu0 %v2919_v47 }
 0xaf5   :  { %2659 = vmax.xlane.f32.xlu1 %v2658_v20  ;;  %2137 = vadd.xlane.f32.xlu2 %v2136_v37 }
 0xaf7   :  { %v2898_v34 = vpop.f32.mrf.mxu2 }
 0xaf8   :  { %v6546_v40 = vadd.f32 %v2898_v34, %v6310_v58  ;;  %v2142_v58 = vsel %vm394_vm2, %v6555_v59, 0.0 }
 0xafa   :  { %v2922_v4 = vsel %vm394_vm2, %v6546_v40, -inf }
 0xafb   :  { %2923 = vmax.xlane.f32.xlu0 %v2922_v4 }
 0xafd   :  { %2377 = vmax.xlane.f32.xlu1 %v2376_v27 }
 0xaff   :  { %v2901_v43 = vpop.f32.mrf.mxu2 }
 0xb00   :  { %v6553_v29 = vadd.f32 %v2901_v43, %v6274_v2 }
 0xb02   :  { %v2925_v49 = vsel %vm394_vm2, %v6553_v29, -inf }
 0xb03   :  { %2926 = vmax.xlane.f32.xlu0 %v2925_v49 }
 0xb05   :  { %2143 = vadd.xlane.f32.xlu1 %v2142_v58 }
 0xb07   :  { %v2904_v33 = vpop.f32.mrf.mxu2 }
 0xb08   :  { %v6562_v51 = vadd.f32 %v2904_v33, %v6308_v15 }
 0xb0a   :  { %v2928_v39 = vsel %vm394_vm2, %v6562_v51, -inf }
 0xb0b   :  { %2929 = vmax.xlane.f32.xlu0 %v2928_v39 }
 0xb0f   :  { %v2907_v2 = vpop.f32.mrf.mxu2 }
 0xb10   :  { %v6567_v61 = vadd.f32 %v2907_v2, %v6341_v12 }
 0xb12   :  { %v2931_v9 = vsel %vm394_vm2, %v6567_v61, -inf }
 0xb13   :  { %2932 = vmax.xlane.f32.xlu1 %v2931_v9 }
 0xb17   :  { %v2910_v7 = vpop.f32.mrf.mxu2 }
 0xb18   :  { %v6572_v14 = vadd.f32 %v2910_v7, %v6292_v11 }
 0xb1a   :  { %v2934_v15 = vsel %vm394_vm2, %v6572_v14, -inf }
 0xb1b   :  { %2935 = vmax.xlane.f32.xlu0 %v2934_v15 }
 0xb1f   :  { %v2913_v21 = vpop.f32.mrf.mxu2 }
 0xb20   :  { %v6577_v62 = vadd.f32 %v2913_v21, %v6314_v46 }
 0xb22   :  { %v2937_v12 = vsel %vm394_vm2, %v6577_v62, -inf }
 0xb23   :  { %2938 = vmax.xlane.f32.xlu2 %v2937_v12 }
 0xb26   :  { %v2357_v47 = vpop.xlane.xlu0 %2356 }
 0xb27   :  { %v2379_v37 = vsub.f32 %v6428_v10, %v2357_v47 }
 0xb28   :  { %v2639_v28 = vpop.xlane.xlu1 %2638 }
 0xb29   :  { %v2661_v20 = vsub.f32 %v6431_v17, %v2639_v28  ;;  %v2387_v57 = vmul.f32 1.442695, %v2379_v37 }
 0xb2b   :  { %v2669_v11 = vmul.f32 1.442695, %v2661_v20 }
 0xb2d   :  { %4650 = vpow2.f32 %v2669_v11 }
 0xb2e   :  { %v2360_v34 = vpop.xlane.xlu2 %2359  ;;  %4652 = vpow2.f32 %v2387_v57 }
 0xb2f   :  { %v2380_v49 = vsub.f32 %v6439_v24, %v2360_v34  ;;  %v2916_v34 = vpop.f32.mrf.mxu2 }
 0xb30   :  { %v2642_v4 = vpop.xlane.xlu0 %2641  ;;  %v2126_v27 = vpop.xlane.xlu1 %2125 }
 0xb31   :  { %v2662_v43 = vsub.f32 %v6444_v23, %v2642_v4  ;;  %v2389_v10 = vmul.f32 1.442695, %v2380_v49 }
 0xb33   :  { %v6584_v46 = vpop.eup %4650  ;;  %v2671_v58 = vmul.f32 1.442695, %v2662_v43 }
 0xb34   :  { %v2685_v33 = vsel %vm394_vm2, %v6584_v46, 0.0  ;;  %v6591_v2 = vpop.eup %4652 }
 0xb35   :  { %4654 = vpow2.f32 %v2671_v58  ;;  %2686 = vadd.xlane.f32.xlu0 %v2685_v33  ;;  %v2403_v21 = vsel %vm394_vm2, %v6591_v2, 0.0 }
 0xb38   :  { %v2363_v17 = vpop.xlane.xlu1 %2362  ;;  %v6589_v39 = vpop.xlane.xlu2 %2644 }
 0xb39   :  { %v2381_v9 = vsub.f32 %v6454_v56, %v2363_v17  ;;  %v2123_v23 = vpop.xlane.xlu0 %2122 }
 0xb3a   :  { %4656 = vrcp.f32 %v2123_v23 }
 0xb3b   :  { %v6594_v7 = vpop.eup %4654  ;;  %4658 = vpow2.f32 %v2389_v10  ;;  %v2391_v24 = vmul.f32 1.442695, %v2381_v9 }
 0xb3c   :  { %v2688_v15 = vsel %vm394_vm2, %v6594_v7, 0.0 }
 0xb3d   :  { %4660 = vpow2.f32 %v2391_v24  ;;  %2689 = vadd.xlane.f32.xlu2 %v2688_v15  ;;  %2404 = vadd.xlane.f32.xlu0 %v2403_v21 }
 0xb3e   :  { %4662 = vrcp.f32 %v2126_v27  ;;  %v6613_v27 = vadd.f32 %v2916_v34, %v6336_v32 }
 0xb40   :  { %v4657_v12 = vpop.eup %4656  ;;  %v6600_v47 = vpop.xlane.xlu2 %2647  ;;  %v2940_v58 = vsel %vm394_vm2, %v6613_v27, -inf }
 0xb41   :  { %v6602_v56 = vpop.eup %4658  ;;  %v2153_v28 = vmul.f32 %v4657_v12, %v6456_v55  ;;  %v2129_v20 = vpop.xlane.xlu0 %2128 }
 0xb42   :  { %v2406_v57 = vsel %vm394_vm2, %v6602_v56, 0.0  ;;  %4664 = vrcp.f32 %v2129_v20 }
 0xb43   :  { %v6605_v37 = vpop.eup %4660  ;;  %4084 = vmatmul.msk.f32.vlgmr.msrb.gmra.mxu3 %vm394_vm2, %v2153_v28 }
 0xb44   :  { %v2409_v11 = vsel %vm394_vm2, %v6605_v37, 0.0  ;;  %v4663_v4 = vpop.eup %4662 }
 0xb45   :  { %2410 = vadd.xlane.f32.xlu1 %v2409_v11  ;;  %2407 = vadd.xlane.f32.xlu2 %v2406_v57  ;;  %v2154_v49 = vmul.f32 %v4663_v4, %v6441_v48 }
 0xb48   :  { %v2369_v55 = vpop.xlane.xlu2 %2368  ;;  %v4665_v33 = vpop.eup %4664 }
 0xb49   :  { %v2366_v43 = vpop.xlane.xlu0 %2365  ;;  %v6619_v10 = vpop.xlane.xlu1 %2650  ;;  %v2155_v32 = vmul.f32 %v4665_v33, %v6467_v5 }
 0xb4b   :  { %4085 = vmatmul.msk.f32.gmra.mxu3 %vm394_vm2, %v2154_v49  ;;  %v2382_v49 = vsub.f32 %v6481_v26, %v2366_v43 }
 0xb4d   :  { %2941 = vmax.xlane.f32.xlu2 %v2940_v58  ;;  %v2393_v58 = vmul.f32 1.442695, %v2382_v49 }
 0xb50   :  { %v6621_v17 = vpop.xlane.xlu2 %2653 }
 0xb51   :  { %v2132_v9 = vpop.xlane.xlu0 %2131  ;;  %4459 = vrot.lane.b32.xlu0 %v6205_v31, %s4906_s12 }
 0xb52   :  { %4666 = vrcp.f32 %v2132_v9 }
 0xb53   :  { %4086 = vmatmul.msk.f32.gmra.mxu3 %vm394_vm2, %v2155_v32 }
 0xb58   :  { %v4667_v48 = vpop.eup %4666  ;;  %v6627_v23 = vpop.xlane.xlu1 %2656 }
 0xb59   :  { %v2135_v24 = vpop.xlane.xlu2 %2134  ;;  %v2156_v15 = vmul.f32 %v4667_v48, %v6494_v41  ;;  %v2141_v12 = vpop.xlane.xlu0 %2140 }
 0xb5a   :  { %4668 = vrcp.f32 %v2135_v24 }
 0xb5b   :  { %4087 = vmatmul.msk.f32.gmra.mxu3 %vm394_vm2, %v2156_v15 }
 0xb5e   :  { %4464 = vrot.lane.b32.xlu1 %v6219_v3, %s4904_s9 }
 0xb60   :  { %v4669_v21 = vpop.eup %4668  ;;  %v2375_v28 = vpop.xlane.xlu1 %2374 }
 0xb61   :  { %v2372_v20 = vpop.xlane.xlu2 %2371  ;;  %v2157_v5 = vmul.f32 %v4669_v21, %v6503_v63 }
 0xb62   :  { %v2384_v11 = vsub.f32 %v6518_v52, %v2372_v20  ;;  %v2383_v52 = vsub.f32 %v6478_v6, %v2369_v55 }
 0xb63   :  { %4088 = vmatmul.msk.f32.gmra.mxu3 %vm394_vm2, %v2157_v5 }
 0xb64   :  { %v2397_v57 = vmul.f32 1.442695, %v2384_v11  ;;  %v2395_v26 = vmul.f32 1.442695, %v2383_v52 }
 0xb66   :  { %4670 = vpow2.f32 %v2397_v57  ;;  %v2921_v34 = vpop.xlane.xlu0 %2920 }
 0xb68   :  { %v6636_v4 = vpop.xlane.xlu1 %2659 }
 0xb69   :  { %v2138_v41 = vpop.xlane.xlu2 %2137 }
 0xb6a   :  { %4672 = vrcp.f32 %v2138_v41 }
 0xb6b   :  { %4674 = vrcp.f32 %v2141_v12  ;;  %v2385_v12 = vsub.f32 %v6521_v42, %v2375_v28 }
 0xb6c   :  { %v6639_v3 = vpop.eup %4670  ;;  %4676 = vpow2.f32 %v2393_v58 }
 0xb6d   :  { %v2418_v33 = vsel %vm394_vm2, %v6639_v3, 0.0  ;;  %4678 = vpow2.f32 %v2395_v26  ;;  %v2399_v5 = vmul.f32 1.442695, %v2385_v12  ;;  %v2664_v12 = vsub.f32 %v6470_v38, %v6600_v47 }
 0xb6e   :  { %2419 = vadd.xlane.f32.xlu2 %v2418_v33  ;;  %v2924_v48 = vpop.xlane.xlu0 %2923  ;;  %v2668_v38 = vsub.f32 %v6528_v30, %v6636_v4 }
 0xb6f   :  { %v2944_v24 = vsub.f32 %v6546_v40, %v2924_v48 }
 0xb70   :  { %v4673_v63 = vpop.eup %4672  ;;  %v2378_v9 = vpop.xlane.xlu1 %2377 }
 0xb71   :  { %v2158_v32 = vmul.f32 %v4673_v63, %v6533_v35  ;;  %v4675_v43 = vpop.eup %4674  ;;  %v2953_v6 = vmul.f32 1.442695, %v2944_v24 }
 0xb72   :  { %v6647_v15 = vpop.eup %4676  ;;  %v2159_v20 = vmul.f32 %v4675_v43, %v6505_v16  ;;  %v2386_v16 = vsub.f32 %v6543_v13, %v2378_v9  ;;  %v2943_v13 = vsub.f32 %v6531_v22, %v2921_v34 }
 0xb73   :  { %4089 = vmatmul.msk.f32.gmra.mxu3 %vm394_vm2, %v2158_v32  ;;  %v2412_v35 = vsel %vm394_vm2, %v6647_v15, 0.0  ;;  %v6654_v11 = vpop.eup %4678 }
 0xb74   :  { %v2415_v42 = vsel %vm394_vm2, %v6654_v11, 0.0  ;;  %v2401_v41 = vmul.f32 1.442695, %v2386_v16  ;;  %v2951_v63 = vmul.f32 1.442695, %v2943_v13 }
 0xb76   :  { %v2927_v55 = vpop.xlane.xlu0 %2926 }
 0xb78   :  { %v2144_v21 = vpop.xlane.xlu1 %2143 }
 0xb79   :  { %4680 = vrcp.f32 %v2144_v21 }
 0xb7a   :  { %4682 = vpow2.f32 %v2953_v6 }
 0xb7b   :  { %4090 = vmatmul.msk.f32.gmra.mxu3 %vm394_vm2, %v2159_v20  ;;  %2413 = vadd.xlane.f32.xlu0 %v2412_v35  ;;  %4684 = vpow2.f32 %v2399_v5  ;;  %v2675_v5 = vmul.f32 1.442695, %v2664_v12 }
 0xb7c   :  { %4686 = vpow2.f32 %v2401_v41  ;;  %v2683_v41 = vmul.f32 1.442695, %v2668_v38 }
 0xb7d   :  { %4688 = vpow2.f32 %v2951_v63 }
 0xb7e   :  { %v2930_v49 = vpop.xlane.xlu0 %2929 }
 0xb7f   :  { %v4681_v40 = vpop.eup %4680  ;;  %v2946_v16 = vsub.f32 %v6562_v51, %v2930_v49 }
 0xb80   :  { %v2160_v57 = vmul.f32 %v4681_v40, %v6555_v59  ;;  %v6661_v28 = vpop.eup %4682 }
 0xb81   :  { %v6665_v58 = vpop.eup %4684  ;;  %v2970_v59 = vsel %vm394_vm2, %v6661_v28, 0.0 }
 0xb82   :  { %v2421_v33 = vsel %vm394_vm2, %v6665_v58, 0.0  ;;  %v6672_v9 = vpop.eup %4686 }
 0xb83   :  { %4091 = vmatmul.msk.f32.gmra.mxu3 %vm394_vm2, %v2160_v57  ;;  %2416 = vadd.xlane.f32.xlu0 %v2415_v42  ;;  %v2424_v26 = vsel %vm394_vm2, %v6672_v9, 0.0  ;;  %v6679_v43 = vpop.eup %4688 }
 0xb84   :  { %v2967_v20 = vsel %vm394_vm2, %v6679_v43, 0.0 }
 0xb86   :  { %4469 = vrot.lane.b32.xlu2 %v6205_v31, %s4904_s9  ;;  %v2663_v31 = vsub.f32 %v6459_v54, %v6589_v39  ;;  %v2933_v13 = vpop.xlane.xlu1 %2932 }
 0xb88   :  { %2971 = vadd.xlane.f32.xlu1 %v2970_v59  ;;  %v2673_v22 = vmul.f32 1.442695, %v2663_v31  ;;  %v2957_v59 = vmul.f32 1.442695, %v2946_v16 }
 0xb8b   :  { %2422 = vadd.xlane.f32.xlu0 %v2421_v33  ;;  %v2947_v33 = vsub.f32 %v6567_v61, %v2933_v13  ;;  %v2666_v61 = vsub.f32 %v6497_v19, %v6621_v17 }
 0xb8e   :  { %v2936_v52 = vpop.xlane.xlu0 %2935 }
 0xb8f   :  { %v2948_v32 = vsub.f32 %v6572_v14, %v2936_v52  ;;  %v2665_v14 = vsub.f32 %v6484_v1, %v6619_v10  ;;  %v2945_v1 = vsub.f32 %v6553_v29, %v2927_v55 }
 0xb91   :  { %v2961_v48 = vmul.f32 1.442695, %v2948_v32  ;;  %v2955_v47 = vmul.f32 1.442695, %v2945_v1  ;;  %v2959_v32 = vmul.f32 1.442695, %v2947_v33 }
 0xb93   :  { %4690 = vpow2.f32 %v2961_v48  ;;  %2425 = vadd.xlane.f32.xlu0 %v2424_v26 }
 0xb94   :  { %4692 = vpow2.f32 %v2673_v22 }
 0xb96   :  { %v2939_v34 = vpop.xlane.xlu2 %2938 }
 0xb97   :  { %v2949_v24 = vsub.f32 %v6577_v62, %v2939_v34  ;;  %v2677_v62 = vmul.f32 1.442695, %v2665_v14  ;;  %v2679_v14 = vmul.f32 1.442695, %v2666_v61 }
 0xb99   :  { %v6682_v21 = vpop.eup %4690  ;;  %v2963_v54 = vmul.f32 1.442695, %v2949_v24 }
 0xb9a   :  { %v2982_v39 = vsel %vm394_vm2, %v6682_v21, 0.0  ;;  %v6692_v6 = vpop.eup %4692 }
 0xb9b   :  { %4694 = vpow2.f32 %v2963_v54  ;;  %2983 = vadd.xlane.f32.xlu1 %v2982_v39  ;;  %2968 = vadd.xlane.f32.xlu0 %v2967_v20  ;;  %v2691_v10 = vsel %vm394_vm2, %v6692_v6, 0.0 }
 0xb9c   :  { %4696 = vpow2.f32 %v2677_v62 }
 0xb9d   :  { %4698 = vpow2.f32 %v2675_v5 }
 0xb9e   :  { %4700 = vpow2.f32 %v2955_v47 }
 0xb9f   :  { %4702 = vpow2.f32 %v2683_v41 }
 0xba0   :  { %4704 = vpow2.f32 %v2957_v59 }
 0xba1   :  { %v6694_v35 = vpop.eup %4694 }
 0xba2   :  { %v2985_v40 = vsel %vm394_vm2, %v6694_v35, 0.0  ;;  %v6703_v57 = vpop.eup %4696 }
 0xba3   :  { %2692 = vadd.xlane.f32.xlu0 %v2691_v10  ;;  %2986 = vadd.xlane.f32.xlu1 %v2985_v40  ;;  %v2697_v29 = vsel %vm394_vm2, %v6703_v57, 0.0  ;;  %v6708_v55 = vpop.eup %4698 }
 0xba4   :  { %v2694_v30 = vsel %vm394_vm2, %v6708_v55, 0.0  ;;  %v6712_v4 = vpop.eup %4700 }
 0xba5   :  { %v2973_v63 = vsel %vm394_vm2, %v6712_v4, 0.0  ;;  %v6717_v52 = vpop.eup %4702 }
 0xba6   :  { %v6719_v31 = vpop.eup %4704  ;;  %v2706_v48 = vsel %vm394_vm2, %v6717_v52, 0.0 }
 0xba7   :  { %v2976_v24 = vsel %vm394_vm2, %v6719_v31, 0.0 }
 0xba8   :  { %v2687_v42 = vpop.xlane.xlu0 %2686 }
 0xbab   :  { %2698 = vadd.xlane.f32.xlu0 %v2697_v29 }
 0xbaf   :  { %2695 = vadd.xlane.f32.xlu2 %v2694_v30 }
 0xbb0   :  { %v2405_v51 = vpop.xlane.xlu0 %2404  ;;  %v2690_v49 = vpop.xlane.xlu2 %2689 }
 0xbb1   :  { %4706 = vrcp.f32 %v2405_v51 }
 0xbb2   :  { %4708 = vpow2.f32 %v2959_v32 }
 0xbb3   :  { %2974 = vadd.xlane.f32.xlu0 %v2973_v63 }
 0xbb7   :  { %v4707_v26 = vpop.eup %4706  ;;  %2707 = vadd.xlane.f32.xlu2 %v2706_v48 }
 0xbb8   :  { %v2435_v22 = vmul.f32 %v4707_v26, %v6591_v2  ;;  %v2408_v34 = vpop.xlane.xlu2 %2407  ;;  %v2411_v54 = vpop.xlane.xlu1 %2410  ;;  %v2667_v2 = vsub.f32 %v6508_v18, %v6627_v23 }
 0xbb9   :  { %4710 = vrcp.f32 %v2408_v34  ;;  %v6729_v39 = vpop.eup %4708 }
 0xbba   :  { %4108 = vmatmul.msk.f32.vlgmr.msrb.gmra.mxu0 %vm394_vm2, %v2435_v22  ;;  %4712 = vrcp.f32 %v2687_v42  ;;  %v2979_v17 = vsel %vm394_vm2, %v6729_v39, 0.0  ;;  %v2681_v1 = vmul.f32 1.442695, %v2667_v2 }
 0xbbb   :  { %2977 = vadd.xlane.f32.xlu0 %v2976_v24  ;;  %4714 = vrcp.f32 %v2411_v54 }
 0xbbc   :  { %4716 = vpow2.f32 %v2679_v14 }
 0xbbd   :  { %4718 = vrcp.f32 %v2690_v49 }
 0xbbe   :  { %4720 = vpow2.f32 %v2681_v1 }
 0xbbf   :  { %v4711_v20 = vpop.eup %4710 }
 0xbc0   :  { %v2436_v19 = vmul.f32 %v4711_v20, %v6602_v56  ;;  %v4713_v62 = vpop.eup %4712  ;;  %v2942_v40 = vpop.xlane.xlu2 %2941 }
 0xbc1   :  { %v4715_v10 = vpop.eup %4714  ;;  %v2717_v18 = vmul.f32 %v4713_v62, %v6584_v46  ;;  %v2950_v56 = vsub.f32 %v6613_v27, %v2942_v40 }
 0xbc2   :  { %4109 = vmatmul.msk.f32.gmra.mxu0 %vm394_vm2, %v2436_v19  ;;  %v6737_v47 = vpop.eup %4716  ;;  %v2437_v23 = vmul.f32 %v4715_v10, %v6605_v37 }
 0xbc3   :  { %v4460_v12 = vpop.permute.xlu0 %4459  ;;  %2980 = vadd.xlane.f32.xlu0 %v2979_v17  ;;  %v2700_v16 = vsel %vm394_vm2, %v6737_v47, 0.0  ;;  %v4719_v42 = vpop.eup %4718  ;;  %v2965_v41 = vmul.f32 1.442695, %v2950_v56 }
 0xbc4   :  { %v4461_v5 = vunpack.i.l.bf16 %v4460_v12  ;;  %v4462_v38 = vunpack.i.h.bf16 %v4460_v12  ;;  %v6746_v29 = vpop.eup %4720  ;;  %v2718_v46 = vmul.f32 %v4719_v42, %v6594_v7 }
 0xbc5   :  { %4722 = vpow2.f32 %v2965_v41  ;;  %v2703_v37 = vsel %vm394_vm2, %v6746_v29, 0.0 }
 0xbc6   :  { %2787 = vmatpush.msra.mxu3 %v4461_v5  ;;  %v6759_v14 = vpop.f32.mrf.mxu3 }
 0xbc8   :  { %2788 = vmatpush.msra.mxu3 %v4462_v38 }
 0xbc9   :  { %4132 = vmatmul.msk.f32.vlgmr.msra.gmra.mxu3 %vm394_vm2, %v2717_v18 }
 0xbca   :  { %4110 = vmatmul.msk.f32.gmra.mxu0 %vm394_vm2, %v2437_v23 }
 0xbcb   :  { %2701 = vadd.xlane.f32.xlu0 %v2700_v16  ;;  %v6752_v30 = vpop.eup %4722 }
 0xbcc   :  { %v2988_v51 = vsel %vm394_vm2, %v6752_v30, 0.0 }
 0xbd0   :  { %v4465_v59 = vpop.permute.xlu1 %4464 }
 0xbd1   :  { %v4466_v13 = vunpack.i.l.bf16 %v4465_v59  ;;  %4133 = vmatmul.msk.f32.gmra.mxu3 %vm394_vm2, %v2718_v46  ;;  %v4467_v27 = vunpack.i.h.bf16 %v4465_v59 }
 0xbd3   :  { %3067 = vmatpush.msra.mxu0 %v4466_v13  ;;  %2704 = vadd.xlane.f32.xlu0 %v2703_v37 }
 0xbd5   :  { %3068 = vmatpush.msra.mxu0 %v4467_v27 }
 0xbdb   :  { %2989 = vadd.xlane.f32.xlu0 %v2988_v51 }
 0xbe1   :  { %v2420_v49 = vpop.xlane.xlu2 %2419 }
 0xbe9   :  { %v4470_v7 = vpop.permute.xlu2 %4469 }
 0xbea   :  { %v4471_v33 = vunpack.i.l.bf16 %v4470_v7  ;;  %v4472_v63 = vunpack.i.h.bf16 %v4470_v7 }
 0xbec   :  { %3069 = vmatpush.msra.mxu0 %v4471_v33 }
 0xbee   :  { %3070 = vmatpush.msra.mxu0 %v4472_v63  ;;  %v2414_v32 = vpop.xlane.xlu0 %2413 }
 0xbef   :  { %4724 = vrcp.f32 %v2414_v32 }
 0xbf5   :  { %v4725_v48 = vpop.eup %4724 }
 0xbf6   :  { %v2417_v26 = vpop.xlane.xlu0 %2416  ;;  %v2438_v22 = vmul.f32 %v4725_v48, %v6647_v15  ;;  %v6764_v15 = vpop.f32.mrf.mxu3 }
 0xbf7   :  { %4726 = vrcp.f32 %v2417_v26 }
 0xbf8   :  { %4111 = vmatmul.msk.f32.gmra.mxu0 %vm394_vm2, %v2438_v22  ;;  %4728 = vrcp.f32 %v2420_v49 }
 0xbfd   :  { %v4727_v34 = vpop.eup %4726 }
 0xbfe   :  { %v2423_v61 = vpop.xlane.xlu0 %2422  ;;  %v2439_v24 = vmul.f32 %v4727_v34, %v6654_v11  ;;  %v4729_v54 = vpop.eup %4728 }
 0xbff   :  { %4730 = vrcp.f32 %v2423_v61  ;;  %v2440_v2 = vmul.f32 %v4729_v54, %v6639_v3  ;;  %v6768_v62 = vpop.f32.mrf.mxu3  ;;  %v2972_v3 = vpop.xlane.xlu1 %2971 }
 0xc00   :  { %4112 = vmatmul.msk.f32.gmra.mxu0 %vm394_vm2, %v2439_v24 }
 0xc05   :  { %v4731_v19 = vpop.eup %4730 }
 0xc06   :  { %v2426_v20 = vpop.xlane.xlu0 %2425  ;;  %v2441_v12 = vmul.f32 %v4731_v19, %v6665_v58 }
 0xc07   :  { %4732 = vrcp.f32 %v2426_v20  ;;  %v6772_v38 = vpop.f32.mrf.mxu3 }
 0xc08   :  { %4113 = vmatmul.msk.f32.gmra.mxu0 %vm394_vm2, %v2440_v2 }
 0xc0d   :  { %v4733_v11 = vpop.eup %4732 }
 0xc0e   :  { %v2969_v17 = vpop.xlane.xlu0 %2968  ;;  %v2442_v1 = vmul.f32 %v4733_v11, %v6672_v9  ;;  %v2984_v33 = vpop.xlane.xlu1 %2983 }
 0xc0f   :  { %4734 = vrcp.f32 %v2969_v17  ;;  %v6779_v41 = vpop.f32.mrf.mxu3 }
 0xc10   :  { %4114 = vmatmul.msk.f32.gmra.mxu0 %vm394_vm2, %v2441_v12 }
 0xc15   :  { %v4735_v10 = vpop.eup %4734 }
 0xc16   :  { %v2693_v5 = vpop.xlane.xlu0 %2692  ;;  %v2999_v58 = vmul.f32 %v4735_v10, %v6679_v43 }
 0xc17   :  { %4736 = vrcp.f32 %v2693_v5  ;;  %v6785_v27 = vpop.f32.mrf.mxu3 }
 0xc18   :  { %4115 = vmatmul.msk.f32.gmra.mxu0 %vm394_vm2, %v2442_v1  ;;  %4738 = vrcp.f32 %v2972_v3 }
 0xc1d   :  { %v4737_v40 = vpop.eup %4736 }
 0xc1e   :  { %v2699_v18 = vpop.xlane.xlu0 %2698  ;;  %v2719_v56 = vmul.f32 %v4737_v40, %v6692_v6  ;;  %v4739_v9 = vpop.eup %4738 }
 0xc1f   :  { %v3000_v42 = vmul.f32 %v4739_v9, %v6661_v28 }
 0xc20   :  { %4134 = vmatmul.msk.f32.gmra.mxu3 %vm394_vm2, %v2719_v56  ;;  %4156 = vmatmul.msk.f32.vlgmr.msra.gmra.mxu0 %vm394_vm2, %v2999_v58 }
 0xc22   :  { %v2696_v23 = vpop.xlane.xlu2 %2695 }
 0xc23   :  { %4740 = vrcp.f32 %v2696_v23 }
 0xc26   :  { %v2975_v16 = vpop.xlane.xlu0 %2974 }
 0xc27   :  { %4742 = vrcp.f32 %v2975_v16 }
 0xc28   :  { %4157 = vmatmul.msk.f32.gmra.mxu0 %vm394_vm2, %v3000_v42  ;;  %4744 = vrcp.f32 %v2699_v18 }
 0xc29   :  { %v4741_v46 = vpop.eup %4740 }
 0xc2a   :  { %v2720_v43 = vmul.f32 %v4741_v46, %v6708_v55 }
 0xc2c   :  { %4135 = vmatmul.msk.f32.gmra.mxu3 %vm394_vm2, %v2720_v43 }
 0xc2d   :  { %v4743_v6 = vpop.eup %4742 }
 0xc2e   :  { %v2978_v59 = vpop.xlane.xlu0 %2977  ;;  %v3001_v13 = vmul.f32 %v4743_v6, %v6712_v4  ;;  %v4745_v37 = vpop.eup %4744 }
 0xc2f   :  { %4746 = vrcp.f32 %v2978_v59  ;;  %v2721_v28 = vmul.f32 %v4745_v37, %v6703_v57  ;;  %v6793_v4 = vpop.f32.mrf.mxu3 }
 0xc30   :  { %4158 = vmatmul.msk.f32.gmra.mxu0 %vm394_vm2, %v3001_v13 }
 0xc34   :  { %4136 = vmatmul.msk.f32.gmra.mxu3 %vm394_vm2, %v2721_v28 }
 0xc35   :  { %v4747_v51 = vpop.eup %4746 }
 0xc36   :  { %v2981_v49 = vpop.xlane.xlu0 %2980  ;;  %v3002_v55 = vmul.f32 %v4747_v51, %v6719_v31  ;;  %v2987_v31 = vpop.xlane.xlu1 %2986  ;;  %v4280_v51 = vld [vmem:[%s7220_s5 + $0x68] sm:$0xff]  }
 0xc37   :  { %4748 = vrcp.f32 %v2981_v49  ;;  %v2508_v7 = vpop.f32.mrf.mxu0  ;;  %v6798_v22 = vpop.f32.mrf.mxu3  ;;  %v4237_v49 = vunpack.c.h.bf16 %v4280_v51 }
 0xc38   :  { %3104 = vrot.lane.b32.xlu1 %v2508_v7, %s4898_s10  ;;  %4159 = vmatmul.msk.f32.gmra.mxu0 %vm394_vm2, %v3002_v55  ;;  %4750 = vrcp.f32 %v2984_v33  ;;  %v4236_v55 = vunpack.c.l.bf16 %v4280_v51  ;;  %v4279_v7 = vld [vmem:[%s7220_s5 + $0x60] sm:$0xff]  }
 0xc39   :  { %3253 = vmatpush.msrb.mxu1 %v4237_v49  ;;  %v4233_v33 = vunpack.c.h.bf16 %v4279_v7 }
 0xc3b   :  { %3254 = vmatpush.msrb.mxu1 %v4236_v55 }
 0xc3d   :  { %v4749_v63 = vpop.eup %4748  ;;  %3255 = vmatpush.msrb.mxu1 %v4233_v33 }
 0xc3e   :  { %v2702_v32 = vpop.xlane.xlu0 %2701  ;;  %v3003_v57 = vmul.f32 %v4749_v63, %v6729_v39  ;;  %v4751_v26 = vpop.eup %4750  ;;  %v4232_v63 = vunpack.c.l.bf16 %v4279_v7 }
 0xc3f   :  { %4752 = vrcp.f32 %v2702_v32  ;;  %v2511_v48 = vpop.f32.mrf.mxu0  ;;  %v3004_v54 = vmul.f32 %v4751_v26, %v6682_v21  ;;  %v2708_v39 = vpop.xlane.xlu2 %2707 }
 0xc40   :  { %4160 = vmatmul.msk.f32.gmra.mxu0 %vm394_vm2, %v3003_v57  ;;  %3106 = vrot.lane.b32.xlu1 %v2511_v48, %s4898_s10  ;;  %4754 = vrcp.f32 %v2987_v31 }
 0xc41   :  { %3256 = vmatpush.msrb.mxu1 %v4232_v63 }
 0xc45   :  { %v4753_v34 = vpop.eup %4752 }
 0xc46   :  { %v2705_v61 = vpop.xlane.xlu0 %2704  ;;  %v2722_v24 = vmul.f32 %v4753_v34, %v6737_v47  ;;  %v4755_v2 = vpop.eup %4754 }
 0xc47   :  { %4756 = vrcp.f32 %v2705_v61  ;;  %v2514_v20 = vpop.f32.mrf.mxu0  ;;  %v3005_v21 = vmul.f32 %v4755_v2, %v6694_v35 }
 0xc48   :  { %4137 = vmatmul.msk.f32.gmra.mxu3 %vm394_vm2, %v2722_v24  ;;  %4161 = vmatmul.msk.f32.gmra.mxu0 %vm394_vm2, %v3004_v54  ;;  %4758 = vrcp.f32 %v2708_v39 }
 0xc49   :  { %3108 = vrot.lane.b32.xlu1 %v2514_v20, %s4898_s10 }
 0xc4c   :  { %v2790_v19 = vpop.f32.mrf.mxu3 }
 0xc4d   :  { %v4757_v17 = vpop.eup %4756  ;;  %3136 = vrot.lane.b32.xlu2 %v2790_v19, %s4913_s4 }
 0xc4e   :  { %v2990_v12 = vpop.xlane.xlu0 %2989  ;;  %v2723_v47 = vmul.f32 %v4757_v17, %v6746_v29  ;;  %v4759_v11 = vpop.eup %4758 }
 0xc4f   :  { %4760 = vrcp.f32 %v2990_v12  ;;  %v2724_v3 = vmul.f32 %v4759_v11, %v6717_v52 }
 0xc50   :  { %4138 = vmatmul.msk.f32.gmra.mxu3 %vm394_vm2, %v2723_v47  ;;  %4162 = vmatmul.msk.f32.gmra.mxu0 %vm394_vm2, %v3005_v21 }
 0xc54   :  { %v2793_v5 = vpop.f32.mrf.mxu3 }
 0xc55   :  { %v4761_v1 = vpop.eup %4760  ;;  %3138 = vrot.lane.b32.xlu2 %v2793_v5, %s4913_s4 }
 0xc56   :  { %v3006_v10 = vmul.f32 %v4761_v1, %v6752_v30 }
 0xc58   :  { %4139 = vmatmul.msk.f32.gmra.mxu3 %vm394_vm2, %v2724_v3  ;;  %4163 = vmatmul.msk.f32.gmra.mxu0 %vm394_vm2, %v3006_v10 }
 0xc75   :  { %v2517_v29 = vpop.f32.mrf.mxu0 }
 0xc76   :  { %3110 = vrot.lane.b32.xlu1 %v2517_v29, %s4898_s10 }
 0xc7d   :  { %v2520_v35 = vpop.f32.mrf.mxu0 }
 0xc7e   :  { %3112 = vrot.lane.b32.xlu1 %v2520_v35, %s4898_s10 }
 0xc85   :  { %v2523_v40 = vpop.f32.mrf.mxu0 }
 0xc86   :  { %3114 = vrot.lane.b32.xlu1 %v2523_v40, %s4898_s10 }
 0xc8d   :  { %v2526_v58 = vpop.f32.mrf.mxu0 }
 0xc8e   :  { %3116 = vrot.lane.b32.xlu1 %v2526_v58, %s4898_s10 }
 0xc95   :  { %v2529_v18 = vpop.f32.mrf.mxu0 }
 0xc96   :  { %3118 = vrot.lane.b32.xlu1 %v2529_v18, %s4898_s10 }
 0xc9d   :  { %v3072_v52 = vpop.f32.mrf.mxu0 }
 0xc9e   :  { %3168 = vrot.lane.b32.xlu0 %v3072_v52, %s4912_s11 }
 0xca3   :  { %v2796_v30 = vpop.f32.mrf.mxu3 }
 0xca4   :  { %3140 = vrot.lane.b32.xlu2 %v2796_v30, %s4913_s4 }
 0xca5   :  { %v3075_v56 = vpop.f32.mrf.mxu0 }
 0xca6   :  { %3170 = vrot.lane.b32.xlu0 %v3075_v56, %s4912_s11 }
 0xca7   :  { %v3137_v57 = vpop.permute.xlu2 %3136 }
 0xcaa   :  { %v3105_v32 = vpop.permute.xlu1 %3104 }
 0xcab   :  { %v3192_v31 = vsel %vm312_vm1, %v6759_v14, %v3105_v32 }
 0xcac   :  { %v3200_v34 = vsel %vm1522_vm3, %v3192_v31, %v3137_v57 }
 0xcad   :  { %v3078_v23 = vpop.f32.mrf.mxu0 }
 0xcae   :  { %3172 = vrot.lane.b32.xlu0 %v3078_v23, %s4912_s11 }
 0xcaf   :  { %v2799_v9 = vpop.f32.mrf.mxu3  ;;  %v3139_v26 = vpop.permute.xlu2 %3138 }
 0xcb0   :  { %3142 = vrot.lane.b32.xlu2 %v2799_v9, %s4913_s4 }
 0xcb2   :  { %v3107_v48 = vpop.permute.xlu1 %3106 }
 0xcb3   :  { %v3193_v20 = vsel %vm312_vm1, %v6764_v15, %v3107_v48 }
 0xcb4   :  { %v3201_v2 = vsel %vm1522_vm3, %v3193_v20, %v3139_v26 }
 0xcb5   :  { %v3081_v16 = vpop.f32.mrf.mxu0 }
 0xcb6   :  { %3174 = vrot.lane.b32.xlu0 %v3081_v16, %s4912_s11 }
 0xcb7   :  { %v2802_v42 = vpop.f32.mrf.mxu3 }
 0xcb8   :  { %3144 = vrot.lane.b32.xlu2 %v2802_v42, %s4913_s4 }
 0xcbb   :  { %v3109_v54 = vpop.permute.xlu1 %3108 }
 0xcbc   :  { %v3194_v12 = vsel %vm312_vm1, %v6768_v62, %v3109_v54 }
 0xcbd   :  { %v3084_v46 = vpop.f32.mrf.mxu0 }
 0xcbe   :  { %3176 = vrot.lane.b32.xlu0 %v3084_v46, %s4912_s11 }
 0xcc5   :  { %v3087_v43 = vpop.f32.mrf.mxu0 }
 0xcc6   :  { %3178 = vrot.lane.b32.xlu0 %v3087_v43, %s4912_s11 }
 0xccb   :  { %v2805_v6 = vpop.f32.mrf.mxu3 }
 0xccc   :  { %3146 = vrot.lane.b32.xlu2 %v2805_v6, %s4913_s4 }
 0xccd   :  { %v3090_v59 = vpop.f32.mrf.mxu0 }
 0xcce   :  { %3180 = vrot.lane.b32.xlu0 %v3090_v59, %s4912_s11 }
 0xcd3   :  { %v2808_v13 = vpop.f32.mrf.mxu3 }
 0xcd4   :  { %3148 = vrot.lane.b32.xlu2 %v2808_v13, %s4913_s4 }
 0xcd5   :  { %v3093_v37 = vpop.f32.mrf.mxu0 }
 0xcd6   :  { %3182 = vrot.lane.b32.xlu0 %v3093_v37, %s4912_s11 }
 0xcdb   :  { %v2811_v28 = vpop.f32.mrf.mxu3 }
 0xcdc   :  { %3150 = vrot.lane.b32.xlu2 %v2811_v28, %s4913_s4 }
 0xce8   :  { %v3111_v14 = vpop.permute.xlu1 %3110 }
 0xce9   :  { %v3195_v1 = vsel %vm312_vm1, %v6772_v38, %v3111_v14 }
 0xcf0   :  { %v3113_v15 = vpop.permute.xlu1 %3112 }
 0xcf1   :  { %v3196_v62 = vsel %vm312_vm1, %v6779_v41, %v3113_v15 }
 0xcf8   :  { %v3115_v40 = vpop.permute.xlu1 %3114 }
 0xcf9   :  { %v3197_v38 = vsel %vm312_vm1, %v6785_v27, %v3115_v40 }
 0xcfe   :  { %v3141_v39 = vpop.permute.xlu2 %3140 }
 0xcff   :  { %v3202_v21 = vsel %vm1522_vm3, %v3194_v12, %v3141_v39 }
 0xd00   :  { %v3117_v16 = vpop.permute.xlu1 %3116 }
 0xd01   :  { %v3198_v42 = vsel %vm312_vm1, %v6793_v4, %v3117_v16  ;;  %v4480_v4 = vld [vmem:[#allocation7 + $0x6] ss:$0 sm:$0xff] }
 0xd08   :  { %v3119_v27 = vpop.permute.xlu1 %3118 }
 0xd09   :  { %v3199_v13 = vsel %vm312_vm1, %v6798_v22, %v3119_v27 }
 0xd0a   :  { %v3143_v47 = vpop.permute.xlu2 %3142 }
 0xd0b   :  { %v3203_v3 = vsel %vm1522_vm3, %v3195_v1, %v3143_v47 }
 0xd10   :  { %v3169_v61 = vpop.permute.xlu0 %3168 }
 0xd11   :  { %v3208_v24 = vsel %vm1531_vm4, %v3200_v34, %v3169_v61 }
 0xd12   :  { %4164 = vmatmul.msk.f32.vlgmr.msrb.gmra.mxu1 %vm122_vm0, %v3208_v24  ;;  %v3145_v29 = vpop.permute.xlu2 %3144 }
 0xd13   :  { %v3204_v58 = vsel %vm1522_vm3, %v3196_v62, %v3145_v29 }
 0xd18   :  { %v3171_v19 = vpop.permute.xlu0 %3170 }
 0xd19   :  { %v3209_v17 = vsel %vm1531_vm4, %v3201_v2, %v3171_v19 }
 0xd1a   :  { %4165 = vmatmul.msk.f32.gmra.mxu1 %vm122_vm0, %v3209_v17 }
 0xd20   :  { %v3173_v11 = vpop.permute.xlu0 %3172 }
 0xd21   :  { %v3210_v5 = vsel %vm1531_vm4, %v3202_v21, %v3173_v11 }
 0xd22   :  { %4166 = vmatmul.msk.f32.gmra.mxu1 %vm122_vm0, %v3210_v5 }
 0xd26   :  { %v3147_v52 = vpop.permute.xlu2 %3146 }
 0xd27   :  { %v3205_v56 = vsel %vm1522_vm3, %v3197_v38, %v3147_v52 }
 0xd28   :  { %v3175_v10 = vpop.permute.xlu0 %3174 }
 0xd29   :  { %v3211_v35 = vsel %vm1531_vm4, %v3203_v3, %v3175_v10 }
 0xd2a   :  { %4167 = vmatmul.msk.f32.gmra.mxu1 %vm122_vm0, %v3211_v35 }
 0xd2e   :  { %v3149_v41 = vpop.permute.xlu2 %3148 }
 0xd2f   :  { %v3206_v46 = vsel %vm1522_vm3, %v3198_v42, %v3149_v41 }
 0xd30   :  { %v3177_v18 = vpop.permute.xlu0 %3176 }
 0xd31   :  { %v3212_v30 = vsel %vm1531_vm4, %v3204_v58, %v3177_v18 }
 0xd32   :  { %4168 = vmatmul.msk.f32.gmra.mxu1 %vm122_vm0, %v3212_v30 }
 0xd36   :  { %v3151_v59 = vpop.permute.xlu2 %3150 }
 0xd37   :  { %v3207_v37 = vsel %vm1522_vm3, %v3199_v13, %v3151_v59 }
 0xd38   :  { %v3179_v23 = vpop.permute.xlu0 %3178 }
 0xd39   :  { %v3213_v9 = vsel %vm1531_vm4, %v3205_v56, %v3179_v23 }
 0xd3a   :  { %4169 = vmatmul.msk.f32.gmra.mxu1 %vm122_vm0, %v3213_v9 }
 0xd40   :  { %v3181_v43 = vpop.permute.xlu0 %3180 }
 0xd41   :  { %v3214_v6 = vsel %vm1531_vm4, %v3206_v46, %v3181_v43 }
 0xd42   :  { %4170 = vmatmul.msk.f32.gmra.mxu1 %vm122_vm0, %v3214_v6 }
 0xd48   :  { %v3183_v28 = vpop.permute.xlu0 %3182 }
 0xd49   :  { %v3215_v51 = vsel %vm1531_vm4, %v3207_v37, %v3183_v28 }
 0xd4a   :  { %4171 = vmatmul.msk.f32.gmra.mxu1 %vm122_vm0, %v3215_v51 }
 0xd8f   :  { %v3258_v49 = vpop.f32.mrf.mxu1 }
 0xd90   :  { %v3259_v55 = vadd.f32 %v4480_v4, %v3258_v49 }
 0xd92   :  { %v3282_v7 = vadd.f32 %v3259_v55, %v5913_v45 }
 0xd94   :  { %v3292_v33 = vsel %vm122_vm0, %v3282_v7, 0.0 }
 0xd95   :  { %3293 = vadd.xlane.f32.xlu1 %v3292_v33 }
 0xd97   :  { %v3261_v63 = vpop.f32.mrf.mxu1 }
 0xd98   :  { %v3262_v32 = vadd.f32 %v4480_v4, %v3261_v63  ;;  %v4282_v63 = vld [vmem:[%s7220_s5 + $0x78] sm:$0xff]  }
 0xd9a   :  { %v3283_v57 = vadd.f32 %v3262_v32, %v6016_v53  ;;  %v4245_v32 = vunpack.c.h.bf16 %v4282_v63 }
 0xd9c   :  { %v3295_v22 = vsel %vm122_vm0, %v3283_v57, 0.0  ;;  %3532 = vmatpush.msrb.mxu3 %v4245_v32 }
 0xd9d   :  { %3296 = vadd.xlane.f32.xlu2 %v3295_v22  ;;  %v4281_v22 = vld [vmem:[%s7220_s5 + $0x70] sm:$0xff]  }
 0xd9f   :  { %v3264_v48 = vpop.f32.mrf.mxu1 }
 0xda0   :  { %v3265_v31 = vadd.f32 %v4480_v4, %v3264_v48  ;;  %v4241_v48 = vunpack.c.h.bf16 %v4281_v22 }
 0xda2   :  { %v3284_v26 = vadd.f32 %v3265_v31, %v6029_v50  ;;  %v4240_v31 = vunpack.c.l.bf16 %v4281_v22 }
 0xda4   :  { %v3298_v34 = vsel %vm122_vm0, %v3284_v26, 0.0 }
 0xda5   :  { %3299 = vadd.xlane.f32.xlu0 %v3298_v34 }
 0xda7   :  { %v3267_v61 = vpop.f32.mrf.mxu1 }
 0xda8   :  { %v3268_v24 = vadd.f32 %v4480_v4, %v3267_v61 }
 0xdaa   :  { %v3285_v45 = vadd.f32 %v3268_v24, %v6054_v8 }
 0xdac   :  { %v3301_v54 = vsel %vm122_vm0, %v3285_v45, 0.0 }
 0xdad   :  { %3302 = vadd.xlane.f32.xlu1 %v3301_v54 }
 0xdaf   :  { %v3270_v20 = vpop.f32.mrf.mxu1 }
 0xdb0   :  { %v3271_v39 = vadd.f32 %v4480_v4, %v3270_v20 }
 0xdb2   :  { %v3286_v53 = vadd.f32 %v3271_v39, %v6071_v25 }
 0xdb4   :  { %v3304_v2 = vsel %vm122_vm0, %v3286_v53, 0.0 }
 0xdb5   :  { %3305 = vadd.xlane.f32.xlu2 %v3304_v2 }
 0xdb7   :  { %v3273_v19 = vpop.f32.mrf.mxu1 }
 0xdb8   :  { %v3274_v17 = vadd.f32 %v4480_v4, %v3273_v19 }
 0xdba   :  { %v3287_v50 = vadd.f32 %v3274_v17, %v6087_v36 }
 0xdbc   :  { %v3307_v14 = vsel %vm122_vm0, %v3287_v50, 0.0 }
 0xdbd   :  { %3308 = vadd.xlane.f32.xlu0 %v3307_v14 }
 0xdbf   :  { %v3276_v12 = vpop.f32.mrf.mxu1 }
 0xdc0   :  { %v3277_v47 = vadd.f32 %v4480_v4, %v3276_v12 }
 0xdc2   :  { %v3288_v8 = vadd.f32 %v3277_v47, %v6098_v0 }
 0xdc4   :  { %v3310_v21 = vsel %vm122_vm0, %v3288_v8, 0.0 }
 0xdc5   :  { %3311 = vadd.xlane.f32.xlu2 %v3310_v21 }
 0xdc7   :  { %v3279_v15 = vpop.f32.mrf.mxu1 }
 0xdc8   :  { %v3280_v36 = vadd.f32 %v4480_v4, %v3279_v15 }
 0xdca   :  { %v3289_v0 = vadd.f32 %v3280_v36, %v6109_v44  ;;  %v6953_v36 = vld [vmem:[#allocation7 + $0x9] ss:$0 sm:$0xff] }
 0xdcc   :  { %v3313_v58 = vsel %vm122_vm0, %v3289_v0, 0.0 }
 0xe08   :  { %v3294_v11 = vpop.xlane.xlu1 %3293 }
 0xe09   :  { %v3316_v25 = vmul.f32 %v3294_v11, %v5841_v60 }
 0xe0b   :  { %v6895_v5 = vsub.f32 %v3282_v7, %v3316_v25 }
 0xe0d   :  { %v3332_v1 = vmul.f32 %v6895_v5, %v6895_v5 }
 0xe0f   :  { %v3340_v3 = vsel %vm122_vm0, %v3332_v1, 0.0 }
 0xe10   :  { %v3297_v10 = vpop.xlane.xlu2 %3296  ;;  %3341 = vadd.xlane.f32.xlu1 %v3340_v3 }
 0xe11   :  { %v3317_v29 = vmul.f32 %v3297_v10, %v5841_v60 }
 0xe13   :  { %v6902_v35 = vsub.f32 %v3283_v57, %v3317_v29  ;;  %v4244_v57 = vunpack.c.l.bf16 %v4282_v63  ;;  %v6955_v29 = vld [vmem:[#allocation7 + $0xa] ss:$0 sm:$0xff] }
 0xe15   :  { %v3333_v62 = vmul.f32 %v6902_v35, %v6902_v35  ;;  %3533 = vmatpush.msrb.mxu3 %v4244_v57 }
 0xe17   :  { %v3343_v40 = vsel %vm122_vm0, %v3333_v62, 0.0  ;;  %3534 = vmatpush.msrb.mxu3 %v4241_v48 }
 0xe18   :  { %3344 = vadd.xlane.f32.xlu0 %v3343_v40  ;;  %3314 = vadd.xlane.f32.xlu1 %v3313_v58  ;;  %v3300_v18 = vpop.xlane.xlu0 %3299 }
 0xe19   :  { %v3318_v52 = vmul.f32 %v3300_v18, %v5841_v60  ;;  %3535 = vmatpush.msrb.mxu3 %v4240_v31 }
 0xe1b   :  { %v6909_v30 = vsub.f32 %v3284_v26, %v3318_v52 }
 0xe1d   :  { %v3334_v38 = vmul.f32 %v6909_v30, %v6909_v30 }
 0xe1f   :  { %v3346_v44 = vsel %vm122_vm0, %v3334_v38, 0.0 }
 0xe20   :  { %v3303_v56 = vpop.xlane.xlu1 %3302  ;;  %3347 = vadd.xlane.f32.xlu2 %v3346_v44 }
 0xe21   :  { %v3319_v23 = vmul.f32 %v3303_v56, %v5841_v60 }
 0xe23   :  { %v6915_v9 = vsub.f32 %v3285_v45, %v3319_v23 }
 0xe25   :  { %v3335_v16 = vmul.f32 %v6915_v9, %v6915_v9 }
 0xe27   :  { %v3349_v41 = vsel %vm122_vm0, %v3335_v16, 0.0 }
 0xe28   :  { %v3306_v42 = vpop.xlane.xlu2 %3305  ;;  %3350 = vadd.xlane.f32.xlu0 %v3349_v41 }
 0xe29   :  { %v3320_v46 = vmul.f32 %v3306_v42, %v5841_v60 }
 0xe2b   :  { %v6921_v43 = vsub.f32 %v3286_v53, %v3320_v46 }
 0xe2d   :  { %v3336_v6 = vmul.f32 %v6921_v43, %v6921_v43 }
 0xe2f   :  { %v3352_v27 = vsel %vm122_vm0, %v3336_v6, 0.0 }
 0xe30   :  { %3353 = vadd.xlane.f32.xlu1 %v3352_v27  ;;  %v3309_v59 = vpop.xlane.xlu0 %3308 }
 0xe31   :  { %v3321_v13 = vmul.f32 %v3309_v59, %v5841_v60 }
 0xe33   :  { %v6927_v37 = vsub.f32 %v3287_v50, %v3321_v13 }
 0xe35   :  { %v3337_v28 = vmul.f32 %v6927_v37, %v6927_v37 }
 0xe37   :  { %v3355_v51 = vsel %vm122_vm0, %v3337_v28, 0.0 }
 0xe38   :  { %v3312_v4 = vpop.xlane.xlu2 %3311  ;;  %3356 = vadd.xlane.f32.xlu2 %v3355_v51 }
 0xe39   :  { %v3322_v49 = vmul.f32 %v3312_v4, %v5841_v60 }
 0xe3b   :  { %v6933_v55 = vsub.f32 %v3288_v8, %v3322_v49 }
 0xe3d   :  { %v3338_v7 = vmul.f32 %v6933_v55, %v6933_v55 }
 0xe3f   :  { %v3358_v33 = vsel %vm122_vm0, %v3338_v7, 0.0 }
 0xe40   :  { %3359 = vadd.xlane.f32.xlu0 %v3358_v33 }
 0xe83   :  { %v3342_v26 = vpop.xlane.xlu1 %3341 }
 0xe84   :  { %v3364_v34 = vmul.f32 %v3342_v26, %v5841_v60 }
 0xe86   :  { %v3372_v61 = vadd.f32 1e-05, %v3364_v34 }
 0xe88   :  { %4762 = vrsqrt.f32 %v3372_v61  ;;  %vm3386_vm3 = vweird.f32 %v3372_v61 }
 0xe8b   :  { %v3315_v24 = vpop.xlane.xlu1 %3314  ;;  %v3345_v45 = vpop.xlane.xlu0 %3344 }
 0xe8c   :  { %v3323_v54 = vmul.f32 %v3315_v24, %v5841_v60  ;;  %v3365_v20 = vmul.f32 %v3345_v45, %v5841_v60 }
 0xe8e   :  { %v4763_v39 = vpop.eup %4762  ;;  %v6947_v53 = vsub.f32 %v3289_v0, %v3323_v54  ;;  %v3373_v2 = vadd.f32 1e-05, %v3365_v20 }
 0xe8f   :  { %v3381_v19 = vmul.f32 %v4763_v39, %v3372_v61  ;;  %vm3387_vm1 = vweird.f32 %v4763_v39 }
 0xe90   :  { %4764 = vrsqrt.f32 %v3373_v2  ;;  %v3339_v17 = vmul.f32 %v6947_v53, %v6947_v53  ;;  %vm3388_vm4 = vmor %vm3386_vm3, %vm3387_vm1  ;;  %vm3396_vm9 = vweird.f32 %v3373_v2 }
 0xe91   :  { %v3382_v50 = vmul.f32 %v4763_v39, %v3381_v19 }
 0xe92   :  { %v3361_v14 = vsel %vm122_vm0, %v3339_v17, 0.0 }
 0xe93   :  { %v3383_v12 = vmul.f32 0.5, %v3382_v50  ;;  %3362 = vadd.xlane.f32.xlu1 %v3361_v14  ;;  %v3348_v47 = vpop.xlane.xlu2 %3347 }
 0xe94   :  { %v3366_v8 = vmul.f32 %v3348_v47, %v5841_v60 }
 0xe95   :  { %v3384_v21 = vsub.f32 1.5, %v3383_v12 }
 0xe96   :  { %v4765_v11 = vpop.eup %4764  ;;  %v3374_v25 = vadd.f32 1e-05, %v3366_v8 }
 0xe97   :  { %v3385_v15 = vmul.f32 %v4763_v39, %v3384_v21  ;;  %v3391_v1 = vmul.f32 %v4765_v11, %v3373_v2  ;;  %vm3397_vm8 = vweird.f32 %v4765_v11 }
 0xe98   :  { %4766 = vrsqrt.f32 %v3374_v25  ;;  %vm3398_vm10 = vmor %vm3396_vm9, %vm3397_vm8  ;;  %vm3406_vm12 = vweird.f32 %v3374_v25 }
 0xe99   :  { %v3389_v3 = vsel %vm3388_vm4, %v4763_v39, %v3385_v15  ;;  %v3392_v10 = vmul.f32 %v4765_v11, %v3391_v1 }
 0xe9a   :  { %v3460_v0 = vmul.f32 %v3389_v3, %v6895_v5 }
 0xe9b   :  { %v3393_v62 = vmul.f32 0.5, %v3392_v10  ;;  %v3351_v40 = vpop.xlane.xlu0 %3350 }
 0xe9c   :  { %v3469_v58 = vmul.f32 %v6953_v36, %v3460_v0  ;;  %v3367_v18 = vmul.f32 %v3351_v40, %v5841_v60 }
 0xe9d   :  { %v3394_v52 = vsub.f32 1.5, %v3393_v62 }
 0xe9e   :  { %v4767_v38 = vpop.eup %4766  ;;  %v6961_v44 = vadd.f32 %v6955_v29, %v3469_v58  ;;  %v3375_v56 = vadd.f32 1e-05, %v3367_v18 }
 0xe9f   :  { %v3395_v23 = vmul.f32 %v4765_v11, %v3394_v52  ;;  %v3401_v16 = vmul.f32 %v4767_v38, %v3374_v25  ;;  %vm3407_vm11 = vweird.f32 %v4767_v38 }
 0xea0   :  { %4768 = vrsqrt.f32 %v3375_v56  ;;  %4172 = vmatmul.msk.f32.vlgmr.msrb.gmra.mxu3 %vm122_vm0, %v6961_v44  ;;  %vm3408_vm13 = vmor %vm3406_vm12, %vm3407_vm11  ;;  %vm3416_vm15 = vweird.f32 %v3375_v56 }
 0xea1   :  { %v3399_v5 = vsel %vm3398_vm10, %v4765_v11, %v3395_v23  ;;  %v3402_v41 = vmul.f32 %v4767_v38, %v3401_v16 }
 0xea2   :  { %v3461_v42 = vmul.f32 %v3399_v5, %v6902_v35 }
 0xea3   :  { %v3403_v46 = vmul.f32 0.5, %v3402_v41  ;;  %v3354_v6 = vpop.xlane.xlu1 %3353 }
 0xea4   :  { %v3368_v27 = vmul.f32 %v3354_v6, %v5841_v60  ;;  %v3470_v59 = vmul.f32 %v6953_v36, %v3461_v42 }
 0xea5   :  { %v3404_v13 = vsub.f32 1.5, %v3403_v46  ;;  %v4286_v46 = vld [vmem:[%s7220_s5 + $0x98] sm:$0xff]  }
 0xea6   :  { %v4769_v28 = vpop.eup %4768  ;;  %v3376_v51 = vadd.f32 1e-05, %v3368_v27  ;;  %v6969_v4 = vadd.f32 %v6955_v29, %v3470_v59  ;;  %v4261_v6 = vunpack.c.h.bf16 %v4286_v46  ;;  %v4260_v27 = vunpack.c.l.bf16 %v4286_v46  ;;  %v4285_v59 = vld [vmem:[%s7220_s5 + $0x90] sm:$0xff]  }
 0xea7   :  { %v3405_v49 = vmul.f32 %v4767_v38, %v3404_v13  ;;  %v3411_v7 = vmul.f32 %v4769_v28, %v3375_v56  ;;  %vm3417_vm14 = vweird.f32 %v4769_v28  ;;  %v4256_v13 = vunpack.c.l.bf16 %v4285_v59 }
 0xea8   :  { %4770 = vrsqrt.f32 %v3376_v51  ;;  %4173 = vmatmul.msk.f32.gmra.mxu3 %vm122_vm0, %v6969_v4  ;;  %vm3418_vm5 = vmor %vm3416_vm15, %vm3417_vm14  ;;  %vm3426_vm7 = vweird.f32 %v3376_v51  ;;  %3619 = vmatpush.msrb.mxu2 %v4261_v6 }
 0xea9   :  { %v3409_v35 = vsel %vm3408_vm13, %v4767_v38, %v3405_v49  ;;  %v3412_v33 = vmul.f32 %v4769_v28, %v3411_v7  ;;  %v4283_v7 = vld [vmem:[%s7220_s5 + $0x80] sm:$0xff]  }
 0xeaa   :  { %v3462_v63 = vmul.f32 %v3409_v35, %v6909_v30  ;;  %3620 = vmatpush.msrb.mxu2 %v4260_v27  ;;  %v4249_v35 = vunpack.c.h.bf16 %v4283_v7 }
 0xeab   :  { %v3413_v32 = vmul.f32 0.5, %v3412_v33  ;;  %v3357_v57 = vpop.xlane.xlu2 %3356 }
 0xeac   :  { %v3369_v22 = vmul.f32 %v3357_v57, %v5841_v60  ;;  %v3471_v48 = vmul.f32 %v6953_v36, %v3462_v63  ;;  %v4248_v63 = vunpack.c.l.bf16 %v4283_v7 }
 0xead   :  { %v3414_v31 = vsub.f32 1.5, %v3413_v32 }
 0xeae   :  { %v4771_v26 = vpop.eup %4770  ;;  %v3377_v34 = vadd.f32 1e-05, %v3369_v22  ;;  %v6977_v61 = vadd.f32 %v6955_v29, %v3471_v48 }
 0xeaf   :  { %v3415_v24 = vmul.f32 %v4769_v28, %v3414_v31  ;;  %v3421_v45 = vmul.f32 %v4771_v26, %v3376_v51  ;;  %vm3427_vm6 = vweird.f32 %v4771_v26 }
 0xeb0   :  { %4772 = vrsqrt.f32 %v3377_v34  ;;  %4174 = vmatmul.msk.f32.gmra.mxu3 %vm122_vm0, %v6977_v61  ;;  %vm3428_vm1 = vmor %vm3426_vm7, %vm3427_vm6  ;;  %vm3436_vm4 = vweird.f32 %v3377_v34 }
 0xeb1   :  { %v3419_v30 = vsel %vm3418_vm5, %v4769_v28, %v3415_v24  ;;  %v3422_v54 = vmul.f32 %v4771_v26, %v3421_v45  ;;  %v4284_v28 = vld [vmem:[%s7220_s5 + $0x88] sm:$0xff]  }
 0xeb2   :  { %v3463_v20 = vmul.f32 %v3419_v30, %v6915_v9  ;;  %v4253_v51 = vunpack.c.h.bf16 %v4284_v28  ;;  %v4252_v49 = vunpack.c.l.bf16 %v4284_v28 }
 0xeb3   :  { %v3423_v39 = vmul.f32 0.5, %v3422_v54  ;;  %v3360_v2 = vpop.xlane.xlu0 %3359 }
 0xeb4   :  { %v3370_v19 = vmul.f32 %v3360_v2, %v5841_v60  ;;  %v3472_v17 = vmul.f32 %v6953_v36, %v3463_v20  ;;  %v4483_v20 = vld [vmem:[#allocation7 + $0xd] ss:$0 sm:$0xff] }
 0xeb5   :  { %v3424_v50 = vsub.f32 1.5, %v3423_v39 }
 0xeb6   :  { %v4773_v14 = vpop.eup %4772  ;;  %v3378_v12 = vadd.f32 1e-05, %v3370_v19  ;;  %v6985_v47 = vadd.f32 %v6955_v29, %v3472_v17 }
 0xeb7   :  { %v3425_v8 = vmul.f32 %v4771_v26, %v3424_v50  ;;  %v3431_v21 = vmul.f32 %v4773_v14, %v3377_v34  ;;  %vm3437_vm3 = vweird.f32 %v4773_v14 }
 0xeb8   :  { %4774 = vrsqrt.f32 %v3378_v12  ;;  %4175 = vmatmul.msk.f32.gmra.mxu3 %vm122_vm0, %v6985_v47  ;;  %vm3438_vm8 = vmor %vm3436_vm4, %vm3437_vm3  ;;  %vm3446_vm10 = vweird.f32 %v3378_v12 }
 0xeb9   :  { %v3429_v9 = vsel %vm3428_vm1, %v4771_v26, %v3425_v8  ;;  %v3432_v11 = vmul.f32 %v4773_v14, %v3431_v21 }
 0xeba   :  { %v3464_v25 = vmul.f32 %v3429_v9, %v6921_v43 }
 0xebb   :  { %v3433_v15 = vmul.f32 0.5, %v3432_v11 }
 0xebc   :  { %v3473_v1 = vmul.f32 %v6953_v36, %v3464_v25 }
 0xebd   :  { %v3434_v3 = vsub.f32 1.5, %v3433_v15 }
 0xebe   :  { %v4775_v10 = vpop.eup %4774  ;;  %v6992_v0 = vadd.f32 %v6955_v29, %v3473_v1 }
 0xebf   :  { %v3435_v62 = vmul.f32 %v4773_v14, %v3434_v3  ;;  %v3441_v40 = vmul.f32 %v4775_v10, %v3378_v12  ;;  %vm3447_vm9 = vweird.f32 %v4775_v10 }
 0xec0   :  { %4176 = vmatmul.msk.f32.gmra.mxu3 %vm122_vm0, %v6992_v0  ;;  %vm3448_vm11 = vmor %vm3446_vm10, %vm3447_vm9 }
 0xec1   :  { %v3439_v58 = vsel %vm3438_vm8, %v4773_v14, %v3435_v62  ;;  %v3442_v18 = vmul.f32 %v4775_v10, %v3441_v40 }
 0xec2   :  { %v3465_v43 = vmul.f32 %v3439_v58, %v6927_v37 }
 0xec3   :  { %v3443_v52 = vmul.f32 0.5, %v3442_v18 }
 0xec4   :  { %v3474_v38 = vmul.f32 %v6953_v36, %v3465_v43 }
 0xec5   :  { %v3444_v56 = vsub.f32 1.5, %v3443_v52 }
 0xec6   :  { %v6999_v23 = vadd.f32 %v6955_v29, %v3474_v38 }
 0xec7   :  { %v3445_v16 = vmul.f32 %v4775_v10, %v3444_v56 }
 0xec8   :  { %4177 = vmatmul.msk.f32.gmra.mxu3 %vm122_vm0, %v6999_v23 }
 0xec9   :  { %v3449_v5 = vsel %vm3448_vm11, %v4775_v10, %v3445_v16 }
 0xeca   :  { %v3466_v41 = vmul.f32 %v3449_v5, %v6933_v55  ;;  %v4257_v55 = vunpack.c.h.bf16 %v4285_v59 }
 0xecc   :  { %v3475_v42 = vmul.f32 %v6953_v36, %v3466_v41  ;;  %3621 = vmatpush.msrb.mxu2 %v4257_v55 }
 0xece   :  { %v7006_v37 = vadd.f32 %v6955_v29, %v3475_v42  ;;  %3622 = vmatpush.msrb.mxu2 %v4256_v13  ;;  %v4484_v42 = vld [vmem:[#allocation7 + $0xe] ss:$0 sm:$0xff] }
 0xed0   :  { %4178 = vmatmul.msk.f32.gmra.mxu3 %vm122_vm0, %v7006_v37  ;;  %3623 = vmatpush.msrb.mxu2 %v4253_v51 }
 0xed2   :  { %3624 = vmatpush.msrb.mxu2 %v4252_v49 }
 0xed4   :  { %3625 = vmatpush.msrb.mxu2 %v4249_v35 }
 0xed6   :  { %3626 = vmatpush.msrb.mxu2 %v4248_v63 }
 0xf06   :  { %v3363_v33 = vpop.xlane.xlu1 %3362 }
 0xf07   :  { %v3371_v32 = vmul.f32 %v3363_v33, %v5841_v60 }
 0xf09   :  { %v3379_v57 = vadd.f32 1e-05, %v3371_v32 }
 0xf0b   :  { %4776 = vrsqrt.f32 %v3379_v57  ;;  %vm3456_vm13 = vweird.f32 %v3379_v57 }
 0xf11   :  { %v4777_v22 = vpop.eup %4776 }
 0xf12   :  { %v3451_v48 = vmul.f32 %v4777_v22, %v3379_v57  ;;  %vm3457_vm12 = vweird.f32 %v4777_v22 }
 0xf13   :  { %vm3458_vm14 = vmor %vm3456_vm13, %vm3457_vm12 }
 0xf14   :  { %v3452_v31 = vmul.f32 %v4777_v22, %v3451_v48 }
 0xf16   :  { %v3453_v26 = vmul.f32 0.5, %v3452_v31 }
 0xf18   :  { %v3454_v34 = vsub.f32 1.5, %v3453_v26 }
 0xf1a   :  { %v3455_v24 = vmul.f32 %v4777_v22, %v3454_v34 }
 0xf1c   :  { %v3459_v45 = vsel %vm3458_vm14, %v4777_v22, %v3455_v24 }
 0xf1d   :  { %v3467_v30 = vmul.f32 %v3459_v45, %v6947_v53 }
 0xf1f   :  { %v3476_v54 = vmul.f32 %v6953_v36, %v3467_v30 }
 0xf21   :  { %v7026_v39 = vadd.f32 %v6955_v29, %v3476_v54 }
 0xf23   :  { %v3537_v2 = vpop.f32.mrf.mxu3  ;;  %4179 = vmatmul.msk.f32.gmra.mxu3 %vm122_vm0, %v7026_v39 }
 0xf24   :  { %v3538_v19 = vadd.f32 %v4483_v20, %v3537_v2 }
 0xf26   :  { %v3561_v17 = vmax.f32 %v3538_v19, 0.0 }
 0xf28   :  { %4180 = vmatmul.msk.f32.vlgmr.msrb.gmra.mxu2 %vm394_vm2, %v3561_v17 }
 0xf2b   :  { %v3540_v50 = vpop.f32.mrf.mxu3 }
 0xf2c   :  { %v3541_v14 = vadd.f32 %v4483_v20, %v3540_v50 }
 0xf2e   :  { %v3562_v12 = vmax.f32 %v3541_v14, 0.0 }
 0xf30   :  { %4181 = vmatmul.msk.f32.gmra.mxu2 %vm394_vm2, %v3562_v12 }
 0xf33   :  { %v3543_v53 = vpop.f32.mrf.mxu3 }
 0xf34   :  { %v3544_v8 = vadd.f32 %v4483_v20, %v3543_v53 }
 0xf36   :  { %v3563_v36 = vmax.f32 %v3544_v8, 0.0 }
 0xf38   :  { %4182 = vmatmul.msk.f32.gmra.mxu2 %vm394_vm2, %v3563_v36 }
 0xf3b   :  { %v3546_v29 = vpop.f32.mrf.mxu3 }
 0xf3c   :  { %v3547_v21 = vadd.f32 %v4483_v20, %v3546_v29 }
 0xf3e   :  { %v3564_v9 = vmax.f32 %v3547_v21, 0.0 }
 0xf40   :  { %4183 = vmatmul.msk.f32.gmra.mxu2 %vm394_vm2, %v3564_v9 }
 0xf43   :  { %v3549_v11 = vpop.f32.mrf.mxu3 }
 0xf44   :  { %v3550_v25 = vadd.f32 %v4483_v20, %v3549_v11 }
 0xf46   :  { %v3565_v15 = vmax.f32 %v3550_v25, 0.0 }
 0xf48   :  { %4184 = vmatmul.msk.f32.gmra.mxu2 %vm394_vm2, %v3565_v15 }
 0xf4b   :  { %v3552_v1 = vpop.f32.mrf.mxu3 }
 0xf4c   :  { %v3553_v3 = vadd.f32 %v4483_v20, %v3552_v1 }
 0xf4e   :  { %v3566_v10 = vmax.f32 %v3553_v3, 0.0 }
 0xf50   :  { %4185 = vmatmul.msk.f32.gmra.mxu2 %vm394_vm2, %v3566_v10 }
 0xf53   :  { %v3555_v62 = vpop.f32.mrf.mxu3 }
 0xf54   :  { %v3556_v40 = vadd.f32 %v4483_v20, %v3555_v62 }
 0xf56   :  { %v3567_v58 = vmax.f32 %v3556_v40, 0.0 }
 0xf58   :  { %4186 = vmatmul.msk.f32.gmra.mxu2 %vm394_vm2, %v3567_v58 }
 0xfa6   :  { %v3558_v18 = vpop.f32.mrf.mxu3 }
 0xfa7   :  { %v3559_v43 = vadd.f32 %v4483_v20, %v3558_v18 }
 0xfa9   :  { %v3568_v52 = vmax.f32 %v3559_v43, 0.0 }
 0xfab   :  { %v3628_v38 = vpop.f32.mrf.mxu2  ;;  %4187 = vmatmul.msk.f32.gmra.mxu2 %vm394_vm2, %v3568_v52 }
 0xfb3   :  { %v3631_v56 = vpop.f32.mrf.mxu2 }
 0xfbb   :  { %v3634_v16 = vpop.f32.mrf.mxu2 }
 0xfbc   :  { %v3635_v59 = vadd.f32 %v4484_v42, %v3634_v16 }
 0xfbe   :  { %v3654_v28 = vadd.f32 %v3635_v59, %v6977_v61 }
 0xfc0   :  { %v3668_v35 = vsel %vm122_vm0, %v3654_v28, 0.0 }
 0xfc3   :  { %v3637_v5 = vpop.f32.mrf.mxu2 }
 0xfc4   :  { %v3638_v7 = vadd.f32 %v4484_v42, %v3637_v5 }
 0xfc6   :  { %v3655_v63 = vadd.f32 %v3638_v7, %v6985_v47  ;;  %v3632_v47 = vadd.f32 %v4484_v42, %v3631_v56 }
 0xfc8   :  { %v3671_v32 = vsel %vm122_vm0, %v3655_v63, 0.0  ;;  %v3653_v45 = vadd.f32 %v3632_v47, %v6969_v4 }
 0xfcb   :  { %v3640_v41 = vpop.f32.mrf.mxu2 }
 0xfcc   :  { %v3641_v31 = vadd.f32 %v4484_v42, %v3640_v41 }
 0xfce   :  { %v3656_v34 = vadd.f32 %v3641_v31, %v6992_v0 }
 0xfd0   :  { %v3674_v24 = vsel %vm122_vm0, %v3656_v34, 0.0 }
 0xfd3   :  { %v3643_v46 = vpop.f32.mrf.mxu2 }
 0xfd4   :  { %v3644_v6 = vadd.f32 %v4484_v42, %v3643_v46 }
 0xfd6   :  { %v3657_v27 = vadd.f32 %v3644_v6, %v6999_v23  ;;  %v3629_v23 = vadd.f32 %v4484_v42, %v3628_v38 }
 0xfd8   :  { %v3677_v55 = vsel %vm122_vm0, %v3657_v27, 0.0  ;;  %v3652_v57 = vadd.f32 %v3629_v23, %v6961_v44  ;;  %v3665_v44 = vsel %vm122_vm0, %v3653_v45, 0.0 }
 0xfd9   :  { %3678 = vadd.xlane.f32.xlu1 %v3677_v55 }
 0xfda   :  { %v3662_v61 = vsel %vm122_vm0, %v3652_v57, 0.0 }
 0xfdb   :  { %v3646_v13 = vpop.f32.mrf.mxu2 }
 0xfdc   :  { %v3647_v51 = vadd.f32 %v4484_v42, %v3646_v13 }
 0xfde   :  { %v3658_v49 = vadd.f32 %v3647_v51, %v7006_v37 }
 0xfe0   :  { %v3680_v33 = vsel %vm122_vm0, %v3658_v49, 0.0 }
 0xfe1   :  { %3669 = vadd.xlane.f32.xlu1 %v3668_v35  ;;  %3681 = vadd.xlane.f32.xlu0 %v3680_v33 }
 0xfe9   :  { %3672 = vadd.xlane.f32.xlu0 %v3671_v32 }
 0xff1   :  { %3663 = vadd.xlane.f32.xlu0 %v3662_v61 }
0x102e   :  { %v3649_v22 = vpop.f32.mrf.mxu2 }
0x102f   :  { %v3650_v37 = vadd.f32 %v4484_v42, %v3649_v22 }
0x1031   :  { %v3659_v48 = vadd.f32 %v3650_v37, %v7026_v39 }
0x1033   :  { %v3683_v26 = vsel %vm122_vm0, %v3659_v48, 0.0 }
0x1034   :  { %3684 = vadd.xlane.f32.xlu2 %v3683_v26 }
0x103c   :  { %3675 = vadd.xlane.f32.xlu2 %v3674_v24 }
0x1044   :  { %3666 = vadd.xlane.f32.xlu2 %v3665_v44 }
0x104c   :  { %v3679_v30 = vpop.xlane.xlu1 %3678 }
0x104d   :  { %v3691_v54 = vmul.f32 %v3679_v30, %v5841_v60 }
0x104f   :  { %v7055_v20 = vsub.f32 %v3657_v27, %v3691_v54 }
0x1051   :  { %v3707_v39 = vmul.f32 %v7055_v20, %v7055_v20 }
0x1053   :  { %v3725_v2 = vsel %vm122_vm0, %v3707_v39, 0.0 }
0x1054   :  { %v3670_v0 = vpop.xlane.xlu1 %3669  ;;  %3726 = vadd.xlane.f32.xlu0 %v3725_v2  ;;  %v3682_v19 = vpop.xlane.xlu0 %3681 }
0x1055   :  { %v3688_v17 = vmul.f32 %v3670_v0, %v5841_v60  ;;  %v3692_v4 = vmul.f32 %v3682_v19, %v5841_v60 }
0x1057   :  { %v7062_v50 = vsub.f32 %v3654_v28, %v3688_v17  ;;  %v7064_v14 = vsub.f32 %v3658_v49, %v3692_v4 }
0x1059   :  { %v3704_v12 = vmul.f32 %v7062_v50, %v7062_v50  ;;  %v3708_v53 = vmul.f32 %v7064_v14, %v7064_v14 }
0x105b   :  { %v3716_v8 = vsel %vm122_vm0, %v3704_v12, 0.0  ;;  %v3728_v36 = vsel %vm122_vm0, %v3708_v53, 0.0 }
0x105c   :  { %3717 = vadd.xlane.f32.xlu0 %v3716_v8  ;;  %3729 = vadd.xlane.f32.xlu2 %v3728_v36  ;;  %v3673_v29 = vpop.xlane.xlu0 %3672 }
0x105d   :  { %v3689_v21 = vmul.f32 %v3673_v29, %v5841_v60 }
0x105f   :  { %v7073_v9 = vsub.f32 %v3655_v63, %v3689_v21 }
0x1061   :  { %v3705_v11 = vmul.f32 %v7073_v9, %v7073_v9 }
0x1063   :  { %v3719_v25 = vsel %vm122_vm0, %v3705_v11, 0.0 }
0x1064   :  { %3720 = vadd.xlane.f32.xlu2 %v3719_v25  ;;  %v3664_v15 = vpop.xlane.xlu0 %3663 }
0x1065   :  { %v3686_v1 = vmul.f32 %v3664_v15, %v5841_v60 }
0x1067   :  { %v7079_v3 = vsub.f32 %v3652_v57, %v3686_v1 }
0x1069   :  { %v3702_v10 = vmul.f32 %v7079_v3, %v7079_v3 }
0x106b   :  { %v3710_v62 = vsel %vm122_vm0, %v3702_v10, 0.0 }
0x106c   :  { %3711 = vadd.xlane.f32.xlu2 %v3710_v62 }
0x10a7   :  { %v3685_v40 = vpop.xlane.xlu2 %3684 }
0x10a8   :  { %v3693_v58 = vmul.f32 %v3685_v40, %v5841_v60 }
0x10aa   :  { %v7085_v18 = vsub.f32 %v3659_v48, %v3693_v58 }
0x10ac   :  { %v3709_v43 = vmul.f32 %v7085_v18, %v7085_v18 }
0x10ae   :  { %v3731_v52 = vsel %vm122_vm0, %v3709_v43, 0.0 }
0x10af   :  { %3732 = vadd.xlane.f32.xlu1 %v3731_v52  ;;  %v3676_v38 = vpop.xlane.xlu2 %3675 }
0x10b0   :  { %v3690_v56 = vmul.f32 %v3676_v38, %v5841_v60 }
0x10b2   :  { %v7091_v16 = vsub.f32 %v3656_v34, %v3690_v56 }
0x10b4   :  { %v3706_v5 = vmul.f32 %v7091_v16, %v7091_v16 }
0x10b6   :  { %v3722_v41 = vsel %vm122_vm0, %v3706_v5, 0.0  ;;  %v4288_v5 = vld [vmem:[%s7220_s5 + $0x18] sm:$0xff]  }
0x10b7   :  { %3723 = vadd.xlane.f32.xlu1 %v3722_v41  ;;  %v3667_v42 = vpop.xlane.xlu2 %3666  ;;  %v4287_v41 = vld [vmem:[%s7220_s5 + $0x10] sm:$0xff]   ;;  %s4915_s5 = smov [#allocation8]  }
0x10b8   :  { %v3687_v46 = vmul.f32 %v3667_v42, %v5841_v60  ;;  %s3919_s16 = sshll.u32 %s4915_s5, 4  ;;  %s3920_s16 = int_to_ptr.vmem [resolvable:$true] %s3919_s16 }
0x10ba   :  { %v7097_v6 = vsub.f32 %v3653_v45, %v3687_v46 }
0x10bc   :  { %v3703_v27 = vmul.f32 %v7097_v6, %v7097_v6 }
0x10be   :  { %v3713_v59 = vsel %vm122_vm0, %v3703_v27, 0.0  ;;  %v4269_v27 = vunpack.c.h.bf16 %v4288_v5 }
0x10bf   :  { %3714 = vadd.xlane.f32.xlu1 %v3713_v59  ;;  %v4268_v59 = vunpack.c.l.bf16 %v4288_v5 }
0x10c0   :  { %3905 = vmatpush.msra.mxu1 %v4269_v27 }
0x10c2   :  { %3906 = vmatpush.msra.mxu1 %v4268_v59  ;;  %v3856_v59 = vld [vmem:[#allocation2] sm:$0xff] }
0x10c7   :  { %v3727_v13 = vpop.xlane.xlu0 %3726 }
0x10c8   :  { %v3739_v51 = vmul.f32 %v3727_v13, %v5841_v60 }
0x10ca   :  { %v3747_v35 = vadd.f32 1e-05, %v3739_v51 }
0x10cc   :  { %vm3806_vm7 = vweird.f32 %v3747_v35 }
0x10cf   :  { %v3730_v55 = vpop.xlane.xlu2 %3729  ;;  %v3718_v33 = vpop.xlane.xlu0 %3717 }
0x10d0   :  { %v3740_v28 = vmul.f32 %v3730_v55, %v5841_v60  ;;  %v3736_v23 = vmul.f32 %v3718_v33, %v5841_v60 }
0x10d2   :  { %v3748_v7 = vadd.f32 1e-05, %v3740_v28  ;;  %v7110_v22 = vadd.f32 1e-05, %v3736_v23 }
0x10d4   :  { %4778 = vrsqrt.f32 %v3748_v7  ;;  %vm3816_vm6 = vweird.f32 %v3748_v7  ;;  %vm3776_vm13 = vweird.f32 %v7110_v22 }
0x10d5   :  { %4780 = vrsqrt.f32 %v3747_v35 }
0x10d7   :  { %v3721_v49 = vpop.xlane.xlu2 %3720 }
0x10d8   :  { %v3737_v63 = vmul.f32 %v3721_v49, %v5841_v60 }
0x10da   :  { %v7106_v32 = vadd.f32 1e-05, %v3737_v63  ;;  %v7108_v61 = vpop.eup %4778 }
0x10db   :  { %v7112_v37 = vpop.eup %4780  ;;  %v3811_v31 = vmul.f32 %v7108_v61, %v3748_v7  ;;  %vm3817_vm15 = vweird.f32 %v7108_v61 }
0x10dc   :  { %4782 = vrsqrt.f32 %v7106_v32  ;;  %v3801_v26 = vmul.f32 %v7112_v37, %v3747_v35  ;;  %vm3807_vm5 = vweird.f32 %v7112_v37  ;;  %vm7147_vm1 = vmor %vm3816_vm6, %vm3817_vm15  ;;  %vm3786_vm12 = vweird.f32 %v7106_v32 }
0x10dd   :  { %4784 = vrsqrt.f32 %v7110_v22  ;;  %v3812_v24 = vmul.f32 %v7108_v61, %v3811_v31  ;;  %vm7161_vm3 = vmor %vm3806_vm7, %vm3807_vm5 }
0x10de   :  { %v3802_v30 = vmul.f32 %v7112_v37, %v3801_v26 }
0x10df   :  { %v3712_v57 = vpop.xlane.xlu2 %3711  ;;  %v3813_v2 = vmul.f32 0.5, %v3812_v24  ;;  %v4485_v24 = vld [vmem:[#allocation7 + $0xb] ss:$0 sm:$0xff] }
0x10e0   :  { %v3734_v48 = vmul.f32 %v3712_v57, %v5841_v60  ;;  %v3803_v19 = vmul.f32 0.5, %v3802_v30 }
0x10e1   :  { %v3814_v12 = vsub.f32 1.5, %v3813_v2  ;;  %v4486_v2 = vld [vmem:[#allocation7 + $0xc] ss:$0 sm:$0xff] }
0x10e2   :  { %v7119_v34 = vadd.f32 1e-05, %v3734_v48  ;;  %v7123_v44 = vpop.eup %4782  ;;  %v3804_v21 = vsub.f32 1.5, %v3803_v19 }
0x10e3   :  { %v7127_v39 = vpop.eup %4784  ;;  %v3781_v0 = vmul.f32 %v7123_v44, %v7106_v32  ;;  %v3815_v1 = vmul.f32 %v7108_v61, %v3814_v12  ;;  %vm3787_vm9 = vweird.f32 %v7123_v44 }
0x10e4   :  { %4786 = vrsqrt.f32 %v7119_v34  ;;  %v3771_v17 = vmul.f32 %v7127_v39, %v7110_v22  ;;  %v3805_v58 = vmul.f32 %v7112_v37, %v3804_v21  ;;  %vm3777_vm11 = vweird.f32 %v7127_v39  ;;  %vm7184_vm14 = vmor %vm3786_vm12, %vm3787_vm9 }
0x10e5   :  { %v3782_v36 = vmul.f32 %v7123_v44, %v3781_v0  ;;  %v3819_v42 = vsel %vm7147_vm1, %v7108_v61, %v3815_v1  ;;  %v4264_v61 = vunpack.c.l.bf16 %v4287_v41  ;;  %vm7191_vm5 = vmor %vm3776_vm13, %vm3777_vm11 }
0x10e6   :  { %v3772_v25 = vmul.f32 %v7127_v39, %v3771_v17  ;;  %v3809_v7 = vsel %vm7161_vm3, %v7112_v37, %v3805_v58  ;;  %v3836_v57 = vmul.f32 %v3819_v42, %v7064_v14  ;;  %vm3756_vm3 = vweird.f32 %v7119_v34 }
0x10e7   :  { %v3783_v10 = vmul.f32 0.5, %v3782_v36 }
0x10e8   :  { %v3773_v52 = vmul.f32 0.5, %v3772_v25  ;;  %v3845_v0 = vmul.f32 %v4485_v24, %v3836_v57 }
0x10e9   :  { %v3784_v13 = vsub.f32 1.5, %v3783_v10 }
0x10ea   :  { %v7134_v8 = vpop.eup %4786  ;;  %v3774_v33 = vsub.f32 1.5, %v3773_v52 }
0x10eb   :  { %v3751_v62 = vmul.f32 %v7134_v8, %v7119_v34  ;;  %v3785_v37 = vmul.f32 %v7123_v44, %v3784_v13  ;;  %vm3757_vm1 = vweird.f32 %v7134_v8  ;;  %v4487_v13 = vld [vmem:[#allocation7 + $0x1] ss:$0 sm:$0xff] }
0x10ec   :  { %v3775_v30 = vmul.f32 %v7127_v39, %v3774_v33 }
0x10ed   :  { %v3752_v28 = vmul.f32 %v7134_v8, %v3751_v62 }
0x10ef   :  { %v3753_v48 = vmul.f32 0.5, %v3752_v28 }
0x10f1   :  { %v3754_v19 = vsub.f32 1.5, %v3753_v48 }
0x10f3   :  { %v3755_v25 = vmul.f32 %v7134_v8, %v3754_v19 }
0x1122   :  { %v3733_v47 = vpop.xlane.xlu1 %3732 }
0x1123   :  { %v3741_v45 = vmul.f32 %v3733_v47, %v5841_v60 }
0x1125   :  { %v3749_v54 = vadd.f32 1e-05, %v3741_v45  ;;  %v3835_v45 = vmul.f32 %v3809_v7, %v7055_v20  ;;  %v3789_v20 = vsel %vm7184_vm14, %v7123_v44, %v3785_v37  ;;  %v3854_v44 = vadd.f32 %v4486_v2, %v3845_v0 }
0x1126   :  { %v3833_v21 = vmul.f32 %v3789_v20, %v7073_v9 }
0x1127   :  { %4788 = vrsqrt.f32 %v3749_v54  ;;  %vm3826_vm8 = vweird.f32 %v3749_v54  ;;  %v3844_v12 = vmul.f32 %v4485_v24, %v3835_v45 }
0x1128   :  { %v3842_v58 = vmul.f32 %v4485_v24, %v3833_v21 }
0x1129   :  { %v3853_v10 = vadd.f32 %v4486_v2, %v3844_v12 }
0x112a   :  { %v3724_v4 = vpop.xlane.xlu1 %3723 }
0x112b   :  { %v3738_v53 = vmul.f32 %v3724_v4, %v5841_v60 }
0x112d   :  { %v4789_v29 = vpop.eup %4788  ;;  %v7137_v11 = vadd.f32 1e-05, %v3738_v53  ;;  %v3779_v53 = vsel %vm7191_vm5, %v7127_v39, %v3775_v30 }
0x112e   :  { %v3821_v15 = vmul.f32 %v4789_v29, %v3749_v54  ;;  %vm3827_vm4 = vweird.f32 %v4789_v29  ;;  %v3832_v62 = vmul.f32 %v3779_v53, %v7062_v50 }
0x112f   :  { %4790 = vrsqrt.f32 %v7137_v11  ;;  %vm3828_vm10 = vmor %vm3826_vm8, %vm3827_vm4  ;;  %vm3796_vm6 = vweird.f32 %v7137_v11 }
0x1130   :  { %v3822_v40 = vmul.f32 %v4789_v29, %v3821_v15  ;;  %vm3758_vm4 = vmor %vm3756_vm3, %vm3757_vm1 }
0x1131   :  { %v3759_v9 = vsel %vm3758_vm4, %v7134_v8, %v3755_v25 }
0x1132   :  { %v3823_v38 = vmul.f32 0.5, %v3822_v40  ;;  %v3715_v56 = vpop.xlane.xlu1 %3714  ;;  %v3830_v50 = vmul.f32 %v3759_v9, %v7079_v3 }
0x1133   :  { %v3735_v46 = vmul.f32 %v3715_v56, %v5841_v60  ;;  %v4265_v60 = vunpack.c.h.bf16 %v4287_v41 }
0x1134   :  { %v3824_v51 = vsub.f32 1.5, %v3823_v38  ;;  %v3841_v38 = vmul.f32 %v4485_v24, %v3832_v62  ;;  %v3839_v8 = vmul.f32 %v4485_v24, %v3830_v50 }
0x1135   :  { %v4791_v49 = vpop.eup %4790  ;;  %v7169_v35 = vadd.f32 1e-05, %v3735_v46  ;;  %3907 = vmatpush.msra.mxu1 %v4265_v60 }
0x1136   :  { %v3825_v63 = vmul.f32 %v4789_v29, %v3824_v51  ;;  %v3791_v23 = vmul.f32 %v4791_v49, %v7137_v11  ;;  %vm3797_vm15 = vweird.f32 %v4791_v49  ;;  %v3850_v5 = vadd.f32 %v4486_v2, %v3841_v38 }
0x1137   :  { %4792 = vrsqrt.f32 %v7169_v35  ;;  %3908 = vmatpush.msra.mxu1 %v4264_v61  ;;  %vm3798_vm7 = vmor %vm3796_vm6, %vm3797_vm15  ;;  %vm3766_vm9 = vweird.f32 %v7169_v35  ;;  %v3848_v27 = vadd.f32 %v4486_v2, %v3839_v8 }
0x1138   :  { %v3829_v31 = vsel %vm3828_vm10, %v4789_v29, %v3825_v63  ;;  %v3792_v26 = vmul.f32 %v4791_v49, %v3791_v23 }
0x1139   :  { %v3837_v47 = vmul.f32 %v3829_v31, %v7085_v18 }
0x113a   :  { %v3793_v14 = vmul.f32 0.5, %v3792_v26 }
0x113b   :  { %v3846_v18 = vmul.f32 %v4485_v24, %v3837_v47 }
0x113c   :  { %v3794_v17 = vsub.f32 1.5, %v3793_v14 }
0x113d   :  { %v4793_v32 = vpop.eup %4792  ;;  %v3855_v4 = vadd.f32 %v4486_v2, %v3846_v18 }
0x113e   :  { %v3795_v36 = vmul.f32 %v4791_v49, %v3794_v17  ;;  %v3761_v29 = vmul.f32 %v4793_v32, %v7169_v35  ;;  %vm3767_vm8 = vweird.f32 %v4793_v32 }
0x113f   :  { %3868 = vmatpush.msrb.mxu0 %v3855_v4  ;;  %vm3768_vm10 = vmor %vm3766_vm9, %vm3767_vm8 }
0x1140   :  { %v3799_v15 = vsel %vm3798_vm7, %v4791_v49, %v3795_v36  ;;  %v3762_v1 = vmul.f32 %v4793_v32, %v3761_v29 }
0x1141   :  { %3869 = vmatpush.msrb.mxu0 %v3854_v44  ;;  %v3834_v39 = vmul.f32 %v3799_v15, %v7091_v16  ;;  %v3851_v16 = vadd.f32 %v4486_v2, %v3842_v58 }
0x1142   :  { %v3763_v11 = vmul.f32 0.5, %v3762_v1 }
0x1143   :  { %3870 = vmatpush.msrb.mxu0 %v3853_v10  ;;  %v3843_v40 = vmul.f32 %v4485_v24, %v3834_v39 }
0x1144   :  { %v3764_v43 = vsub.f32 1.5, %v3763_v11 }
0x1145   :  { %v3852_v52 = vadd.f32 %v4486_v2, %v3843_v40 }
0x1146   :  { %v3765_v56 = vmul.f32 %v4793_v32, %v3764_v43 }
0x1147   :  { %3871 = vmatpush.msrb.mxu0 %v3852_v52 }
0x1148   :  { %v3769_v34 = vsel %vm3768_vm10, %v4793_v32, %v3765_v56 }
0x1149   :  { %3872 = vmatpush.msrb.mxu0 %v3851_v16  ;;  %v3831_v41 = vmul.f32 %v3769_v34, %v7097_v6 }
0x114b   :  { %3873 = vmatpush.msrb.mxu0 %v3850_v5  ;;  %v3840_v42 = vmul.f32 %v4485_v24, %v3831_v41 }
0x114d   :  { %v3849_v46 = vadd.f32 %v4486_v2, %v3840_v42 }
0x114f   :  { %3874 = vmatpush.msrb.mxu0 %v3849_v46 }
0x1151   :  { %3875 = vmatpush.msrb.mxu0 %v3848_v27 }
0x1152   :  { %4188 = vmatmul.msk.f32.vlgmr.msrb.gmra.mxu0 %vm394_vm2, %v3856_v59 }
0x11cf   :  { %v3877_v55 = vpop.f32.mrf.mxu0 }
0x11d0   :  { %4189 = vmatmul.msk.f32.vlgmr.msra.gmra.mxu1 %vm122_vm0, %v3877_v55 }
0x124d   :  { %v3910_v3 = vpop.f32.mrf.mxu1 }
0x124e   :  { %v3911_v6 = vadd.f32 %v4487_v13, %v3910_v3 }
0x1250   :  { %3913 = vst [vmem:[#allocation8] sm:$0xff] %v3911_v6 }
0x1251   :  { %3924 = dma.vmem_to_hbm [thread:$0]  %s3920_s16, 128, %s3922_s18, [#allocation4]  }
0x1252   :  { %4894 = dma.done.wait [#allocation4], 128  }
0x1253   :  { %4895 = vsyncadd [#allocation4], 4294967168 }
0x1254   :  { %3929 = vsyncpa [#allocation3], 1 }
0x1255   :  { %3930 = vsyncpa [#allocation6], 1 }
0x1256   :  { %3931 = vsyncpa [#allocation4], 1 }

</bundles_post_ra>
